<compile_context>
chip_gen: v7x
topology: tpu7x:2x2x1
jax: 0.10.0
libtpu: 0.0.40
codegen_flags: <defaults>
</compile_context>

<pallas_src>
from functools import partial

import jax
import jax.numpy as jnp
from jax.experimental import pallas as pl
from jax.experimental.pallas import tpu as pltpu

IMG_DIM = 4096


# ------------------------- merged GRU encoder kernel -------------------------
# grid=(2,): grid step 0 = question encoder, grid step 1 = option encoder.
# Refs keep a leading size-1 per-encoder axis selected by the index_map.

def gru_pair_kernel(lens_ref, x_ref, wi_ref, wh_ref, brz_ref, bin_ref, bhn_ref,
                    h_ref, gi_ref):
    B = lens_ref.shape[1]                 # padded batch (multiple of 8)
    TB, E = x_ref.shape[1], x_ref.shape[2]
    T = TB // B
    G = wi_ref.shape[2] // 3              # lane-aligned gate width (>= H)
    H = h_ref.shape[2]

    lens = lens_ref[0]                    # (B, 1) int32
    wh = wh_ref[0]                        # (G, 3G)
    b_rz = brz_ref[0]                     # (1, 2G)  = (b_ir+b_hr | b_iz+b_hz)
    b_in = bin_ref[0]                     # (1, G)
    b_hn = bhn_ref[0]                     # (1, G)

    # Hoisted input-gate matmul over ALL timesteps (single MXU dot, outside
    # the serial dependence chain).
    gi_ref[...] = jnp.dot(x_ref[0], wi_ref[0],
                          preferred_element_type=jnp.float32)   # (T*B, 3G)

    def step(t, h):                       # h: (B, G) lane-padded hidden state
        row = pl.multiple_of(t * B, B)    # B is a multiple of 8 -> aligned
        gi = gi_ref[pl.ds(row, B), :]                              # (B, 3G)
        gh = jnp.dot(h, wh, preferred_element_type=jnp.float32)   # (B, 3G)
        rz = jax.nn.sigmoid(gi[:, :2 * G] + gh[:, :2 * G] + b_rz)  # (B, 2G)
        r = rz[:, :G]
        z = rz[:, G:]
        n = jnp.tanh(gi[:, 2 * G:] + b_in + r * (gh[:, 2 * G:] + b_hn))
        h_new = (1.0 - z) * n + z * h
        # pack_padded_sequence final-state semantics: freeze rows once t >= len.
        return jnp.where(lens > t, h_new, h)

    h_fin = jax.lax.fori_loop(0, T, step, jnp.zeros((B, G), jnp.float32),
                              unroll=True)   # short T
    h_ref[0] = h_fin[:, :H]


def gru_encode_pair(xq_tbe, lens_q, xo_tbe, lens_o, gru_w, hidden_size):
    """Runs both encoders (question / option) in one pallas_call.

    xq_tbe: (Tq, Bq, E) time-major embeddings, xo_tbe: (To, Bo, E).
    Returns (ques_vec (Bq, H), opt_vec (Bo, H)).
    """
    wi_all, wh_all, brz_all, bin_all, bhn_all = gru_w
    E = xq_tbe.shape[-1]
    G = wi_all.shape[-1] // 3
    T = max(xq_tbe.shape[0], xo_tbe.shape[0])
    Bq, Bo = xq_tbe.shape[1], xo_tbe.shape[1]
    B_pad = ((max(Bq, Bo) + 7) // 8) * 8    # sublane-aligned common batch

    def prep(x_tbe, lens, B):
        x = jnp.pad(x_tbe, ((0, T - x_tbe.shape[0]), (0, B_pad - B), (0, 0)))
        l = jnp.pad(lens.astype(jnp.int32).reshape(B, 1),
                    ((0, B_pad - B), (0, 0)))       # padded rows: len=0 -> h=0
        return x.reshape(T * B_pad, E), l

    xq, lq = prep(xq_tbe, lens_q, Bq)
    xo, lo = prep(xo_tbe, lens_o, Bo)
    x_all = jnp.stack([xq, xo])              # (2, T*B_pad, E)
    lens_all = jnp.stack([lq, lo])           # (2, B_pad, 1)

    # TODO(synk): if T*B_pad*E grows, chunk T with an extra 'arbitrary' grid
    # axis (carry h through an accumulator) instead of the whole-slab load.
    h_out = pl.pallas_call(
        gru_pair_kernel,
        out_shape=jax.ShapeDtypeStruct((2, B_pad, hidden_size), jnp.float32),
        grid=(2,),
        in_specs=[
            pl.BlockSpec((1, B_pad, 1), lambda b: (b, 0, 0)),        # lengths
            pl.BlockSpec((1, T * B_pad, E), lambda b: (b, 0, 0)),    # all steps
            pl.BlockSpec((1, E, 3 * G), lambda b: (b, 0, 0)),        # fused W_ih
            pl.BlockSpec((1, G, 3 * G), lambda b: (b, 0, 0)),        # fused W_hh
            pl.BlockSpec((1, 1, 2 * G), lambda b: (b, 0, 0)),        # folded r/z bias
            pl.BlockSpec((1, 1, G), lambda b: (b, 0, 0)),            # b_in
            pl.BlockSpec((1, 1, G), lambda b: (b, 0, 0)),            # b_hn
        ],
        out_specs=pl.BlockSpec((1, B_pad, hidden_size), lambda b: (b, 0, 0)),
        scratch_shapes=[pltpu.VMEM((T * B_pad, 3 * G), jnp.float32)],
        compiler_params=pltpu.CompilerParams(
            dimension_semantics=("parallel",),       # one encoder per TC on v7x
            vmem_limit_bytes=32 * 1024 * 1024),
    )(lens_all, x_all, wi_all, wh_all, brz_all, bin_all, bhn_all)
    return h_out[0, :Bq], h_out[1, :Bo]


# ------------------------ fused image-proj + score kernel --------------------

def score_kernel(img_ref, wimg_ref, ques_ref, wq_ref, opt_ref, b_ref, out_ref):
    # img_ref:  (n_img, 4096)       raw image features
    # wimg_ref: (4096, H)           image half of the bilinear weight
    # ques_ref: (nq, H)             question GRU states
    # wq_ref:   (H, H)              question half of the bilinear weight
    # opt_ref:  (nq, num_neg, H)    option GRU states
    # b_ref:    (1, 1)  SMEM scalar bias
    # out_ref:  (nq, num_neg)
    n_img = img_ref.shape[0]
    nq, H = ques_ref.shape
    rep = nq // n_img                      # questions per image (derived)

    img_p = jnp.dot(img_ref[...], wimg_ref[...],
                    preferred_element_type=jnp.float32)          # (n_img, H)
    yq = jnp.dot(ques_ref[...], wq_ref[...],
                 preferred_element_type=jnp.float32)             # (nq, H)
    img_rep = jnp.broadcast_to(img_p[:, None, :],
                               (n_img, rep, H)).reshape(nq, H)
    y = img_rep + yq                                             # (nq, H)
    prod = y[:, None, :] * opt_ref[...]                          # (nq, nn, H)
    out_ref[...] = jnp.sum(prod, axis=-1) + b_ref[0, 0]


def fused_score(img_seqs, w_img, ques_vec, w_q, opt_vec3, b_bil):
    n_img, d_img = img_seqs.shape
    nq, H = ques_vec.shape
    nn = opt_vec3.shape[1]
    return pl.pallas_call(
        score_kernel,
        out_shape=jax.ShapeDtypeStruct((nq, nn), jnp.float32),
        grid=(1,),
        in_specs=[
            pl.BlockSpec((n_img, d_img), lambda i: (0, 0)),
            pl.BlockSpec((d_img, H), lambda i: (0, 0)),
            pl.BlockSpec((nq, H), lambda i: (0, 0)),
            pl.BlockSpec((H, H), lambda i: (0, 0)),
            pl.BlockSpec((nq, nn, H), lambda i: (0, 0, 0)),
            pl.BlockSpec(memory_space=pltpu.MemorySpace.SMEM),    # scalar bias
        ],
        out_specs=pl.BlockSpec((nq, nn), lambda i: (0, 0)),
        compiler_params=pltpu.CompilerParams(
            dimension_semantics=("arbitrary",),
            vmem_limit_bytes=32 * 1024 * 1024),
    )(img_seqs, w_img, ques_vec, w_q, opt_vec3, b_bil)


# ------------------------------- parameters ---------------------------------

def init_params(key, vocab_size, input_size, hidden_size):
    G = ((hidden_size + 127) // 128) * 128       # lane-aligned gate width
    ks = jax.random.split(key, 5)
    emb = jax.random.normal(ks[0], (vocab_size, input_size), jnp.float32)
    emb = emb.at[0].set(0.0)                     # padding_idx = 0

    def gru_params(k):
        H = hidden_size
        k1, k2, k3, k4 = jax.random.split(k, 4)
        bound = 1.0 / float(H) ** 0.5
        wi = jax.random.uniform(k1, (3, input_size, H), jnp.float32, -bound, bound)
        wh = jax.random.uniform(k2, (3, H, H), jnp.float32, -bound, bound)
        bi = jax.random.uniform(k3, (3, 1, H), jnp.float32, -bound, bound)
        bh = jax.random.uniform(k4, (3, 1, H), jnp.float32, -bound, bound)

        # Fused gate layout [r | z | n], each gate lane-padded to G=128 so
        # in-kernel gate slices land on vreg boundaries.  Padded lanes stay
        # exactly zero in the hidden state (sigmoid(0)=0.5 gates of n=0, h=0).
        def fuse_cols(w):                        # (3, rows, H) -> (rows, 3G)
            w = jnp.pad(w, ((0, 0), (0, 0), (0, G - H)))
            return jnp.transpose(w, (1, 0, 2)).reshape(w.shape[1], 3 * G)

        def padb(b):                             # (1, H) -> (1, G)
            return jnp.pad(b, ((0, 0), (0, G - H)))

        wi_f = fuse_cols(wi)                                           # (E, 3G)
        wh_f = fuse_cols(jnp.pad(wh, ((0, 0), (0, G - H), (0, 0))))    # (G, 3G)
        b_rz = jnp.concatenate([padb(bi[0] + bh[0]), padb(bi[1] + bh[1])], -1)
        return wi_f, wh_f, b_rz, padb(bi[2]), padb(bh[2])

    q = gru_params(ks[1])
    a = gru_params(ks[2])
    gru = tuple(jnp.stack([qp, ap]) for qp, ap in zip(q, a))   # each (2, ...)

    d1 = IMG_DIM + hidden_size
    bound = 1.0 / float(d1) ** 0.5
    w_bil = jax.random.uniform(ks[3], (d1, hidden_size), jnp.float32, -bound, bound)
    b_bil = jax.random.uniform(ks[4], (1, 1), jnp.float32, -bound, bound)
    return dict(emb=emb, gru=gru, w_img=w_bil[:IMG_DIM], w_q=w_bil[IMG_DIM:],
                b_bil=b_bil)


# ------------------------------- forward pass --------------------------------

@partial(jax.jit, static_argnames=("num_neg",))
def baseline_forward(params, img_seqs, ques_seqs, ans_seqs, opt_seqs,
                     ques_lens, ans_lens, opt_lens, *, num_neg):
    emb = params["emb"]
    H = params["w_q"].shape[0]
    nq = ques_seqs.shape[0]

    # TODO(synk): np.random.choice negative sampling (num_neg < 100) omitted;
    # opt_seqs already carries exactly num_neg options per question.
    opt_flat = opt_seqs.reshape(-1, opt_seqs.shape[-1])
    opt_lens_flat = opt_lens.reshape(-1)

    # Sorting / unsorting by length (embed_utterance) is a no-op given the
    # per-row length masking inside the GRU kernel.  The torch reference also
    # computes ans_vec and never uses it; that dead GRU pass is dropped.
    xq_tbe = jnp.transpose(jnp.take(emb, ques_seqs, axis=0), (1, 0, 2))   # (T, nq, E)
    xo_tbe = jnp.transpose(jnp.take(emb, opt_flat, axis=0), (1, 0, 2))    # (T, nq*nn, E)

    ques_vec, opt_vec = gru_encode_pair(xq_tbe, ques_lens, xo_tbe,
                                        opt_lens_flat, params["gru"], H)

    # Factored bilinear: score = img @ W[:4096] · opt + ques @ W[4096:] · opt + b,
    # with the image projection + per-question repeat fused into the score kernel.
    opt_vec3 = opt_vec.reshape(nq, num_neg, H)
    logits = fused_score(img_seqs, params["w_img"], ques_vec, params["w_q"],
                         opt_vec3, params["b_bil"])                # (nq, num_neg)
    return logits.reshape(nq * num_neg, 1)


# ----------------------------------- main ------------------------------------

if __name__ == "__main__":
    key = jax.random.PRNGKey(0)
    vocab_size, input_size, hidden_size = 50, 32, 32
    n_img, n_q_per_img, num_neg, T = 1, 10, 2, 8
    n_q = n_img * n_q_per_img      # 10 questions per image, matching repeat(1, 10)

    pk, dk = jax.random.split(key)
    params = init_params(pk, vocab_size, input_size, hidden_size)

    ks = jax.random.split(dk, 4)
    img_seqs = jax.random.normal(ks[0], (n_img, IMG_DIM), jnp.float32)

    def make_seqs(k, rows, seq_len):
        k1, k2 = jax.random.split(k)
        lens = jax.random.randint(k1, (rows,), 1, seq_len + 1)
        toks = jax.random.randint(k2, (rows, seq_len), 1, vocab_size)
        mask = jnp.arange(seq_len)[None, :] < lens[:, None]
        return jnp.where(mask, toks, 0).astype(jnp.int32), lens.astype(jnp.int32)

    ques_seqs, ques_lens = make_seqs(ks[1], n_q, T)
    ans_seqs, ans_lens = make_seqs(ks[2], n_q, T)
    opt_flat, opt_lens_flat = make_seqs(ks[3], n_q * num_neg, T)
    opt_seqs = opt_flat.reshape(n_q, num_neg, T)
    opt_lens = opt_lens_flat.reshape(n_q, num_neg)

    logits = baseline_forward(params, img_seqs, ques_seqs, ans_seqs, opt_seqs,
                              ques_lens, ans_lens, opt_lens, num_neg=num_neg)
    jax.block_until_ready(logits)
    assert logits.shape == (n_q * num_neg, 1) and logits.dtype == jnp.float32
    print("KERNEL_OK")
</pallas_src>

<mosaic_0001>
module attributes {stable_mosaic.version = 11 : i64} {
  func.func @gru_pair_kernel(%arg0: i32, %arg1: memref<1x24x1xi32, #tpu.memory_space<vmem>>, %arg2: memref<1x192x32xf32, #tpu.memory_space<vmem>>, %arg3: memref<1x32x384xf32, #tpu.memory_space<vmem>>, %arg4: memref<1x128x384xf32, #tpu.memory_space<vmem>>, %arg5: memref<1x1x256xf32, #tpu.memory_space<vmem>>, %arg6: memref<1x1x128xf32, #tpu.memory_space<vmem>>, %arg7: memref<1x1x128xf32, #tpu.memory_space<vmem>>, %arg8: memref<1x24x32xf32, #tpu.memory_space<vmem>>, %arg9: memref<192x384xf32, #tpu.memory_space<vmem>>) attributes {dimension_semantics = [#tpu.dimension_semantics<parallel>], iteration_bounds = array<i64: 2>, scalar_prefetch = 0 : i64, scratch_operands = 1 : i64, tpu.core_type = #tpu.core_type<tc>, window_params = [{transform_indices = @transform_0, window_bounds = array<i64: 1, 24, 1>}, {transform_indices = @transform_1, window_bounds = array<i64: 1, 192, 32>}, {transform_indices = @transform_2, window_bounds = array<i64: 1, 32, 384>}, {transform_indices = @transform_3, window_bounds = array<i64: 1, 128, 384>}, {transform_indices = @transform_4, window_bounds = array<i64: 1, 1, 256>}, {transform_indices = @transform_5, window_bounds = array<i64: 1, 1, 128>}, {transform_indices = @transform_6, window_bounds = array<i64: 1, 1, 128>}, {transform_indices = @transform_7, window_bounds = array<i64: 1, 24, 32>}]} {
    %c0 = arith.constant 0 : index
    %c0_0 = arith.constant 0 : index
    %c0_1 = arith.constant 0 : index
    %0 = vector.load %arg1[%c0, %c0_0, %c0_1] : memref<1x24x1xi32, #tpu.memory_space<vmem>>, vector<1x24x1xi32>
    %1 = vector.shape_cast %0 : vector<1x24x1xi32> to vector<24x1xi32>
    %c0_2 = arith.constant 0 : index
    %c0_3 = arith.constant 0 : index
    %c0_4 = arith.constant 0 : index
    %2 = vector.load %arg4[%c0_2, %c0_3, %c0_4] : memref<1x128x384xf32, #tpu.memory_space<vmem>>, vector<1x128x384xf32>
    %3 = vector.shape_cast %2 : vector<1x128x384xf32> to vector<128x384xf32>
    %c0_5 = arith.constant 0 : index
    %c0_6 = arith.constant 0 : index
    %c0_7 = arith.constant 0 : index
    %4 = vector.load %arg5[%c0_5, %c0_6, %c0_7] : memref<1x1x256xf32, #tpu.memory_space<vmem>>, vector<1x1x256xf32>
    %5 = vector.shape_cast %4 : vector<1x1x256xf32> to vector<1x256xf32>
    %c0_8 = arith.constant 0 : index
    %c0_9 = arith.constant 0 : index
    %c0_10 = arith.constant 0 : index
    %6 = vector.load %arg6[%c0_8, %c0_9, %c0_10] : memref<1x1x128xf32, #tpu.memory_space<vmem>>, vector<1x1x128xf32>
    %7 = vector.shape_cast %6 : vector<1x1x128xf32> to vector<1x128xf32>
    %c0_11 = arith.constant 0 : index
    %c0_12 = arith.constant 0 : index
    %c0_13 = arith.constant 0 : index
    %8 = vector.load %arg7[%c0_11, %c0_12, %c0_13] : memref<1x1x128xf32, #tpu.memory_space<vmem>>, vector<1x1x128xf32>
    %9 = vector.shape_cast %8 : vector<1x1x128xf32> to vector<1x128xf32>
    %c0_14 = arith.constant 0 : index
    %c0_15 = arith.constant 0 : index
    %c0_16 = arith.constant 0 : index
    %10 = vector.load %arg2[%c0_14, %c0_15, %c0_16] : memref<1x192x32xf32, #tpu.memory_space<vmem>>, vector<1x192x32xf32>
    %11 = vector.shape_cast %10 : vector<1x192x32xf32> to vector<192x32xf32>
    %c0_17 = arith.constant 0 : index
    %c0_18 = arith.constant 0 : index
    %c0_19 = arith.constant 0 : index
    %12 = vector.load %arg3[%c0_17, %c0_18, %c0_19] : memref<1x32x384xf32, #tpu.memory_space<vmem>>, vector<1x32x384xf32>
    %13 = vector.shape_cast %12 : vector<1x32x384xf32> to vector<32x384xf32>
    %cst = arith.constant dense<0.000000e+00> : vector<192x384xf32>
    %14 = tpu.matmul %11, %13, %cst {dimension_numbers = #tpu.dot_dimension_numbers<[1], [0], [0], [1], [0, 0, 1, 1], [], []>} : vector<192x32xf32>, vector<32x384xf32>, vector<192x384xf32> -> vector<192x384xf32>
    %c0_20 = arith.constant 0 : index
    %c0_21 = arith.constant 0 : index
    %15 = vector.load %arg9[%c0_20, %c0_21] : memref<192x384xf32, #tpu.memory_space<vmem>>, vector<192x384xf32>
    tpu.vector_store %arg9[%c0_20, %c0_21], %14 {strides = array<i32>} : memref<192x384xf32, #tpu.memory_space<vmem>>, vector<192x384xf32>,
    %cst_22 = arith.constant 0.000000e+00 : f32
    %16 = vector.broadcast %cst_22 : f32 to vector<24x128xf32>
    %c0_i32 = arith.constant 0 : i32
    %c24_i32 = arith.constant 24 : i32
    %17 = arith.muli %c0_i32, %c24_i32 : i32
    %18 = tpu.assume_multiple %17, 24 : i32
    %19 = arith.index_cast %18 : i32 to index
    %c0_23 = arith.constant 0 : index
    %20 = vector.load %arg9[%19, %c0_23] : memref<192x384xf32, #tpu.memory_space<vmem>>, vector<24x384xf32>
    %cst_24 = arith.constant dense<0.000000e+00> : vector<24x384xf32>
    %21 = tpu.matmul %16, %3, %cst_24 {dimension_numbers = #tpu.dot_dimension_numbers<[1], [0], [0], [1], [0, 0, 1, 1], [], []>} : vector<24x128xf32>, vector<128x384xf32>, vector<24x384xf32> -> vector<24x384xf32>
    %22 = vector.extract_strided_slice %20 {offsets = [0, 0], sizes = [24, 256], strides = [1, 1]} : vector<24x384xf32> to vector<24x256xf32>
    %23 = vector.extract_strided_slice %21 {offsets = [0, 0], sizes = [24, 256], strides = [1, 1]} : vector<24x384xf32> to vector<24x256xf32>
    %24 = arith.addf %22, %23 : vector<24x256xf32>
    %25 = vector.broadcast %5 : vector<1x256xf32> to vector<24x256xf32>
    %26 = arith.addf %24, %25 : vector<24x256xf32>
    %27 = arith.negf %26 : vector<24x256xf32>
    %28 = math.exp %27 : vector<24x256xf32>
    %cst_25 = arith.constant 1.000000e+00 : f32
    %29 = vector.broadcast %cst_25 : f32 to vector<24x256xf32>
    %30 = arith.addf %29, %28 : vector<24x256xf32>
    %31 = arith.divf %29, %30 : vector<24x256xf32>
    %32 = vector.extract_strided_slice %31 {offsets = [0, 0], sizes = [24, 128], strides = [1, 1]} : vector<24x256xf32> to vector<24x128xf32>
    %33 = vector.extract_strided_slice %31 {offsets = [0, 128], sizes = [24, 128], strides = [1, 1]} : vector<24x256xf32> to vector<24x128xf32>
    %34 = vector.extract_strided_slice %20 {offsets = [0, 256], sizes = [24, 128], strides = [1, 1]} : vector<24x384xf32> to vector<24x128xf32>
    %35 = vector.broadcast %7 : vector<1x128xf32> to vector<24x128xf32>
    %36 = arith.addf %34, %35 : vector<24x128xf32>
    %37 = vector.extract_strided_slice %21 {offsets = [0, 256], sizes = [24, 128], strides = [1, 1]} : vector<24x384xf32> to vector<24x128xf32>
    %38 = vector.broadcast %9 : vector<1x128xf32> to vector<24x128xf32>
    %39 = arith.addf %37, %38 : vector<24x128xf32>
    %40 = arith.mulf %32, %39 : vector<24x128xf32>
    %41 = arith.addf %36, %40 : vector<24x128xf32>
    %42 = math.tanh %41 : vector<24x128xf32>
    %cst_26 = arith.constant 1.000000e+00 : f32
    %43 = vector.broadcast %cst_26 : f32 to vector<24x128xf32>
    %44 = arith.subf %43, %33 : vector<24x128xf32>
    %45 = arith.mulf %44, %42 : vector<24x128xf32>
    %46 = arith.mulf %33, %16 : vector<24x128xf32>
    %47 = arith.addf %45, %46 : vector<24x128xf32>
    %48 = vector.broadcast %c0_i32 : i32 to vector<24x1xi32>
    %49 = arith.cmpi sgt, %1, %48 : vector<24x1xi32>
    %50 = vector.shape_cast %49 : vector<24x1xi1> to vector<24x1xi1>
    %51 = vector.broadcast %50 : vector<24x1xi1> to vector<24x128xi1>
    %52 = arith.select %51, %47, %16 : vector<24x128xi1>, vector<24x128xf32>
    %c1_i32 = arith.constant 1 : i32
    %c24_i32_27 = arith.constant 24 : i32
    %53 = arith.muli %c1_i32, %c24_i32_27 : i32
    %54 = tpu.assume_multiple %53, 24 : i32
    %55 = arith.index_cast %54 : i32 to index
    %c0_28 = arith.constant 0 : index
    %56 = vector.load %arg9[%55, %c0_28] : memref<192x384xf32, #tpu.memory_space<vmem>>, vector<24x384xf32>
    %cst_29 = arith.constant dense<0.000000e+00> : vector<24x384xf32>
    %57 = tpu.matmul %52, %3, %cst_29 {dimension_numbers = #tpu.dot_dimension_numbers<[1], [0], [0], [1], [0, 0, 1, 1], [], []>} : vector<24x128xf32>, vector<128x384xf32>, vector<24x384xf32> -> vector<24x384xf32>
    %58 = vector.extract_strided_slice %56 {offsets = [0, 0], sizes = [24, 256], strides = [1, 1]} : vector<24x384xf32> to vector<24x256xf32>
    %59 = vector.extract_strided_slice %57 {offsets = [0, 0], sizes = [24, 256], strides = [1, 1]} : vector<24x384xf32> to vector<24x256xf32>
    %60 = arith.addf %58, %59 : vector<24x256xf32>
    %61 = vector.broadcast %5 : vector<1x256xf32> to vector<24x256xf32>
    %62 = arith.addf %60, %61 : vector<24x256xf32>
    %63 = arith.negf %62 : vector<24x256xf32>
    %64 = math.exp %63 : vector<24x256xf32>
    %cst_30 = arith.constant 1.000000e+00 : f32
    %65 = vector.broadcast %cst_30 : f32 to vector<24x256xf32>
    %66 = arith.addf %65, %64 : vector<24x256xf32>
    %67 = arith.divf %65, %66 : vector<24x256xf32>
    %68 = vector.extract_strided_slice %67 {offsets = [0, 0], sizes = [24, 128], strides = [1, 1]} : vector<24x256xf32> to vector<24x128xf32>
    %69 = vector.extract_strided_slice %67 {offsets = [0, 128], sizes = [24, 128], strides = [1, 1]} : vector<24x256xf32> to vector<24x128xf32>
    %70 = vector.extract_strided_slice %56 {offsets = [0, 256], sizes = [24, 128], strides = [1, 1]} : vector<24x384xf32> to vector<24x128xf32>
    %71 = vector.broadcast %7 : vector<1x128xf32> to vector<24x128xf32>
    %72 = arith.addf %70, %71 : vector<24x128xf32>
    %73 = vector.extract_strided_slice %57 {offsets = [0, 256], sizes = [24, 128], strides = [1, 1]} : vector<24x384xf32> to vector<24x128xf32>
    %74 = vector.broadcast %9 : vector<1x128xf32> to vector<24x128xf32>
    %75 = arith.addf %73, %74 : vector<24x128xf32>
    %76 = arith.mulf %68, %75 : vector<24x128xf32>
    %77 = arith.addf %72, %76 : vector<24x128xf32>
    %78 = math.tanh %77 : vector<24x128xf32>
    %cst_31 = arith.constant 1.000000e+00 : f32
    %79 = vector.broadcast %cst_31 : f32 to vector<24x128xf32>
    %80 = arith.subf %79, %69 : vector<24x128xf32>
    %81 = arith.mulf %80, %78 : vector<24x128xf32>
    %82 = arith.mulf %69, %52 : vector<24x128xf32>
    %83 = arith.addf %81, %82 : vector<24x128xf32>
    %84 = vector.broadcast %c1_i32 : i32 to vector<24x1xi32>
    %85 = arith.cmpi sgt, %1, %84 : vector<24x1xi32>
    %86 = vector.shape_cast %85 : vector<24x1xi1> to vector<24x1xi1>
    %87 = vector.broadcast %86 : vector<24x1xi1> to vector<24x128xi1>
    %88 = arith.select %87, %83, %52 : vector<24x128xi1>, vector<24x128xf32>
    %c2_i32 = arith.constant 2 : i32
    %c24_i32_32 = arith.constant 24 : i32
    %89 = arith.muli %c2_i32, %c24_i32_32 : i32
    %90 = tpu.assume_multiple %89, 24 : i32
    %91 = arith.index_cast %90 : i32 to index
    %c0_33 = arith.constant 0 : index
    %92 = vector.load %arg9[%91, %c0_33] : memref<192x384xf32, #tpu.memory_space<vmem>>, vector<24x384xf32>
    %cst_34 = arith.constant dense<0.000000e+00> : vector<24x384xf32>
    %93 = tpu.matmul %88, %3, %cst_34 {dimension_numbers = #tpu.dot_dimension_numbers<[1], [0], [0], [1], [0, 0, 1, 1], [], []>} : vector<24x128xf32>, vector<128x384xf32>, vector<24x384xf32> -> vector<24x384xf32>
    %94 = vector.extract_strided_slice %92 {offsets = [0, 0], sizes = [24, 256], strides = [1, 1]} : vector<24x384xf32> to vector<24x256xf32>
    %95 = vector.extract_strided_slice %93 {offsets = [0, 0], sizes = [24, 256], strides = [1, 1]} : vector<24x384xf32> to vector<24x256xf32>
    %96 = arith.addf %94, %95 : vector<24x256xf32>
    %97 = vector.broadcast %5 : vector<1x256xf32> to vector<24x256xf32>
    %98 = arith.addf %96, %97 : vector<24x256xf32>
    %99 = arith.negf %98 : vector<24x256xf32>
    %100 = math.exp %99 : vector<24x256xf32>
    %cst_35 = arith.constant 1.000000e+00 : f32
    %101 = vector.broadcast %cst_35 : f32 to vector<24x256xf32>
    %102 = arith.addf %101, %100 : vector<24x256xf32>
    %103 = arith.divf %101, %102 : vector<24x256xf32>
    %104 = vector.extract_strided_slice %103 {offsets = [0, 0], sizes = [24, 128], strides = [1, 1]} : vector<24x256xf32> to vector<24x128xf32>
    %105 = vector.extract_strided_slice %103 {offsets = [0, 128], sizes = [24, 128], strides = [1, 1]} : vector<24x256xf32> to vector<24x128xf32>
    %106 = vector.extract_strided_slice %92 {offsets = [0, 256], sizes = [24, 128], strides = [1, 1]} : vector<24x384xf32> to vector<24x128xf32>
    %107 = vector.broadcast %7 : vector<1x128xf32> to vector<24x128xf32>
    %108 = arith.addf %106, %107 : vector<24x128xf32>
    %109 = vector.extract_strided_slice %93 {offsets = [0, 256], sizes = [24, 128], strides = [1, 1]} : vector<24x384xf32> to vector<24x128xf32>
    %110 = vector.broadcast %9 : vector<1x128xf32> to vector<24x128xf32>
    %111 = arith.addf %109, %110 : vector<24x128xf32>
    %112 = arith.mulf %104, %111 : vector<24x128xf32>
    %113 = arith.addf %108, %112 : vector<24x128xf32>
    %114 = math.tanh %113 : vector<24x128xf32>
    %cst_36 = arith.constant 1.000000e+00 : f32
    %115 = vector.broadcast %cst_36 : f32 to vector<24x128xf32>
    %116 = arith.subf %115, %105 : vector<24x128xf32>
    %117 = arith.mulf %116, %114 : vector<24x128xf32>
    %118 = arith.mulf %105, %88 : vector<24x128xf32>
    %119 = arith.addf %117, %118 : vector<24x128xf32>
    %120 = vector.broadcast %c2_i32 : i32 to vector<24x1xi32>
    %121 = arith.cmpi sgt, %1, %120 : vector<24x1xi32>
    %122 = vector.shape_cast %121 : vector<24x1xi1> to vector<24x1xi1>
    %123 = vector.broadcast %122 : vector<24x1xi1> to vector<24x128xi1>
    %124 = arith.select %123, %119, %88 : vector<24x128xi1>, vector<24x128xf32>
    %c3_i32 = arith.constant 3 : i32
    %c24_i32_37 = arith.constant 24 : i32
    %125 = arith.muli %c3_i32, %c24_i32_37 : i32
    %126 = tpu.assume_multiple %125, 24 : i32
    %127 = arith.index_cast %126 : i32 to index
    %c0_38 = arith.constant 0 : index
    %128 = vector.load %arg9[%127, %c0_38] : memref<192x384xf32, #tpu.memory_space<vmem>>, vector<24x384xf32>
    %cst_39 = arith.constant dense<0.000000e+00> : vector<24x384xf32>
    %129 = tpu.matmul %124, %3, %cst_39 {dimension_numbers = #tpu.dot_dimension_numbers<[1], [0], [0], [1], [0, 0, 1, 1], [], []>} : vector<24x128xf32>, vector<128x384xf32>, vector<24x384xf32> -> vector<24x384xf32>
    %130 = vector.extract_strided_slice %128 {offsets = [0, 0], sizes = [24, 256], strides = [1, 1]} : vector<24x384xf32> to vector<24x256xf32>
    %131 = vector.extract_strided_slice %129 {offsets = [0, 0], sizes = [24, 256], strides = [1, 1]} : vector<24x384xf32> to vector<24x256xf32>
    %132 = arith.addf %130, %131 : vector<24x256xf32>
    %133 = vector.broadcast %5 : vector<1x256xf32> to vector<24x256xf32>
    %134 = arith.addf %132, %133 : vector<24x256xf32>
    %135 = arith.negf %134 : vector<24x256xf32>
    %136 = math.exp %135 : vector<24x256xf32>
    %cst_40 = arith.constant 1.000000e+00 : f32
    %137 = vector.broadcast %cst_40 : f32 to vector<24x256xf32>
    %138 = arith.addf %137, %136 : vector<24x256xf32>
    %139 = arith.divf %137, %138 : vector<24x256xf32>
    %140 = vector.extract_strided_slice %139 {offsets = [0, 0], sizes = [24, 128], strides = [1, 1]} : vector<24x256xf32> to vector<24x128xf32>
    %141 = vector.extract_strided_slice %139 {offsets = [0, 128], sizes = [24, 128], strides = [1, 1]} : vector<24x256xf32> to vector<24x128xf32>
    %142 = vector.extract_strided_slice %128 {offsets = [0, 256], sizes = [24, 128], strides = [1, 1]} : vector<24x384xf32> to vector<24x128xf32>
    %143 = vector.broadcast %7 : vector<1x128xf32> to vector<24x128xf32>
    %144 = arith.addf %142, %143 : vector<24x128xf32>
    %145 = vector.extract_strided_slice %129 {offsets = [0, 256], sizes = [24, 128], strides = [1, 1]} : vector<24x384xf32> to vector<24x128xf32>
    %146 = vector.broadcast %9 : vector<1x128xf32> to vector<24x128xf32>
    %147 = arith.addf %145, %146 : vector<24x128xf32>
    %148 = arith.mulf %140, %147 : vector<24x128xf32>
    %149 = arith.addf %144, %148 : vector<24x128xf32>
    %150 = math.tanh %149 : vector<24x128xf32>
    %cst_41 = arith.constant 1.000000e+00 : f32
    %151 = vector.broadcast %cst_41 : f32 to vector<24x128xf32>
    %152 = arith.subf %151, %141 : vector<24x128xf32>
    %153 = arith.mulf %152, %150 : vector<24x128xf32>
    %154 = arith.mulf %141, %124 : vector<24x128xf32>
    %155 = arith.addf %153, %154 : vector<24x128xf32>
    %156 = vector.broadcast %c3_i32 : i32 to vector<24x1xi32>
    %157 = arith.cmpi sgt, %1, %156 : vector<24x1xi32>
    %158 = vector.shape_cast %157 : vector<24x1xi1> to vector<24x1xi1>
    %159 = vector.broadcast %158 : vector<24x1xi1> to vector<24x128xi1>
    %160 = arith.select %159, %155, %124 : vector<24x128xi1>, vector<24x128xf32>
    %c4_i32 = arith.constant 4 : i32
    %c24_i32_42 = arith.constant 24 : i32
    %161 = arith.muli %c4_i32, %c24_i32_42 : i32
    %162 = tpu.assume_multiple %161, 24 : i32
    %163 = arith.index_cast %162 : i32 to index
    %c0_43 = arith.constant 0 : index
    %164 = vector.load %arg9[%163, %c0_43] : memref<192x384xf32, #tpu.memory_space<vmem>>, vector<24x384xf32>
    %cst_44 = arith.constant dense<0.000000e+00> : vector<24x384xf32>
    %165 = tpu.matmul %160, %3, %cst_44 {dimension_numbers = #tpu.dot_dimension_numbers<[1], [0], [0], [1], [0, 0, 1, 1], [], []>} : vector<24x128xf32>, vector<128x384xf32>, vector<24x384xf32> -> vector<24x384xf32>
    %166 = vector.extract_strided_slice %164 {offsets = [0, 0], sizes = [24, 256], strides = [1, 1]} : vector<24x384xf32> to vector<24x256xf32>
    %167 = vector.extract_strided_slice %165 {offsets = [0, 0], sizes = [24, 256], strides = [1, 1]} : vector<24x384xf32> to vector<24x256xf32>
    %168 = arith.addf %166, %167 : vector<24x256xf32>
    %169 = vector.broadcast %5 : vector<1x256xf32> to vector<24x256xf32>
    %170 = arith.addf %168, %169 : vector<24x256xf32>
    %171 = arith.negf %170 : vector<24x256xf32>
    %172 = math.exp %171 : vector<24x256xf32>
    %cst_45 = arith.constant 1.000000e+00 : f32
    %173 = vector.broadcast %cst_45 : f32 to vector<24x256xf32>
    %174 = arith.addf %173, %172 : vector<24x256xf32>
    %175 = arith.divf %173, %174 : vector<24x256xf32>
    %176 = vector.extract_strided_slice %175 {offsets = [0, 0], sizes = [24, 128], strides = [1, 1]} : vector<24x256xf32> to vector<24x128xf32>
    %177 = vector.extract_strided_slice %175 {offsets = [0, 128], sizes = [24, 128], strides = [1, 1]} : vector<24x256xf32> to vector<24x128xf32>
    %178 = vector.extract_strided_slice %164 {offsets = [0, 256], sizes = [24, 128], strides = [1, 1]} : vector<24x384xf32> to vector<24x128xf32>
    %179 = vector.broadcast %7 : vector<1x128xf32> to vector<24x128xf32>
    %180 = arith.addf %178, %179 : vector<24x128xf32>
    %181 = vector.extract_strided_slice %165 {offsets = [0, 256], sizes = [24, 128], strides = [1, 1]} : vector<24x384xf32> to vector<24x128xf32>
    %182 = vector.broadcast %9 : vector<1x128xf32> to vector<24x128xf32>
    %183 = arith.addf %181, %182 : vector<24x128xf32>
    %184 = arith.mulf %176, %183 : vector<24x128xf32>
    %185 = arith.addf %180, %184 : vector<24x128xf32>
    %186 = math.tanh %185 : vector<24x128xf32>
    %cst_46 = arith.constant 1.000000e+00 : f32
    %187 = vector.broadcast %cst_46 : f32 to vector<24x128xf32>
    %188 = arith.subf %187, %177 : vector<24x128xf32>
    %189 = arith.mulf %188, %186 : vector<24x128xf32>
    %190 = arith.mulf %177, %160 : vector<24x128xf32>
    %191 = arith.addf %189, %190 : vector<24x128xf32>
    %192 = vector.broadcast %c4_i32 : i32 to vector<24x1xi32>
    %193 = arith.cmpi sgt, %1, %192 : vector<24x1xi32>
    %194 = vector.shape_cast %193 : vector<24x1xi1> to vector<24x1xi1>
    %195 = vector.broadcast %194 : vector<24x1xi1> to vector<24x128xi1>
    %196 = arith.select %195, %191, %160 : vector<24x128xi1>, vector<24x128xf32>
    %c5_i32 = arith.constant 5 : i32
    %c24_i32_47 = arith.constant 24 : i32
    %197 = arith.muli %c5_i32, %c24_i32_47 : i32
    %198 = tpu.assume_multiple %197, 24 : i32
    %199 = arith.index_cast %198 : i32 to index
    %c0_48 = arith.constant 0 : index
    %200 = vector.load %arg9[%199, %c0_48] : memref<192x384xf32, #tpu.memory_space<vmem>>, vector<24x384xf32>
    %cst_49 = arith.constant dense<0.000000e+00> : vector<24x384xf32>
    %201 = tpu.matmul %196, %3, %cst_49 {dimension_numbers = #tpu.dot_dimension_numbers<[1], [0], [0], [1], [0, 0, 1, 1], [], []>} : vector<24x128xf32>, vector<128x384xf32>, vector<24x384xf32> -> vector<24x384xf32>
    %202 = vector.extract_strided_slice %200 {offsets = [0, 0], sizes = [24, 256], strides = [1, 1]} : vector<24x384xf32> to vector<24x256xf32>
    %203 = vector.extract_strided_slice %201 {offsets = [0, 0], sizes = [24, 256], strides = [1, 1]} : vector<24x384xf32> to vector<24x256xf32>
    %204 = arith.addf %202, %203 : vector<24x256xf32>
    %205 = vector.broadcast %5 : vector<1x256xf32> to vector<24x256xf32>
    %206 = arith.addf %204, %205 : vector<24x256xf32>
    %207 = arith.negf %206 : vector<24x256xf32>
    %208 = math.exp %207 : vector<24x256xf32>
    %cst_50 = arith.constant 1.000000e+00 : f32
    %209 = vector.broadcast %cst_50 : f32 to vector<24x256xf32>
    %210 = arith.addf %209, %208 : vector<24x256xf32>
    %211 = arith.divf %209, %210 : vector<24x256xf32>
    %212 = vector.extract_strided_slice %211 {offsets = [0, 0], sizes = [24, 128], strides = [1, 1]} : vector<24x256xf32> to vector<24x128xf32>
    %213 = vector.extract_strided_slice %211 {offsets = [0, 128], sizes = [24, 128], strides = [1, 1]} : vector<24x256xf32> to vector<24x128xf32>
    %214 = vector.extract_strided_slice %200 {offsets = [0, 256], sizes = [24, 128], strides = [1, 1]} : vector<24x384xf32> to vector<24x128xf32>
    %215 = vector.broadcast %7 : vector<1x128xf32> to vector<24x128xf32>
    %216 = arith.addf %214, %215 : vector<24x128xf32>
    %217 = vector.extract_strided_slice %201 {offsets = [0, 256], sizes = [24, 128], strides = [1, 1]} : vector<24x384xf32> to vector<24x128xf32>
    %218 = vector.broadcast %9 : vector<1x128xf32> to vector<24x128xf32>
    %219 = arith.addf %217, %218 : vector<24x128xf32>
    %220 = arith.mulf %212, %219 : vector<24x128xf32>
    %221 = arith.addf %216, %220 : vector<24x128xf32>
    %222 = math.tanh %221 : vector<24x128xf32>
    %cst_51 = arith.constant 1.000000e+00 : f32
    %223 = vector.broadcast %cst_51 : f32 to vector<24x128xf32>
    %224 = arith.subf %223, %213 : vector<24x128xf32>
    %225 = arith.mulf %224, %222 : vector<24x128xf32>
    %226 = arith.mulf %213, %196 : vector<24x128xf32>
    %227 = arith.addf %225, %226 : vector<24x128xf32>
    %228 = vector.broadcast %c5_i32 : i32 to vector<24x1xi32>
    %229 = arith.cmpi sgt, %1, %228 : vector<24x1xi32>
    %230 = vector.shape_cast %229 : vector<24x1xi1> to vector<24x1xi1>
    %231 = vector.broadcast %230 : vector<24x1xi1> to vector<24x128xi1>
    %232 = arith.select %231, %227, %196 : vector<24x128xi1>, vector<24x128xf32>
    %c6_i32 = arith.constant 6 : i32
    %c24_i32_52 = arith.constant 24 : i32
    %233 = arith.muli %c6_i32, %c24_i32_52 : i32
    %234 = tpu.assume_multiple %233, 24 : i32
    %235 = arith.index_cast %234 : i32 to index
    %c0_53 = arith.constant 0 : index
    %236 = vector.load %arg9[%235, %c0_53] : memref<192x384xf32, #tpu.memory_space<vmem>>, vector<24x384xf32>
    %cst_54 = arith.constant dense<0.000000e+00> : vector<24x384xf32>
    %237 = tpu.matmul %232, %3, %cst_54 {dimension_numbers = #tpu.dot_dimension_numbers<[1], [0], [0], [1], [0, 0, 1, 1], [], []>} : vector<24x128xf32>, vector<128x384xf32>, vector<24x384xf32> -> vector<24x384xf32>
    %238 = vector.extract_strided_slice %236 {offsets = [0, 0], sizes = [24, 256], strides = [1, 1]} : vector<24x384xf32> to vector<24x256xf32>
    %239 = vector.extract_strided_slice %237 {offsets = [0, 0], sizes = [24, 256], strides = [1, 1]} : vector<24x384xf32> to vector<24x256xf32>
    %240 = arith.addf %238, %239 : vector<24x256xf32>
    %241 = vector.broadcast %5 : vector<1x256xf32> to vector<24x256xf32>
    %242 = arith.addf %240, %241 : vector<24x256xf32>
    %243 = arith.negf %242 : vector<24x256xf32>
    %244 = math.exp %243 : vector<24x256xf32>
    %cst_55 = arith.constant 1.000000e+00 : f32
    %245 = vector.broadcast %cst_55 : f32 to vector<24x256xf32>
    %246 = arith.addf %245, %244 : vector<24x256xf32>
    %247 = arith.divf %245, %246 : vector<24x256xf32>
    %248 = vector.extract_strided_slice %247 {offsets = [0, 0], sizes = [24, 128], strides = [1, 1]} : vector<24x256xf32> to vector<24x128xf32>
    %249 = vector.extract_strided_slice %247 {offsets = [0, 128], sizes = [24, 128], strides = [1, 1]} : vector<24x256xf32> to vector<24x128xf32>
    %250 = vector.extract_strided_slice %236 {offsets = [0, 256], sizes = [24, 128], strides = [1, 1]} : vector<24x384xf32> to vector<24x128xf32>
    %251 = vector.broadcast %7 : vector<1x128xf32> to vector<24x128xf32>
    %252 = arith.addf %250, %251 : vector<24x128xf32>
    %253 = vector.extract_strided_slice %237 {offsets = [0, 256], sizes = [24, 128], strides = [1, 1]} : vector<24x384xf32> to vector<24x128xf32>
    %254 = vector.broadcast %9 : vector<1x128xf32> to vector<24x128xf32>
    %255 = arith.addf %253, %254 : vector<24x128xf32>
    %256 = arith.mulf %248, %255 : vector<24x128xf32>
    %257 = arith.addf %252, %256 : vector<24x128xf32>
    %258 = math.tanh %257 : vector<24x128xf32>
    %cst_56 = arith.constant 1.000000e+00 : f32
    %259 = vector.broadcast %cst_56 : f32 to vector<24x128xf32>
    %260 = arith.subf %259, %249 : vector<24x128xf32>
    %261 = arith.mulf %260, %258 : vector<24x128xf32>
    %262 = arith.mulf %249, %232 : vector<24x128xf32>
    %263 = arith.addf %261, %262 : vector<24x128xf32>
    %264 = vector.broadcast %c6_i32 : i32 to vector<24x1xi32>
    %265 = arith.cmpi sgt, %1, %264 : vector<24x1xi32>
    %266 = vector.shape_cast %265 : vector<24x1xi1> to vector<24x1xi1>
    %267 = vector.broadcast %266 : vector<24x1xi1> to vector<24x128xi1>
    %268 = arith.select %267, %263, %232 : vector<24x128xi1>, vector<24x128xf32>
    %c7_i32 = arith.constant 7 : i32
    %c24_i32_57 = arith.constant 24 : i32
    %269 = arith.muli %c7_i32, %c24_i32_57 : i32
    %270 = tpu.assume_multiple %269, 24 : i32
    %271 = arith.index_cast %270 : i32 to index
    %c0_58 = arith.constant 0 : index
    %272 = vector.load %arg9[%271, %c0_58] : memref<192x384xf32, #tpu.memory_space<vmem>>, vector<24x384xf32>
    %cst_59 = arith.constant dense<0.000000e+00> : vector<24x384xf32>
    %273 = tpu.matmul %268, %3, %cst_59 {dimension_numbers = #tpu.dot_dimension_numbers<[1], [0], [0], [1], [0, 0, 1, 1], [], []>} : vector<24x128xf32>, vector<128x384xf32>, vector<24x384xf32> -> vector<24x384xf32>
    %274 = vector.extract_strided_slice %272 {offsets = [0, 0], sizes = [24, 256], strides = [1, 1]} : vector<24x384xf32> to vector<24x256xf32>
    %275 = vector.extract_strided_slice %273 {offsets = [0, 0], sizes = [24, 256], strides = [1, 1]} : vector<24x384xf32> to vector<24x256xf32>
    %276 = arith.addf %274, %275 : vector<24x256xf32>
    %277 = vector.broadcast %5 : vector<1x256xf32> to vector<24x256xf32>
    %278 = arith.addf %276, %277 : vector<24x256xf32>
    %279 = arith.negf %278 : vector<24x256xf32>
    %280 = math.exp %279 : vector<24x256xf32>
    %cst_60 = arith.constant 1.000000e+00 : f32
    %281 = vector.broadcast %cst_60 : f32 to vector<24x256xf32>
    %282 = arith.addf %281, %280 : vector<24x256xf32>
    %283 = arith.divf %281, %282 : vector<24x256xf32>
    %284 = vector.extract_strided_slice %283 {offsets = [0, 0], sizes = [24, 128], strides = [1, 1]} : vector<24x256xf32> to vector<24x128xf32>
    %285 = vector.extract_strided_slice %283 {offsets = [0, 128], sizes = [24, 128], strides = [1, 1]} : vector<24x256xf32> to vector<24x128xf32>
    %286 = vector.extract_strided_slice %272 {offsets = [0, 256], sizes = [24, 128], strides = [1, 1]} : vector<24x384xf32> to vector<24x128xf32>
    %287 = vector.broadcast %7 : vector<1x128xf32> to vector<24x128xf32>
    %288 = arith.addf %286, %287 : vector<24x128xf32>
    %289 = vector.extract_strided_slice %273 {offsets = [0, 256], sizes = [24, 128], strides = [1, 1]} : vector<24x384xf32> to vector<24x128xf32>
    %290 = vector.broadcast %9 : vector<1x128xf32> to vector<24x128xf32>
    %291 = arith.addf %289, %290 : vector<24x128xf32>
    %292 = arith.mulf %284, %291 : vector<24x128xf32>
    %293 = arith.addf %288, %292 : vector<24x128xf32>
    %294 = math.tanh %293 : vector<24x128xf32>
    %cst_61 = arith.constant 1.000000e+00 : f32
    %295 = vector.broadcast %cst_61 : f32 to vector<24x128xf32>
    %296 = arith.subf %295, %285 : vector<24x128xf32>
    %297 = arith.mulf %296, %294 : vector<24x128xf32>
    %298 = arith.mulf %285, %268 : vector<24x128xf32>
    %299 = arith.addf %297, %298 : vector<24x128xf32>
    %300 = vector.broadcast %c7_i32 : i32 to vector<24x1xi32>
    %301 = arith.cmpi sgt, %1, %300 : vector<24x1xi32>
    %302 = vector.shape_cast %301 : vector<24x1xi1> to vector<24x1xi1>
    %303 = vector.broadcast %302 : vector<24x1xi1> to vector<24x128xi1>
    %304 = arith.select %303, %299, %268 : vector<24x128xi1>, vector<24x128xf32>
    %c8_i32 = arith.constant 8 : i32
    %305 = vector.extract_strided_slice %304 {offsets = [0, 0], sizes = [24, 32], strides = [1, 1]} : vector<24x128xf32> to vector<24x32xf32>
    %c0_62 = arith.constant 0 : index
    %c0_63 = arith.constant 0 : index
    %c0_64 = arith.constant 0 : index
    %306 = vector.load %arg8[%c0_62, %c0_63, %c0_64] : memref<1x24x32xf32, #tpu.memory_space<vmem>>, vector<1x24x32xf32>
    %307 = vector.shape_cast %306 : vector<1x24x32xf32> to vector<24x32xf32>
    %308 = vector.shape_cast %305 : vector<24x32xf32> to vector<1x24x32xf32>
    tpu.vector_store %arg8[%c0_62, %c0_63, %c0_64], %308 {strides = array<i32>} : memref<1x24x32xf32, #tpu.memory_space<vmem>>, vector<1x24x32xf32>,
    return
  }
  func.func @transform_0(%arg0: i32) -> (i32, i32, i32) {
    %c0_i32 = arith.constant 0 : i32
    %c0_i32_0 = arith.constant 0 : i32
    %c0_i32_1 = arith.constant 0 : i32
    return %arg0, %c0_i32, %c0_i32_0 : i32, i32, i32
  }
  func.func @transform_1(%arg0: i32) -> (i32, i32, i32) {
    %c0_i32 = arith.constant 0 : i32
    %c0_i32_0 = arith.constant 0 : i32
    %c0_i32_1 = arith.constant 0 : i32
    return %arg0, %c0_i32, %c0_i32_0 : i32, i32, i32
  }
  func.func @transform_2(%arg0: i32) -> (i32, i32, i32) {
    %c0_i32 = arith.constant 0 : i32
    %c0_i32_0 = arith.constant 0 : i32
    %c0_i32_1 = arith.constant 0 : i32
    return %arg0, %c0_i32, %c0_i32_0 : i32, i32, i32
  }
  func.func @transform_3(%arg0: i32) -> (i32, i32, i32) {
    %c0_i32 = arith.constant 0 : i32
    %c0_i32_0 = arith.constant 0 : i32
    %c0_i32_1 = arith.constant 0 : i32
    return %arg0, %c0_i32, %c0_i32_0 : i32, i32, i32
  }
  func.func @transform_4(%arg0: i32) -> (i32, i32, i32) {
    %c0_i32 = arith.constant 0 : i32
    %c0_i32_0 = arith.constant 0 : i32
    %c0_i32_1 = arith.constant 0 : i32
    return %arg0, %c0_i32, %c0_i32_0 : i32, i32, i32
  }
  func.func @transform_5(%arg0: i32) -> (i32, i32, i32) {
    %c0_i32 = arith.constant 0 : i32
    %c0_i32_0 = arith.constant 0 : i32
    %c0_i32_1 = arith.constant 0 : i32
    return %arg0, %c0_i32, %c0_i32_0 : i32, i32, i32
  }
  func.func @transform_6(%arg0: i32) -> (i32, i32, i32) {
    %c0_i32 = arith.constant 0 : i32
    %c0_i32_0 = arith.constant 0 : i32
    %c0_i32_1 = arith.constant 0 : i32
    return %arg0, %c0_i32, %c0_i32_0 : i32, i32, i32
  }
  func.func @transform_7(%arg0: i32) -> (i32, i32, i32) {
    %c0_i32 = arith.constant 0 : i32
    %c0_i32_0 = arith.constant 0 : i32
    %c0_i32_1 = arith.constant 0 : i32
    return %arg0, %c0_i32, %c0_i32_0 : i32, i32, i32
  }
}

module attributes {stable_mosaic.version = 11 : i64} {
  func.func @score_kernel(%arg0: i32, %arg1: memref<1x4096xf32, #tpu.memory_space<vmem>>, %arg2: memref<4096x32xf32, #tpu.memory_space<vmem>>, %arg3: memref<10x32xf32, #tpu.memory_space<vmem>>, %arg4: memref<32x32xf32, #tpu.memory_space<vmem>>, %arg5: memref<10x2x32xf32, #tpu.memory_space<vmem>>, %arg6: memref<1x1xf32, #tpu.memory_space<smem>>, %arg7: memref<10x2xf32, #tpu.memory_space<vmem>>) attributes {dimension_semantics = [#tpu.dimension_semantics<arbitrary>], iteration_bounds = array<i64: 1>, scalar_prefetch = 0 : i64, scratch_operands = 0 : i64, tpu.core_type = #tpu.core_type<tc>, window_params = [{pipeline_mode = #tpu.pipeline_mode<synchronous>, transform_indices = @transform_0, window_bounds = array<i64: 1, 4096>}, {pipeline_mode = #tpu.pipeline_mode<synchronous>, transform_indices = @transform_1, window_bounds = array<i64: 4096, 32>}, {pipeline_mode = #tpu.pipeline_mode<synchronous>, transform_indices = @transform_2, window_bounds = array<i64: 10, 32>}, {pipeline_mode = #tpu.pipeline_mode<synchronous>, transform_indices = @transform_3, window_bounds = array<i64: 32, 32>}, {pipeline_mode = #tpu.pipeline_mode<synchronous>, transform_indices = @transform_4, window_bounds = array<i64: 10, 2, 32>}, {transform_indices = @transform_5, window_bounds = array<i64: 1, 1>}, {pipeline_mode = #tpu.pipeline_mode<synchronous>, transform_indices = @transform_6, window_bounds = array<i64: 10, 2>}]} {
    %c0 = arith.constant 0 : index
    %c0_0 = arith.constant 0 : index
    %0 = vector.load %arg1[%c0, %c0_0] : memref<1x4096xf32, #tpu.memory_space<vmem>>, vector<1x4096xf32>
    %c0_1 = arith.constant 0 : index
    %c0_2 = arith.constant 0 : index
    %1 = vector.load %arg2[%c0_1, %c0_2] : memref<4096x32xf32, #tpu.memory_space<vmem>>, vector<4096x32xf32>
    %cst = arith.constant dense<0.000000e+00> : vector<1x32xf32>
    %2 = tpu.matmul %0, %1, %cst {dimension_numbers = #tpu.dot_dimension_numbers<[1], [0], [0], [1], [0, 0, 1, 1], [], []>} : vector<1x4096xf32>, vector<4096x32xf32>, vector<1x32xf32> -> vector<1x32xf32>
    %c0_3 = arith.constant 0 : index
    %c0_4 = arith.constant 0 : index
    %3 = vector.load %arg3[%c0_3, %c0_4] : memref<10x32xf32, #tpu.memory_space<vmem>>, vector<10x32xf32>
    %c0_5 = arith.constant 0 : index
    %c0_6 = arith.constant 0 : index
    %4 = vector.load %arg4[%c0_5, %c0_6] : memref<32x32xf32, #tpu.memory_space<vmem>>, vector<32x32xf32>
    %cst_7 = arith.constant dense<0.000000e+00> : vector<10x32xf32>
    %5 = tpu.matmul %3, %4, %cst_7 {dimension_numbers = #tpu.dot_dimension_numbers<[1], [0], [0], [1], [0, 0, 1, 1], [], []>} : vector<10x32xf32>, vector<32x32xf32>, vector<10x32xf32> -> vector<10x32xf32>
    %6 = vector.shape_cast %2 : vector<1x32xf32> to vector<1x1x32xf32>
    %7 = vector.shape_cast %6 : vector<1x1x32xf32> to vector<1x1x32xf32>
    %8 = vector.broadcast %7 : vector<1x1x32xf32> to vector<1x10x32xf32>
    %9 = vector.shape_cast %8 : vector<1x10x32xf32> to vector<10x32xf32>
    %10 = arith.addf %9, %5 : vector<10x32xf32>
    %11 = vector.shape_cast %10 : vector<10x32xf32> to vector<10x1x32xf32>
    %c0_8 = arith.constant 0 : index
    %c0_9 = arith.constant 0 : index
    %c0_10 = arith.constant 0 : index
    %12 = vector.load %arg5[%c0_8, %c0_9, %c0_10] : memref<10x2x32xf32, #tpu.memory_space<vmem>>, vector<10x2x32xf32>
    %13 = vector.broadcast %11 : vector<10x1x32xf32> to vector<10x2x32xf32>
    %14 = arith.mulf %13, %12 : vector<10x2x32xf32>
    %cst_11 = arith.constant dense<0.000000e+00> : vector<10x2xf32>
    %15 = vector.multi_reduction <add>, %14, %cst_11 [2] : vector<10x2x32xf32> to vector<10x2xf32>
    %c0_12 = arith.constant 0 : index
    %c0_13 = arith.constant 0 : index
    %16 = memref.load %arg6[%c0_12, %c0_13] : memref<1x1xf32, #tpu.memory_space<smem>>
    %17 = vector.broadcast %16 : f32 to vector<10x2xf32>
    %18 = arith.addf %15, %17 : vector<10x2xf32>
    %c0_14 = arith.constant 0 : index
    %c0_15 = arith.constant 0 : index
    %19 = vector.load %arg7[%c0_14, %c0_15] : memref<10x2xf32, #tpu.memory_space<vmem>>, vector<10x2xf32>
    tpu.vector_store %arg7[%c0_14, %c0_15], %18 {strides = array<i32>} : memref<10x2xf32, #tpu.memory_space<vmem>>, vector<10x2xf32>,
    return
  }
  func.func @transform_0(%arg0: i32) -> (i32, i32) {
    %c0_i32 = arith.constant 0 : i32
    %c0_i32_0 = arith.constant 0 : i32
    %c0_i32_1 = arith.constant 0 : i32
    return %c0_i32, %c0_i32_0 : i32, i32
  }
  func.func @transform_1(%arg0: i32) -> (i32, i32) {
    %c0_i32 = arith.constant 0 : i32
    %c0_i32_0 = arith.constant 0 : i32
    %c0_i32_1 = arith.constant 0 : i32
    return %c0_i32, %c0_i32_0 : i32, i32
  }
  func.func @transform_2(%arg0: i32) -> (i32, i32) {
    %c0_i32 = arith.constant 0 : i32
    %c0_i32_0 = arith.constant 0 : i32
    %c0_i32_1 = arith.constant 0 : i32
    return %c0_i32, %c0_i32_0 : i32, i32
  }
  func.func @transform_3(%arg0: i32) -> (i32, i32) {
    %c0_i32 = arith.constant 0 : i32
    %c0_i32_0 = arith.constant 0 : i32
    %c0_i32_1 = arith.constant 0 : i32
    return %c0_i32, %c0_i32_0 : i32, i32
  }
  func.func @transform_4(%arg0: i32) -> (i32, i32, i32) {
    %c0_i32 = arith.constant 0 : i32
    %c0_i32_0 = arith.constant 0 : i32
    %c0_i32_1 = arith.constant 0 : i32
    %c0_i32_2 = arith.constant 0 : i32
    return %c0_i32, %c0_i32_0, %c0_i32_1 : i32, i32, i32
  }
  func.func @transform_5(%arg0: i32) -> (i32, i32) {
    %c0_i32 = arith.constant 0 : i32
    %c0_i32_0 = arith.constant 0 : i32
    %c0_i32_1 = arith.constant 0 : i32
    return %c0_i32, %c0_i32_0 : i32, i32
  }
  func.func @transform_6(%arg0: i32) -> (i32, i32) {
    %c0_i32 = arith.constant 0 : i32
    %c0_i32_0 = arith.constant 0 : i32
    %c0_i32_1 = arith.constant 0 : i32
    return %c0_i32, %c0_i32_0 : i32, i32
  }
}

</mosaic_0001>

<bundles_post_ra>
// kernel: squeeze.3
= control target key start
LH: loop header
LB: loop body
LE: loop exit
PB: predicated region body
PF: predicated region fallthrough
CT: control target
= control target key end

     0   :  { %vm3_vm0 = vcmask 261120   ;;  %s156_s0 = inlined_call_operand.vmem [shape: f32[1,20,32], index: 0, kind: input, shape index: {}]   ;;  %s157_s1 = inlined_call_operand.vmem [shape: f32[10,2,32], index: 1, kind: output, shape index: {}]  }
   0x1   :  { %v2_v0 = vld [vmem:[%s156_s0] sm:$0xff]   ;;  %v96_v1 = vld [vmem:[%s156_s0 + $0x8] sm:$0xff]   ;;  %v97_v2 = vld [vmem:[%s156_s0 + $0x10] sm:$0xf]  }
   0x2   :  { %4 = vst.msk [vmem:[#allocation0] sm:$0x3] %vm3_vm0, %v2_v0   ;;  %6 = vst.msk [vmem:[#allocation0 + $0x6] sm:$0xc] %vm3_vm0, %v2_v0  }
   0x3   :  { %8 = vst.msk [vmem:[#allocation0 + $0xc] sm:$0x30] %vm3_vm0, %v2_v0   ;;  %10 = vst.msk [vmem:[#allocation0 + $0x12] sm:$0xc0] %vm3_vm0, %v2_v0  }
   0x4   :  { %15 = vst.msk [vmem:[#allocation0 + $0x20] sm:$0x3] %vm3_vm0, %v96_v1   ;;  %17 = vst.msk [vmem:[#allocation0 + $0x26] sm:$0xc] %vm3_vm0, %v96_v1  }
   0x5   :  { %19 = vst.msk [vmem:[#allocation0 + $0x2c] sm:$0x30] %vm3_vm0, %v96_v1   ;;  %21 = vst.msk [vmem:[#allocation0 + $0x32] sm:$0xc0] %vm3_vm0, %v96_v1  }
   0x6   :  { %26 = vst.msk [vmem:[#allocation0 + $0x40] sm:$0x3] %vm3_vm0, %v97_v2   ;;  %28 = vst.msk [vmem:[#allocation0 + $0x46] sm:$0xc] %vm3_vm0, %v97_v2  }
   0x9   :  { %v32_v3 = vld [vmem:[#allocation0] sm:$0x3]  ;;  %v36_v4 = vld [vmem:[#allocation0 + $0x8] sm:$0x3] }
   0xa   :  { %v41_v5 = vld [vmem:[#allocation0 + $0x10] sm:$0x3]  ;;  %34 = vst [vmem:[%s157_s1] sm:$0x3] %v32_v3  ;;  %98 = vst [vmem:[%s157_s1 + $0x2] sm:$0x3] %v36_v4 }
   0xb   :  { %99 = vst [vmem:[%s157_s1 + $0x4] sm:$0x3] %v41_v5  ;;  %v47_v6 = vld [vmem:[#allocation0 + $0x18] sm:$0x3]  ;;  %v53_v7 = vld [vmem:[#allocation0 + $0x20] sm:$0x3] }
   0xc   :  { %v59_v8 = vld [vmem:[#allocation0 + $0x28] sm:$0x3]  ;;  %100 = vst [vmem:[%s157_s1 + $0x6] sm:$0x3] %v47_v6  ;;  %101 = vst [vmem:[%s157_s1 + $0x8] sm:$0x3] %v53_v7 }
   0xd   :  { %102 = vst [vmem:[%s157_s1 + $0xa] sm:$0x3] %v59_v8  ;;  %v65_v9 = vld [vmem:[#allocation0 + $0x30] sm:$0x3]  ;;  %v71_v10 = vld [vmem:[#allocation0 + $0x38] sm:$0x3] }
   0xe   :  { %v77_v11 = vld [vmem:[#allocation0 + $0x40] sm:$0x3]  ;;  %103 = vst [vmem:[%s157_s1 + $0xc] sm:$0x3] %v65_v9  ;;  %104 = vst [vmem:[%s157_s1 + $0xe] sm:$0x3] %v71_v10 }
   0xf   :  { %105 = vst [vmem:[%s157_s1 + $0x10] sm:$0x3] %v77_v11  ;;  %v83_v12 = vld [vmem:[#allocation0 + $0x48] sm:$0x3] }
  0x10   :  { %106 = vst [vmem:[%s157_s1 + $0x12] sm:$0x3] %v83_v12 }

// kernel: baseline_forward.3
= control target key start
LH: loop header
LB: loop body
LE: loop exit
PB: predicated region body
PF: predicated region fallthrough
CT: control target
= control target key end

     0   :  { %v544_v47 = vlaneseq  ;;  %vm1830_vm0 = vcmask 261120   ;;  %vm2061_vm1 = vcmask 254976   ;;  %vm2156_vm2 = vcmask 1041409   ;;  %s5047_s1 = inlined_call_operand.vmem [shape: f32[4096,32], index: 1, kind: input, shape index: {}]   ;;  %s5048_s0 = inlined_call_operand.vmem [shape: f32[1,4096], index: 0, kind: input, shape index: {}]   ;;  %s5049_s3 = inlined_call_operand.vmem [shape: f32[32,32], index: 3, kind: input, shape index: {}]   ;;  %s5050_s2 = inlined_call_operand.vmem [shape: f32[10,32], index: 2, kind: input, shape index: {}]   ;;  %s5051_s4 = inlined_call_operand.vmem [shape: f32[10,2,32], index: 4, kind: input, shape index: {}]   ;;  %s5052_s5 = inlined_call_operand.<no memory space> [shape: f32[1,1], index: 5, kind: input, shape index: {}]   ;;  %s5053_s6 = inlined_call_operand.vmem [shape: f32[10,2], index: 6, kind: output, shape index: {}]  }
   0x1   :  { %v44_v0 = vld [vmem:[%s5047_s1 + $0x80] sm:$0xff]  ;;  %v45_v1 = vld [vmem:[%s5047_s1 + $0x88] sm:$0xff]  ;;  %v46_v11 = vld [vmem:[%s5047_s1 + $0x90] sm:$0xff]  ;;  %vm2158_vm3 = vcmask 1042434   ;;  %vm2160_vm4 = vcmask 1043459   ;;  %vm2162_vm5 = vcmask 1044484  }
   0x2   :  { %v76_v2 = vld [vmem:[%s5047_s1 + $0x180] sm:$0xff]  ;;  %v2760_v3 = vpack.c.bf16 %v45_v1, %v44_v0  ;;  %v77_v4 = vld [vmem:[%s5047_s1 + $0x188] sm:$0xff]  ;;  %v47_v13 = vld [vmem:[%s5047_s1 + $0x98] sm:$0xff]  ;;  %v3444_v61 = vshrl.u32 %v544_v47, 7  ;;  %vm2164_vm6 = vcmask 1045509   ;;  %vm2166_vm7 = vcmask 1046534  }
   0x3   :  { %v28_v5 = vld [vmem:[%s5047_s1] sm:$0xff]  ;;  %v29_v6 = vld [vmem:[%s5047_s1 + $0x8] sm:$0xff]  ;;  %v2792_v7 = vpack.c.bf16 %v77_v4, %v76_v2  ;;  %v78_v14 = vld [vmem:[%s5047_s1 + $0x190] sm:$0xff]  ;;  %v2764_v16 = vpack.c.bf16 %v47_v13, %v46_v11  ;;  %vm2168_vm8 = vcmask 1047559   ;;  %vm2173_vm9 = vcmask 15360  }
   0x4   :  { %v2762_v8 = vpack.c.bf16 %v29_v6, %v28_v5  ;;  %v60_v9 = vld [vmem:[%s5047_s1 + $0x100] sm:$0xff]  ;;  %v61_v10 = vld [vmem:[%s5047_s1 + $0x108] sm:$0xff]  ;;  %2761 = vmatprep.subr.bf16.mxu0 %v2760_v3  ;;  %v79_v15 = vld [vmem:[%s5047_s1 + $0x198] sm:$0xff]  ;;  %v3474_v11 = vsub.s32 3, %v3444_v61  ;;  %vm2175_vm10 = vcmask 9216  }
   0x5   :  { %v2794_v12 = vpack.c.bf16 %v61_v10, %v60_v9  ;;  %2793 = vmatprep.subr.bf16.mxu1 %v2792_v7  ;;  %v2796_v17 = vpack.c.bf16 %v79_v15, %v78_v14  ;;  %v30_v18 = vld [vmem:[%s5047_s1 + $0x10] sm:$0xff]  ;;  %v31_v19 = vld [vmem:[%s5047_s1 + $0x18] sm:$0xff]  ;;  %v48_v23 = vld [vmem:[%s5047_s1 + $0xa0] sm:$0xff]  ;;  %v3471_v10 = vsub.s32 1, %v3444_v61 }
   0x6   :  { %2763 = vmatpush3.bf16.msra.mxu0 %v2762_v8  ;;  %v62_v20 = vld [vmem:[%s5047_s1 + $0x110] sm:$0xff]  ;;  %v2766_v21 = vpack.c.bf16 %v31_v19, %v30_v18  ;;  %v63_v22 = vld [vmem:[%s5047_s1 + $0x118] sm:$0xff]  ;;  %v49_v24 = vld [vmem:[%s5047_s1 + $0xa8] sm:$0xff] }
   0x7   :  { %2795 = vmatpush3.bf16.msra.mxu1 %v2794_v12  ;;  %2765 = vmatprep.subr.bf16.mxu0 %v2764_v16  ;;  %v2798_v25 = vpack.c.bf16 %v63_v22, %v62_v20  ;;  %v2768_v26 = vpack.c.bf16 %v49_v24, %v48_v23  ;;  %v80_v27 = vld [vmem:[%s5047_s1 + $0x1a0] sm:$0xff]  ;;  %v81_v28 = vld [vmem:[%s5047_s1 + $0x1a8] sm:$0xff]  ;;  %v50_v35 = vld [vmem:[%s5047_s1 + $0xb0] sm:$0xff] }
   0x8   :  { %2797 = vmatprep.subr.bf16.mxu1 %v2796_v17  ;;  %v32_v29 = vld [vmem:[%s5047_s1 + $0x20] sm:$0xff]  ;;  %v2800_v30 = vpack.c.bf16 %v81_v28, %v80_v27  ;;  %v33_v31 = vld [vmem:[%s5047_s1 + $0x28] sm:$0xff]  ;;  %v51_v36 = vld [vmem:[%s5047_s1 + $0xb8] sm:$0xff] }
   0x9   :  { %v64_v32 = vld [vmem:[%s5047_s1 + $0x120] sm:$0xff]  ;;  %v65_v33 = vld [vmem:[%s5047_s1 + $0x128] sm:$0xff]  ;;  %v2770_v34 = vpack.c.bf16 %v33_v31, %v32_v29  ;;  %v82_v37 = vld [vmem:[%s5047_s1 + $0x1b0] sm:$0xff]  ;;  %v2772_v39 = vpack.c.bf16 %v51_v36, %v50_v35 }
   0xa   :  { %2767 = vmatpush3.bf16.msra.mxu0 %v2766_v21  ;;  %v2802_v38 = vpack.c.bf16 %v65_v33, %v64_v32  ;;  %v83_v40 = vld [vmem:[%s5047_s1 + $0x1b8] sm:$0xff]  ;;  %v34_v41 = vld [vmem:[%s5047_s1 + $0x30] sm:$0xff]  ;;  %v52_v46 = vld [vmem:[%s5047_s1 + $0xc0] sm:$0xff] }
   0xb   :  { %2799 = vmatpush3.bf16.msra.mxu1 %v2798_v25  ;;  %2769 = vmatprep.subr.bf16.mxu0 %v2768_v26  ;;  %v35_v42 = vld [vmem:[%s5047_s1 + $0x38] sm:$0xff]  ;;  %v2804_v43 = vpack.c.bf16 %v83_v40, %v82_v37  ;;  %v66_v44 = vld [vmem:[%s5047_s1 + $0x130] sm:$0xff]  ;;  %v53_v48 = vld [vmem:[%s5047_s1 + $0xc8] sm:$0xff] }
   0xc   :  { %2801 = vmatprep.subr.bf16.mxu1 %v2800_v30  ;;  %v67_v45 = vld [vmem:[%s5047_s1 + $0x138] sm:$0xff]  ;;  %v84_v49 = vld [vmem:[%s5047_s1 + $0x1c0] sm:$0xff]  ;;  %v85_v50 = vld [vmem:[%s5047_s1 + $0x1c8] sm:$0xff]  ;;  %v2774_v51 = vpack.c.bf16 %v35_v42, %v34_v41  ;;  %v2776_v53 = vpack.c.bf16 %v53_v48, %v52_v46 }
   0xd   :  { %v2806_v52 = vpack.c.bf16 %v67_v45, %v66_v44  ;;  %v36_v54 = vld [vmem:[%s5047_s1 + $0x40] sm:$0xff]  ;;  %v37_v55 = vld [vmem:[%s5047_s1 + $0x48] sm:$0xff]  ;;  %v2808_v57 = vpack.c.bf16 %v85_v50, %v84_v49  ;;  %v54_v59 = vld [vmem:[%s5047_s1 + $0xd0] sm:$0xff] }
   0xe   :  { %2771 = vmatpush3.bf16.msra.mxu0 %v2770_v34  ;;  %v68_v56 = vld [vmem:[%s5047_s1 + $0x140] sm:$0xff]  ;;  %v69_v58 = vld [vmem:[%s5047_s1 + $0x148] sm:$0xff]  ;;  %v55_v60 = vld [vmem:[%s5047_s1 + $0xd8] sm:$0xff]  ;;  %v2778_v0 = vpack.c.bf16 %v37_v55, %v36_v54  ;;  %v3564_v54 = vsub.s32 5, %v3444_v61 }
   0xf   :  { %2803 = vmatpush3.bf16.msra.mxu1 %v2802_v38  ;;  %2773 = vmatprep.subr.bf16.mxu0 %v2772_v39  ;;  %v86_v62 = vld [vmem:[%s5047_s1 + $0x1d0] sm:$0xff]  ;;  %v87_v63 = vld [vmem:[%s5047_s1 + $0x1d8] sm:$0xff]  ;;  %v2810_v1 = vpack.c.bf16 %v69_v58, %v68_v56  ;;  %v2780_v2 = vpack.c.bf16 %v55_v60, %v54_v59  ;;  %v56_v8 = vld [vmem:[%s5047_s1 + $0xe0] sm:$0xff]  ;;  %v3534_v39 = vsub.s32 0, %v3444_v61  ;;  %v3575_v58 = vsub.s32 7, %v3444_v61 }
  0x10   :  { %2805 = vmatprep.subr.bf16.mxu1 %v2804_v43  ;;  %v38_v3 = vld [vmem:[%s5047_s1 + $0x50] sm:$0xff]  ;;  %v39_v4 = vld [vmem:[%s5047_s1 + $0x58] sm:$0xff]  ;;  %v2812_v6 = vpack.c.bf16 %v87_v63, %v86_v62  ;;  %v57_v9 = vld [vmem:[%s5047_s1 + $0xe8] sm:$0xff]  ;;  %v3543_v43 = vsub.s32 2, %v3444_v61 }
  0x11   :  { %v70_v5 = vld [vmem:[%s5047_s1 + $0x150] sm:$0xff]  ;;  %v71_v7 = vld [vmem:[%s5047_s1 + $0x158] sm:$0xff]  ;;  %v88_v12 = vld [vmem:[%s5047_s1 + $0x1e0] sm:$0xff]  ;;  %v2782_v14 = vpack.c.bf16 %v39_v4, %v38_v3  ;;  %v2784_v17 = vpack.c.bf16 %v57_v9, %v56_v8 }
  0x12   :  { %2775 = vmatpush3.bf16.msra.mxu0 %v2774_v51  ;;  %v89_v13 = vld [vmem:[%s5047_s1 + $0x1e8] sm:$0xff]  ;;  %v40_v15 = vld [vmem:[%s5047_s1 + $0x60] sm:$0xff]  ;;  %v2814_v16 = vpack.c.bf16 %v71_v7, %v70_v5  ;;  %v58_v23 = vld [vmem:[%s5047_s1 + $0xf0] sm:$0xff] }
  0x13   :  { %2807 = vmatpush3.bf16.msra.mxu1 %v2806_v52  ;;  %2777 = vmatprep.subr.bf16.mxu0 %v2776_v53  ;;  %v41_v18 = vld [vmem:[%s5047_s1 + $0x68] sm:$0xff]  ;;  %v72_v19 = vld [vmem:[%s5047_s1 + $0x160] sm:$0xff]  ;;  %v2816_v21 = vpack.c.bf16 %v89_v13, %v88_v12  ;;  %v59_v24 = vld [vmem:[%s5047_s1 + $0xf8] sm:$0xff] }
  0x14   :  { %2809 = vmatprep.subr.bf16.mxu1 %v2808_v57  ;;  %v3494_v20 = vld [vmem:[%s5048_s0] sm:$0xff]  ;;  %v73_v22 = vld [vmem:[%s5047_s1 + $0x168] sm:$0xff]  ;;  %v90_v27 = vld [vmem:[%s5047_s1 + $0x1f0] sm:$0xff]  ;;  %v2786_v29 = vpack.c.bf16 %v41_v18, %v40_v15  ;;  %v2788_v31 = vpack.c.bf16 %v59_v24, %v58_v23 }
  0x15   :  { %v551_v25 = vrot.slane %v3494_v20, %v3471_v10  ;;  %v559_v26 = vrot.slane %v3494_v20, %v3474_v11  ;;  %v91_v28 = vld [vmem:[%s5047_s1 + $0x1f8] sm:$0xff]  ;;  %v2818_v30 = vpack.c.bf16 %v73_v22, %v72_v19  ;;  %v42_v32 = vld [vmem:[%s5047_s1 + $0x70] sm:$0xff]  ;;  %v108_v37 = vld [vmem:[%s5047_s1 + $0x280] sm:$0xff]  ;;  %v547_v55 = vrot.slane %v3494_v20, %v3534_v39 }
  0x16   :  { %2779 = vmatpush3.bf16.msra.mxu0 %v2778_v0  ;;  %v43_v33 = vld [vmem:[%s5047_s1 + $0x78] sm:$0xff]  ;;  %v74_v34 = vld [vmem:[%s5047_s1 + $0x170] sm:$0xff]  ;;  %v2820_v35 = vpack.c.bf16 %v91_v28, %v90_v27  ;;  %v109_v38 = vld [vmem:[%s5047_s1 + $0x288] sm:$0xff]  ;;  %v555_v59 = vrot.slane %v3494_v20, %v3543_v43  ;;  %v567_v7 = vrot.slane %v3494_v20, %v3564_v54  ;;  %v575_v12 = vrot.slane %v3494_v20, %v3575_v58 }
  0x17   :  { %2811 = vmatpush3.bf16.msra.mxu1 %v2810_v1  ;;  %2781 = vmatprep.subr.bf16.mxu0 %v2780_v2  ;;  %v75_v36 = vld [vmem:[%s5047_s1 + $0x178] sm:$0xff]  ;;  %v140_v40 = vld [vmem:[%s5047_s1 + $0x380] sm:$0xff]  ;;  %v141_v41 = vld [vmem:[%s5047_s1 + $0x388] sm:$0xff]  ;;  %v2790_v42 = vpack.c.bf16 %v43_v33, %v42_v32  ;;  %v2824_v45 = vpack.c.bf16 %v109_v38, %v108_v37 }
  0x18   :  { %2813 = vmatprep.subr.bf16.mxu1 %v2812_v6  ;;  %768 = vmatprep.mubr.f32.mxu0 %v551_v25  ;;  %v2822_v44 = vpack.c.bf16 %v75_v36, %v74_v34  ;;  %v92_v46 = vld [vmem:[%s5047_s1 + $0x200] sm:$0xff]  ;;  %v93_v48 = vld [vmem:[%s5047_s1 + $0x208] sm:$0xff]  ;;  %v2856_v50 = vpack.c.bf16 %v141_v41, %v140_v40  ;;  %v110_v52 = vld [vmem:[%s5047_s1 + $0x290] sm:$0xff] }
  0x19   :  { %838 = vmatprep.mubr.f32.mxu1 %v559_v26  ;;  %v124_v49 = vld [vmem:[%s5047_s1 + $0x300] sm:$0xff]  ;;  %v125_v51 = vld [vmem:[%s5047_s1 + $0x308] sm:$0xff]  ;;  %v111_v53 = vld [vmem:[%s5047_s1 + $0x298] sm:$0xff]  ;;  %v2826_v60 = vpack.c.bf16 %v93_v48, %v92_v46 }
  0x1a   :  { %2783 = vmatpush3.bf16.msra.mxu0 %v2782_v14  ;;  %v142_v56 = vld [vmem:[%s5047_s1 + $0x390] sm:$0xff]  ;;  %v143_v57 = vld [vmem:[%s5047_s1 + $0x398] sm:$0xff]  ;;  %v2858_v62 = vpack.c.bf16 %v125_v51, %v124_v49  ;;  %v2828_v63 = vpack.c.bf16 %v111_v53, %v110_v52  ;;  %v112_v5 = vld [vmem:[%s5047_s1 + $0x2a0] sm:$0xff] }
  0x1b   :  { %2815 = vmatpush3.bf16.msra.mxu1 %v2814_v16  ;;  %2785 = vmatprep.subr.bf16.mxu0 %v2784_v17  ;;  %v94_v0 = vld [vmem:[%s5047_s1 + $0x210] sm:$0xff]  ;;  %v95_v1 = vld [vmem:[%s5047_s1 + $0x218] sm:$0xff]  ;;  %v2860_v3 = vpack.c.bf16 %v143_v57, %v142_v56  ;;  %v113_v6 = vld [vmem:[%s5047_s1 + $0x2a8] sm:$0xff] }
  0x1c   :  { %2817 = vmatprep.subr.bf16.mxu1 %v2816_v21  ;;  %v126_v2 = vld [vmem:[%s5047_s1 + $0x310] sm:$0xff]  ;;  %v127_v4 = vld [vmem:[%s5047_s1 + $0x318] sm:$0xff]  ;;  %v144_v8 = vld [vmem:[%s5047_s1 + $0x3a0] sm:$0xff]  ;;  %v2830_v13 = vpack.c.bf16 %v95_v1, %v94_v0  ;;  %v2832_v15 = vpack.c.bf16 %v113_v6, %v112_v5 }
  0x1d   :  { %v145_v9 = vld [vmem:[%s5047_s1 + $0x3a8] sm:$0xff]  ;;  %v2862_v14 = vpack.c.bf16 %v127_v4, %v126_v2  ;;  %v96_v16 = vld [vmem:[%s5047_s1 + $0x220] sm:$0xff]  ;;  %v114_v22 = vld [vmem:[%s5047_s1 + $0x2b0] sm:$0xff] }
  0x1e   :  { %2787 = vmatpush3.bf16.msra.mxu0 %v2786_v29  ;;  %v97_v17 = vld [vmem:[%s5047_s1 + $0x228] sm:$0xff]  ;;  %v128_v18 = vld [vmem:[%s5047_s1 + $0x320] sm:$0xff]  ;;  %v2864_v19 = vpack.c.bf16 %v145_v9, %v144_v8  ;;  %v115_v23 = vld [vmem:[%s5047_s1 + $0x2b8] sm:$0xff] }
  0x1f   :  { %2819 = vmatpush3.bf16.msra.mxu1 %v2818_v30  ;;  %2789 = vmatprep.subr.bf16.mxu0 %v2788_v31  ;;  %v129_v21 = vld [vmem:[%s5047_s1 + $0x328] sm:$0xff]  ;;  %v146_v24 = vld [vmem:[%s5047_s1 + $0x3b0] sm:$0xff]  ;;  %v147_v25 = vld [vmem:[%s5047_s1 + $0x3b8] sm:$0xff]  ;;  %v2834_v26 = vpack.c.bf16 %v97_v17, %v96_v16  ;;  %v2836_v28 = vpack.c.bf16 %v115_v23, %v114_v22 }
  0x20   :  { %2821 = vmatprep.subr.bf16.mxu1 %v2820_v35  ;;  %v2866_v27 = vpack.c.bf16 %v129_v21, %v128_v18  ;;  %v98_v29 = vld [vmem:[%s5047_s1 + $0x230] sm:$0xff]  ;;  %v99_v30 = vld [vmem:[%s5047_s1 + $0x238] sm:$0xff]  ;;  %v2868_v32 = vpack.c.bf16 %v147_v25, %v146_v24  ;;  %v116_v34 = vld [vmem:[%s5047_s1 + $0x2c0] sm:$0xff] }
  0x21   :  { %v130_v31 = vld [vmem:[%s5047_s1 + $0x330] sm:$0xff]  ;;  %v131_v33 = vld [vmem:[%s5047_s1 + $0x338] sm:$0xff]  ;;  %v117_v35 = vld [vmem:[%s5047_s1 + $0x2c8] sm:$0xff]  ;;  %v2838_v38 = vpack.c.bf16 %v99_v30, %v98_v29  ;;  %v3746_v29 = vsub.s32 4, %v3444_v61 }
  0x22   :  { %2791 = vmatpush3.bf16.msra.mxu0 %v2790_v42  ;;  %v148_v36 = vld [vmem:[%s5047_s1 + $0x3c0] sm:$0xff]  ;;  %v149_v37 = vld [vmem:[%s5047_s1 + $0x3c8] sm:$0xff]  ;;  %v2870_v40 = vpack.c.bf16 %v131_v33, %v130_v31  ;;  %v2840_v41 = vpack.c.bf16 %v117_v35, %v116_v34  ;;  %v118_v49 = vld [vmem:[%s5047_s1 + $0x2d0] sm:$0xff]  ;;  %v3755_v33 = vsub.s32 6, %v3444_v61 }
  0x23   :  { %2823 = vmatpush3.bf16.msra.mxu1 %v2822_v44  ;;  %2825 = vmatprep.subr.bf16.mxu0 %v2824_v45  ;;  %v100_v42 = vld [vmem:[%s5047_s1 + $0x240] sm:$0xff]  ;;  %v101_v44 = vld [vmem:[%s5047_s1 + $0x248] sm:$0xff]  ;;  %v2872_v46 = vpack.c.bf16 %v149_v37, %v148_v36  ;;  %v150_v51 = vld [vmem:[%s5047_s1 + $0x3d0] sm:$0xff] }
  0x24   :  { %2857 = vmatprep.subr.bf16.mxu1 %v2856_v50  ;;  %v132_v45 = vld [vmem:[%s5047_s1 + $0x340] sm:$0xff]  ;;  %v133_v48 = vld [vmem:[%s5047_s1 + $0x348] sm:$0xff]  ;;  %v119_v50 = vld [vmem:[%s5047_s1 + $0x2d8] sm:$0xff]  ;;  %v2842_v53 = vpack.c.bf16 %v101_v44, %v100_v42 }
  0x25   :  { %769 = vmatmul.mubr.f32.vlgmr.msra.gmra.mrb[0].mxu0 %v547_v55  ;;  %v151_v52 = vld [vmem:[%s5047_s1 + $0x3d8] sm:$0xff]  ;;  %v2874_v55 = vpack.c.bf16 %v133_v48, %v132_v45  ;;  %v2844_v56 = vpack.c.bf16 %v119_v50, %v118_v49  ;;  %v102_v57 = vld [vmem:[%s5047_s1 + $0x250] sm:$0xff]  ;;  %v120_v0 = vld [vmem:[%s5047_s1 + $0x2e0] sm:$0xff]  ;;  %v563_v45 = vrot.slane %v3494_v20, %v3746_v29  ;;  %v571_v50 = vrot.slane %v3494_v20, %v3755_v33 }
  0x26   :  { %839 = vmatmul.mubr.f32.vlgmr.msra.gmra.mrb[0].mxu1 %v555_v59  ;;  %2827 = vmatpush3.bf16.msra.mxu0 %v2826_v60  ;;  %v103_v59 = vld [vmem:[%s5047_s1 + $0x258] sm:$0xff]  ;;  %v134_v60 = vld [vmem:[%s5047_s1 + $0x350] sm:$0xff]  ;;  %v121_v1 = vld [vmem:[%s5047_s1 + $0x2e8] sm:$0xff] }
  0x27   :  { %2859 = vmatpush3.bf16.msra.mxu1 %v2858_v62  ;;  %2829 = vmatprep.subr.bf16.mxu0 %v2828_v63  ;;  %v2876_v62 = vpack.c.bf16 %v151_v52, %v150_v51  ;;  %v135_v63 = vld [vmem:[%s5047_s1 + $0x358] sm:$0xff]  ;;  %v152_v2 = vld [vmem:[%s5047_s1 + $0x3e0] sm:$0xff]  ;;  %v2846_v4 = vpack.c.bf16 %v103_v59, %v102_v57  ;;  %v2848_v6 = vpack.c.bf16 %v121_v1, %v120_v0  ;;  %v105_v8 = vld [vmem:[%s5047_s1 + $0x268] sm:$0xff] }
  0x28   :  { %2861 = vmatprep.subr.bf16.mxu1 %v2860_v3  ;;  %908 = vmatprep.mubr.f32.mxu0 %v567_v7  ;;  %v153_v3 = vld [vmem:[%s5047_s1 + $0x3e8] sm:$0xff]  ;;  %v2878_v5 = vpack.c.bf16 %v135_v63, %v134_v60  ;;  %v104_v7 = vld [vmem:[%s5047_s1 + $0x260] sm:$0xff]  ;;  %v154_v16 = vld [vmem:[%s5047_s1 + $0x3f0] sm:$0xff] }
  0x29   :  { %978 = vmatprep.mubr.f32.mxu1 %v575_v12  ;;  %v136_v9 = vld [vmem:[%s5047_s1 + $0x360] sm:$0xff]  ;;  %v2880_v12 = vpack.c.bf16 %v153_v3, %v152_v2  ;;  %v155_v17 = vld [vmem:[%s5047_s1 + $0x3f8] sm:$0xff]  ;;  %v2850_v18 = vpack.c.bf16 %v105_v8, %v104_v7  ;;  %v106_v22 = vld [vmem:[%s5047_s1 + $0x270] sm:$0xff] }
  0x2a   :  { %2831 = vmatpush3.bf16.msra.mxu0 %v2830_v13  ;;  %v137_v13 = vld [vmem:[%s5047_s1 + $0x368] sm:$0xff]  ;;  %v107_v23 = vld [vmem:[%s5047_s1 + $0x278] sm:$0xff]  ;;  %v138_v24 = vld [vmem:[%s5047_s1 + $0x370] sm:$0xff]  ;;  %v2884_v25 = vpack.c.bf16 %v155_v17, %v154_v16 }
  0x2b   :  { %2863 = vmatpush3.bf16.msra.mxu1 %v2862_v14  ;;  %2833 = vmatprep.subr.bf16.mxu0 %v2832_v15  ;;  %v122_v14 = vld [vmem:[%s5047_s1 + $0x2f0] sm:$0xff]  ;;  %v123_v15 = vld [vmem:[%s5047_s1 + $0x2f8] sm:$0xff]  ;;  %v204_v30 = vld [vmem:[%s5047_s1 + $0x580] sm:$0xff] }
  0x2c   :  { %2865 = vmatprep.subr.bf16.mxu1 %v2864_v19  ;;  %v2882_v19 = vpack.c.bf16 %v137_v13, %v136_v9  ;;  %v2852_v21 = vpack.c.bf16 %v123_v15, %v122_v14  ;;  %v205_v31 = vld [vmem:[%s5047_s1 + $0x588] sm:$0xff]  ;;  %v156_v36 = vld [vmem:[%s5047_s1 + $0x400] sm:$0xff]  ;;  %v174_v42 = vld [vmem:[%s5047_s1 + $0x490] sm:$0xff] }
  0x2d   :  { %v157_v37 = vld [vmem:[%s5047_s1 + $0x408] sm:$0xff]  ;;  %v175_v44 = vld [vmem:[%s5047_s1 + $0x498] sm:$0xff]  ;;  %v190_v20 = vld [vmem:[%s5047_s1 + $0x510] sm:$0xff] }
  0x2e   :  { %2835 = vmatpush3.bf16.msra.mxu0 %v2834_v26  ;;  %v139_v26 = vld [vmem:[%s5047_s1 + $0x378] sm:$0xff]  ;;  %v2890_v49 = vpack.c.bf16 %v157_v37, %v156_v36  ;;  %v3788_v51 = vld [vmem:[%s5048_s0 + $0x8] sm:$0xff]  ;;  %v176_v60 = vld [vmem:[%s5047_s1 + $0x4a0] sm:$0xff] }
  0x2f   :  { %2867 = vmatpush3.bf16.msra.mxu1 %v2866_v27  ;;  %2837 = vmatprep.subr.bf16.mxu0 %v2836_v28  ;;  %v172_v27 = vld [vmem:[%s5047_s1 + $0x480] sm:$0xff]  ;;  %v173_v28 = vld [vmem:[%s5047_s1 + $0x488] sm:$0xff]  ;;  %v2886_v34 = vpack.c.bf16 %v139_v26, %v138_v24  ;;  %v207_v48 = vld [vmem:[%s5047_s1 + $0x598] sm:$0xff]  ;;  %v583_v63 = vrot.slane %v3788_v51, %v3471_v10  ;;  %v591_v2 = vrot.slane %v3788_v51, %v3474_v11 }
  0x30   :  { %2869 = vmatprep.subr.bf16.mxu1 %v2868_v32  ;;  %v2854_v32 = vpack.c.bf16 %v107_v23, %v106_v22  ;;  %v2888_v35 = vpack.c.bf16 %v173_v28, %v172_v27  ;;  %v191_v59 = vld [vmem:[%s5047_s1 + $0x518] sm:$0xff]  ;;  %v208_v0 = vld [vmem:[%s5047_s1 + $0x5a0] sm:$0xff]  ;;  %v209_v1 = vld [vmem:[%s5047_s1 + $0x5a8] sm:$0xff] }
  0x31   :  { %v161_v7 = vld [vmem:[%s5047_s1 + $0x428] sm:$0xff]  ;;  %v192_v8 = vld [vmem:[%s5047_s1 + $0x520] sm:$0xff]  ;;  %v2928_v9 = vpack.c.bf16 %v209_v1, %v208_v0  ;;  %v178_v13 = vld [vmem:[%s5047_s1 + $0x4b0] sm:$0xff] }
  0x32   :  { %2839 = vmatpush3.bf16.msra.mxu0 %v2838_v38  ;;  %v188_v38 = vld [vmem:[%s5047_s1 + $0x500] sm:$0xff]  ;;  %v179_v14 = vld [vmem:[%s5047_s1 + $0x4b8] sm:$0xff]  ;;  %v210_v15 = vld [vmem:[%s5047_s1 + $0x5b0] sm:$0xff] }
  0x33   :  { %2871 = vmatpush3.bf16.msra.mxu1 %v2870_v40  ;;  %2841 = vmatprep.subr.bf16.mxu0 %v2840_v41  ;;  %v2920_v40 = vpack.c.bf16 %v205_v31, %v204_v30  ;;  %v189_v41 = vld [vmem:[%s5047_s1 + $0x508] sm:$0xff]  ;;  %v211_v16 = vld [vmem:[%s5047_s1 + $0x5b8] sm:$0xff]  ;;  %v194_v23 = vld [vmem:[%s5047_s1 + $0x530] sm:$0xff] }
  0x34   :  { %2873 = vmatprep.subr.bf16.mxu1 %v2872_v46  ;;  %v206_v46 = vld [vmem:[%s5047_s1 + $0x590] sm:$0xff]  ;;  %v2922_v52 = vpack.c.bf16 %v189_v41, %v188_v38  ;;  %v163_v22 = vld [vmem:[%s5047_s1 + $0x438] sm:$0xff]  ;;  %v2932_v24 = vpack.c.bf16 %v211_v16, %v210_v15  ;;  %v180_v26 = vld [vmem:[%s5047_s1 + $0x4c0] sm:$0xff] }
  0x35   :  { %v2924_v57 = vpack.c.bf16 %v207_v48, %v206_v46  ;;  %v181_v27 = vld [vmem:[%s5047_s1 + $0x4c8] sm:$0xff]  ;;  %v212_v28 = vld [vmem:[%s5047_s1 + $0x5c0] sm:$0xff]  ;;  %v182_v41 = vld [vmem:[%s5047_s1 + $0x4d0] sm:$0xff] }
  0x36   :  { %2843 = vmatpush3.bf16.msra.mxu0 %v2842_v53  ;;  %v2892_v53 = vpack.c.bf16 %v175_v44, %v174_v42  ;;  %v213_v30 = vld [vmem:[%s5047_s1 + $0x5c8] sm:$0xff]  ;;  %v196_v37 = vld [vmem:[%s5047_s1 + $0x540] sm:$0xff]  ;;  %v183_v42 = vld [vmem:[%s5047_s1 + $0x4d8] sm:$0xff] }
  0x37   :  { %2875 = vmatpush3.bf16.msra.mxu1 %v2874_v55  ;;  %2845 = vmatprep.subr.bf16.mxu0 %v2844_v56  ;;  %v158_v55 = vld [vmem:[%s5047_s1 + $0x410] sm:$0xff]  ;;  %v159_v56 = vld [vmem:[%s5047_s1 + $0x418] sm:$0xff]  ;;  %v165_v36 = vld [vmem:[%s5047_s1 + $0x448] sm:$0xff]  ;;  %v2936_v38 = vpack.c.bf16 %v213_v30, %v212_v28 }
  0x38   :  { %2877 = vmatprep.subr.bf16.mxu1 %v2876_v62  ;;  %v177_v62 = vld [vmem:[%s5047_s1 + $0x4a8] sm:$0xff]  ;;  %v2894_v3 = vpack.c.bf16 %v159_v56, %v158_v55  ;;  %v214_v44 = vld [vmem:[%s5047_s1 + $0x5d0] sm:$0xff]  ;;  %v199_v56 = vld [vmem:[%s5047_s1 + $0x558] sm:$0xff] }
  0x39   :  { %v168_v1 = vld [vmem:[%s5047_s1 + $0x460] sm:$0xff]  ;;  %v170_v15 = vld [vmem:[%s5047_s1 + $0x470] sm:$0xff]  ;;  %v171_v16 = vld [vmem:[%s5047_s1 + $0x478] sm:$0xff] }
  0x3a   :  { %2847 = vmatpush3.bf16.msra.mxu0 %v2846_v4  ;;  %v2926_v4 = vpack.c.bf16 %v191_v59, %v190_v20  ;;  %v184_v20 = vld [vmem:[%s5047_s1 + $0x4e0] sm:$0xff]  ;;  %v221_v30 = vld [vmem:[%s5047_s1 + $0x608] sm:$0xff] }
  0x3b   :  { %2879 = vmatpush3.bf16.msra.mxu1 %v2878_v5  ;;  %2849 = vmatprep.subr.bf16.mxu0 %v2848_v6  ;;  %v2896_v5 = vpack.c.bf16 %v177_v62, %v176_v60  ;;  %v160_v6 = vld [vmem:[%s5047_s1 + $0x420] sm:$0xff]  ;;  %v217_v60 = vld [vmem:[%s5047_s1 + $0x5e8] sm:$0xff] }
  0x3c   :  { %2881 = vmatprep.subr.bf16.mxu1 %v2880_v12  ;;  %v193_v12 = vld [vmem:[%s5047_s1 + $0x528] sm:$0xff]  ;;  %v2898_v17 = vpack.c.bf16 %v161_v7, %v160_v6  ;;  %v216_v59 = vld [vmem:[%s5047_s1 + $0x5e0] sm:$0xff]  ;;  %v186_v6 = vld [vmem:[%s5047_s1 + $0x4f0] sm:$0xff] }
  0x3d   :  { %v187_v7 = vld [vmem:[%s5047_s1 + $0x4f8] sm:$0xff]  ;;  %v220_v28 = vld [vmem:[%s5047_s1 + $0x600] sm:$0xff] }
  0x3e   :  { %2851 = vmatpush3.bf16.msra.mxu0 %v2850_v18  ;;  %v2930_v18 = vpack.c.bf16 %v193_v12, %v192_v8  ;;  %v218_v8 = vld [vmem:[%s5047_s1 + $0x5f0] sm:$0xff] }
  0x3f   :  { %2883 = vmatpush3.bf16.msra.mxu1 %v2882_v19  ;;  %2853 = vmatprep.subr.bf16.mxu0 %v2852_v21  ;;  %v2900_v19 = vpack.c.bf16 %v179_v14, %v178_v13  ;;  %v162_v21 = vld [vmem:[%s5047_s1 + $0x430] sm:$0xff]  ;;  %v2916_v14 = vpack.c.bf16 %v187_v7, %v186_v6  ;;  %v243_v6 = vld [vmem:[%s5047_s1 + $0x6b8] sm:$0xff] }
  0x40   :  { %2885 = vmatprep.subr.bf16.mxu1 %v2884_v25  ;;  %v195_v25 = vld [vmem:[%s5047_s1 + $0x538] sm:$0xff]  ;;  %v2902_v31 = vpack.c.bf16 %v163_v22, %v162_v21  ;;  %v236_v21 = vld [vmem:[%s5047_s1 + $0x680] sm:$0xff]  ;;  %v237_v22 = vld [vmem:[%s5047_s1 + $0x688] sm:$0xff] }
  0x41   :  { %v274_v7 = vld [vmem:[%s5047_s1 + $0x7b0] sm:$0xff] }
  0x42   :  { %2855 = vmatpush3.bf16.msra.mxu0 %v2854_v32  ;;  %v2934_v32 = vpack.c.bf16 %v195_v25, %v194_v23  ;;  %v268_v23 = vld [vmem:[%s5047_s1 + $0x780] sm:$0xff]  ;;  %v2918_v25 = vpack.c.bf16 %v171_v16, %v170_v15  ;;  %v227_v15 = vld [vmem:[%s5047_s1 + $0x638] sm:$0xff]  ;;  %v258_v16 = vld [vmem:[%s5047_s1 + $0x730] sm:$0xff] }
  0x43   :  { %2887 = vmatpush3.bf16.msra.mxu1 %v2886_v34  ;;  %2889 = vmatprep.subr.bf16.mxu0 %v2888_v35  ;;  %v2904_v34 = vpack.c.bf16 %v181_v27, %v180_v26  ;;  %v164_v35 = vld [vmem:[%s5047_s1 + $0x440] sm:$0xff]  ;;  %v2952_v27 = vpack.c.bf16 %v237_v22, %v236_v21  ;;  %v245_v21 = vld [vmem:[%s5047_s1 + $0x6c8] sm:$0xff] }
  0x44   :  { %2921 = vmatprep.subr.bf16.mxu1 %v2920_v40  ;;  %v197_v40 = vld [vmem:[%s5047_s1 + $0x548] sm:$0xff]  ;;  %v2906_v46 = vpack.c.bf16 %v165_v36, %v164_v35  ;;  %v238_v35 = vld [vmem:[%s5047_s1 + $0x690] sm:$0xff]  ;;  %v239_v36 = vld [vmem:[%s5047_s1 + $0x698] sm:$0xff] }
  0x45   :  { %909 = vmatmul.mubr.f32.vlgmr.msra.gmra.mrb[2].mxu0 %v563_v45  ;;  %v215_v45 = vld [vmem:[%s5047_s1 + $0x5d8] sm:$0xff]  ;;  %v2938_v48 = vpack.c.bf16 %v197_v40, %v196_v37  ;;  %v579_v37 = vrot.slane %v3788_v51, %v3534_v39  ;;  %v276_v22 = vld [vmem:[%s5047_s1 + $0x7c0] sm:$0xff] }
  0x46   :  { %2891 = vmatpush3.bf16.msra.mxu0 %v2890_v49  ;;  %979 = vmatmul.mubr.f32.vlgmr.msra.gmra.mrb[2].mxu1 %v571_v50  ;;  %v2908_v49 = vpack.c.bf16 %v183_v42, %v182_v41  ;;  %v166_v50 = vld [vmem:[%s5047_s1 + $0x450] sm:$0xff]  ;;  %v2940_v55 = vpack.c.bf16 %v215_v45, %v214_v44  ;;  %v271_v40 = vld [vmem:[%s5047_s1 + $0x798] sm:$0xff]  ;;  %v2954_v41 = vpack.c.bf16 %v221_v30, %v220_v28  ;;  %v229_v28 = vld [vmem:[%s5047_s1 + $0x648] sm:$0xff] }
  0x47   :  { %2923 = vmatpush3.bf16.msra.mxu1 %v2922_v52  ;;  %2893 = vmatprep.subr.bf16.mxu0 %v2892_v53  ;;  %v167_v52 = vld [vmem:[%s5047_s1 + $0x458] sm:$0xff]  ;;  %v198_v53 = vld [vmem:[%s5047_s1 + $0x550] sm:$0xff]  ;;  %v587_v42 = vrot.slane %v3788_v51, %v3543_v43  ;;  %v2956_v45 = vpack.c.bf16 %v239_v36, %v238_v35  ;;  %v260_v30 = vld [vmem:[%s5047_s1 + $0x740] sm:$0xff] }
  0x48   :  { %2925 = vmatprep.subr.bf16.mxu1 %v2924_v57  ;;  %1048 = vmatprep.mubr.f32.mxu0 %v583_v63  ;;  %v185_v57 = vld [vmem:[%s5047_s1 + $0x4e8] sm:$0xff]  ;;  %v2910_v62 = vpack.c.bf16 %v167_v52, %v166_v50  ;;  %v2942_v63 = vpack.c.bf16 %v199_v56, %v198_v53  ;;  %v255_v52 = vld [vmem:[%s5047_s1 + $0x718] sm:$0xff]  ;;  %v240_v53 = vld [vmem:[%s5047_s1 + $0x6a0] sm:$0xff]  ;;  %v599_v56 = vrot.slane %v3788_v51, %v3564_v54 }
  0x49   :  { %1118 = vmatprep.mubr.f32.mxu1 %v591_v2  ;;  %v2912_v0 = vpack.c.bf16 %v185_v57, %v184_v20  ;;  %v169_v2 = vld [vmem:[%s5047_s1 + $0x468] sm:$0xff]  ;;  %v272_v20 = vld [vmem:[%s5047_s1 + $0x7a0] sm:$0xff]  ;;  %v247_v35 = vld [vmem:[%s5047_s1 + $0x6d8] sm:$0xff] }
  0x4a   :  { %2895 = vmatpush3.bf16.msra.mxu0 %v2894_v3  ;;  %v200_v3 = vld [vmem:[%s5047_s1 + $0x560] sm:$0xff]  ;;  %v2914_v12 = vpack.c.bf16 %v169_v2, %v168_v1  ;;  %v273_v57 = vld [vmem:[%s5047_s1 + $0x7a8] sm:$0xff]  ;;  %v278_v36 = vld [vmem:[%s5047_s1 + $0x7d0] sm:$0xff] }
  0x4b   :  { %2927 = vmatpush3.bf16.msra.mxu1 %v2926_v4  ;;  %2897 = vmatprep.subr.bf16.mxu0 %v2896_v5  ;;  %v2944_v4 = vpack.c.bf16 %v217_v60, %v216_v59  ;;  %v201_v5 = vld [vmem:[%s5047_s1 + $0x568] sm:$0xff]  ;;  %v607_v59 = vrot.slane %v3788_v51, %v3575_v58  ;;  %v256_v2 = vld [vmem:[%s5047_s1 + $0x720] sm:$0xff] }
  0x4c   :  { %2929 = vmatprep.subr.bf16.mxu1 %v2928_v9  ;;  %v219_v9 = vld [vmem:[%s5047_s1 + $0x5f8] sm:$0xff]  ;;  %v2946_v13 = vpack.c.bf16 %v201_v5, %v200_v3  ;;  %v225_v1 = vld [vmem:[%s5047_s1 + $0x628] sm:$0xff]  ;;  %v2992_v3 = vpack.c.bf16 %v273_v57, %v272_v20  ;;  %v242_v5 = vld [vmem:[%s5047_s1 + $0x6b0] sm:$0xff] }
  0x4d   :  { %v232_v57 = vld [vmem:[%s5047_s1 + $0x660] sm:$0xff] }
  0x4e   :  { %2899 = vmatpush3.bf16.msra.mxu0 %v2898_v17  ;;  %v202_v17 = vld [vmem:[%s5047_s1 + $0x570] sm:$0xff] }
  0x4f   :  { %2931 = vmatpush3.bf16.msra.mxu1 %v2930_v18  ;;  %2901 = vmatprep.subr.bf16.mxu0 %v2900_v19  ;;  %v2948_v18 = vpack.c.bf16 %v219_v9, %v218_v8  ;;  %v203_v19 = vld [vmem:[%s5047_s1 + $0x578] sm:$0xff] }
  0x50   :  { %2933 = vmatprep.subr.bf16.mxu1 %v2932_v24  ;;  %v269_v24 = vld [vmem:[%s5047_s1 + $0x788] sm:$0xff]  ;;  %v2950_v26 = vpack.c.bf16 %v203_v19, %v202_v17  ;;  %v275_v8 = vld [vmem:[%s5047_s1 + $0x7b8] sm:$0xff]  ;;  %v244_v19 = vld [vmem:[%s5047_s1 + $0x6c0] sm:$0xff] }
  0x51   :  { %v2996_v17 = vpack.c.bf16 %v275_v8, %v274_v7  ;;  %v234_v7 = vld [vmem:[%s5047_s1 + $0x670] sm:$0xff]  ;;  %v235_v8 = vld [vmem:[%s5047_s1 + $0x678] sm:$0xff] }
  0x52   :  { %2903 = vmatpush3.bf16.msra.mxu0 %v2902_v31  ;;  %v252_v31 = vld [vmem:[%s5047_s1 + $0x700] sm:$0xff] }
  0x53   :  { %2935 = vmatpush3.bf16.msra.mxu1 %v2934_v32  ;;  %2905 = vmatprep.subr.bf16.mxu0 %v2904_v34  ;;  %v2984_v32 = vpack.c.bf16 %v269_v24, %v268_v23  ;;  %v253_v34 = vld [vmem:[%s5047_s1 + $0x708] sm:$0xff] }
  0x54   :  { %2937 = vmatprep.subr.bf16.mxu1 %v2936_v38  ;;  %v270_v38 = vld [vmem:[%s5047_s1 + $0x790] sm:$0xff]  ;;  %v2986_v44 = vpack.c.bf16 %v253_v34, %v252_v31  ;;  %v277_v23 = vld [vmem:[%s5047_s1 + $0x7c8] sm:$0xff] }
  0x55   :  { %v2988_v50 = vpack.c.bf16 %v271_v40, %v270_v38  ;;  %v3000_v31 = vpack.c.bf16 %v277_v23, %v276_v22  ;;  %v246_v34 = vld [vmem:[%s5047_s1 + $0x6d0] sm:$0xff]  ;;  %v284_v22 = vld [vmem:[%s5047_s1 + $0x800] sm:$0xff]  ;;  %v285_v23 = vld [vmem:[%s5047_s1 + $0x808] sm:$0xff] }
  0x56   :  { %2907 = vmatpush3.bf16.msra.mxu0 %v2906_v46  ;;  %v222_v46 = vld [vmem:[%s5047_s1 + $0x610] sm:$0xff] }
  0x57   :  { %2939 = vmatpush3.bf16.msra.mxu1 %v2938_v48  ;;  %2909 = vmatprep.subr.bf16.mxu0 %v2908_v49  ;;  %v223_v48 = vld [vmem:[%s5047_s1 + $0x618] sm:$0xff]  ;;  %v254_v49 = vld [vmem:[%s5047_s1 + $0x710] sm:$0xff] }
  0x58   :  { %2941 = vmatprep.subr.bf16.mxu1 %v2940_v55  ;;  %v241_v55 = vld [vmem:[%s5047_s1 + $0x6a8] sm:$0xff]  ;;  %v2958_v60 = vpack.c.bf16 %v223_v48, %v222_v46  ;;  %v263_v48 = vld [vmem:[%s5047_s1 + $0x758] sm:$0xff] }
  0x5a   :  { %2911 = vmatpush3.bf16.msra.mxu0 %v2910_v62  ;;  %v2990_v62 = vpack.c.bf16 %v255_v52, %v254_v49  ;;  %v248_v49 = vld [vmem:[%s5047_s1 + $0x6e0] sm:$0xff] }
  0x5b   :  { %2943 = vmatpush3.bf16.msra.mxu1 %v2942_v63  ;;  %2913 = vmatprep.subr.bf16.mxu0 %v2912_v0  ;;  %v2960_v63 = vpack.c.bf16 %v241_v55, %v240_v53  ;;  %v224_v0 = vld [vmem:[%s5047_s1 + $0x620] sm:$0xff]  ;;  %v281_v53 = vld [vmem:[%s5047_s1 + $0x7e8] sm:$0xff] }
  0x5c   :  { %2945 = vmatprep.subr.bf16.mxu1 %v2944_v4  ;;  %v257_v4 = vld [vmem:[%s5047_s1 + $0x728] sm:$0xff]  ;;  %v2962_v9 = vpack.c.bf16 %v225_v1, %v224_v0  ;;  %v280_v52 = vld [vmem:[%s5047_s1 + $0x7e0] sm:$0xff]  ;;  %v250_v0 = vld [vmem:[%s5047_s1 + $0x6f0] sm:$0xff] }
  0x5d   :  { %v251_v1 = vld [vmem:[%s5047_s1 + $0x6f8] sm:$0xff] }
  0x5e   :  { %2915 = vmatpush3.bf16.msra.mxu0 %v2914_v12  ;;  %v2994_v12 = vpack.c.bf16 %v257_v4, %v256_v2  ;;  %v282_v2 = vld [vmem:[%s5047_s1 + $0x7f0] sm:$0xff] }
  0x5f   :  { %2947 = vmatpush3.bf16.msra.mxu1 %v2946_v13  ;;  %2917 = vmatprep.subr.bf16.mxu0 %v2916_v14  ;;  %v2964_v13 = vpack.c.bf16 %v243_v6, %v242_v5  ;;  %v226_v14 = vld [vmem:[%s5047_s1 + $0x630] sm:$0xff]  ;;  %v2980_v6 = vpack.c.bf16 %v251_v1, %v250_v0  ;;  %v307_v0 = vld [vmem:[%s5047_s1 + $0x8b8] sm:$0xff] }
  0x60   :  { %2949 = vmatprep.subr.bf16.mxu1 %v2948_v18  ;;  %v259_v18 = vld [vmem:[%s5047_s1 + $0x738] sm:$0xff]  ;;  %v2966_v24 = vpack.c.bf16 %v227_v15, %v226_v14  ;;  %v300_v14 = vld [vmem:[%s5047_s1 + $0x880] sm:$0xff]  ;;  %v301_v15 = vld [vmem:[%s5047_s1 + $0x888] sm:$0xff] }
  0x61   :  { %v338_v1 = vld [vmem:[%s5047_s1 + $0x9b0] sm:$0xff] }
  0x62   :  { %2919 = vmatpush3.bf16.msra.mxu0 %v2918_v25  ;;  %v2998_v25 = vpack.c.bf16 %v259_v18, %v258_v16  ;;  %v332_v16 = vld [vmem:[%s5047_s1 + $0x980] sm:$0xff]  ;;  %v2982_v18 = vpack.c.bf16 %v235_v8, %v234_v7  ;;  %v291_v7 = vld [vmem:[%s5047_s1 + $0x838] sm:$0xff]  ;;  %v322_v8 = vld [vmem:[%s5047_s1 + $0x930] sm:$0xff] }
  0x63   :  { %2951 = vmatpush3.bf16.msra.mxu1 %v2950_v26  ;;  %2953 = vmatprep.subr.bf16.mxu0 %v2952_v27  ;;  %v2968_v26 = vpack.c.bf16 %v245_v21, %v244_v19  ;;  %v228_v27 = vld [vmem:[%s5047_s1 + $0x640] sm:$0xff]  ;;  %v3016_v21 = vpack.c.bf16 %v301_v15, %v300_v14  ;;  %v309_v14 = vld [vmem:[%s5047_s1 + $0x8c8] sm:$0xff] }
  0x64   :  { %2985 = vmatprep.subr.bf16.mxu1 %v2984_v32  ;;  %v261_v32 = vld [vmem:[%s5047_s1 + $0x748] sm:$0xff]  ;;  %v2970_v38 = vpack.c.bf16 %v229_v28, %v228_v27  ;;  %v302_v27 = vld [vmem:[%s5047_s1 + $0x890] sm:$0xff]  ;;  %v303_v28 = vld [vmem:[%s5047_s1 + $0x898] sm:$0xff] }
  0x65   :  { %1049 = vmatmul.mubr.f32.vlgmr.msra.gmra.mrb[4].mxu0 %v579_v37  ;;  %v279_v37 = vld [vmem:[%s5047_s1 + $0x7d8] sm:$0xff]  ;;  %v3002_v40 = vpack.c.bf16 %v261_v32, %v260_v30  ;;  %v595_v30 = vrot.slane %v3788_v51, %v3746_v29  ;;  %v340_v15 = vld [vmem:[%s5047_s1 + $0x9c0] sm:$0xff] }
  0x66   :  { %2955 = vmatpush3.bf16.msra.mxu0 %v2954_v41  ;;  %1119 = vmatmul.mubr.f32.vlgmr.msra.gmra.mrb[4].mxu1 %v587_v42  ;;  %v2972_v41 = vpack.c.bf16 %v247_v35, %v246_v34  ;;  %v230_v42 = vld [vmem:[%s5047_s1 + $0x650] sm:$0xff]  ;;  %v3004_v46 = vpack.c.bf16 %v279_v37, %v278_v36  ;;  %v335_v32 = vld [vmem:[%s5047_s1 + $0x998] sm:$0xff]  ;;  %v3018_v35 = vpack.c.bf16 %v285_v23, %v284_v22  ;;  %v293_v22 = vld [vmem:[%s5047_s1 + $0x848] sm:$0xff] }
  0x67   :  { %2987 = vmatpush3.bf16.msra.mxu1 %v2986_v44  ;;  %2957 = vmatprep.subr.bf16.mxu0 %v2956_v45  ;;  %v231_v44 = vld [vmem:[%s5047_s1 + $0x658] sm:$0xff]  ;;  %v262_v45 = vld [vmem:[%s5047_s1 + $0x750] sm:$0xff]  ;;  %v603_v36 = vrot.slane %v3788_v51, %v3755_v33  ;;  %v324_v23 = vld [vmem:[%s5047_s1 + $0x940] sm:$0xff] }
  0x68   :  { %2989 = vmatprep.subr.bf16.mxu1 %v2988_v50  ;;  %1188 = vmatprep.mubr.f32.mxu0 %v599_v56  ;;  %v249_v50 = vld [vmem:[%s5047_s1 + $0x6e8] sm:$0xff]  ;;  %v2974_v55 = vpack.c.bf16 %v231_v44, %v230_v42  ;;  %v3006_v56 = vpack.c.bf16 %v263_v48, %v262_v45  ;;  %v4191_v34 = vld [vmem:[%s5048_s0 + $0x10] sm:$0xff]  ;;  %v319_v51 = vld [vmem:[%s5047_s1 + $0x918] sm:$0xff] }
  0x69   :  { %1258 = vmatprep.mubr.f32.mxu1 %v607_v59  ;;  %v2976_v20 = vpack.c.bf16 %v249_v50, %v248_v49  ;;  %v233_v59 = vld [vmem:[%s5047_s1 + $0x668] sm:$0xff]  ;;  %v318_v42 = vld [vmem:[%s5047_s1 + $0x910] sm:$0xff]  ;;  %v304_v45 = vld [vmem:[%s5047_s1 + $0x8a0] sm:$0xff]  ;;  %v615_v48 = vrot.slane %v4191_v34, %v3471_v10 }
  0x6a   :  { %2959 = vmatpush3.bf16.msra.mxu0 %v2958_v60  ;;  %v264_v60 = vld [vmem:[%s5047_s1 + $0x760] sm:$0xff]  ;;  %v2978_v4 = vpack.c.bf16 %v233_v59, %v232_v57  ;;  %v337_v50 = vld [vmem:[%s5047_s1 + $0x9a8] sm:$0xff] }
  0x6b   :  { %2991 = vmatpush3.bf16.msra.mxu1 %v2990_v62  ;;  %2961 = vmatprep.subr.bf16.mxu0 %v2960_v63  ;;  %v3008_v62 = vpack.c.bf16 %v281_v53, %v280_v52  ;;  %v265_v63 = vld [vmem:[%s5047_s1 + $0x768] sm:$0xff]  ;;  %v336_v49 = vld [vmem:[%s5047_s1 + $0x9a0] sm:$0xff]  ;;  %v623_v52 = vrot.slane %v4191_v34, %v3474_v11 }
  0x6c   :  { %2993 = vmatprep.subr.bf16.mxu1 %v2992_v3  ;;  %v283_v3 = vld [vmem:[%s5047_s1 + $0x7f8] sm:$0xff]  ;;  %v3010_v5 = vpack.c.bf16 %v265_v63, %v264_v60  ;;  %v289_v57 = vld [vmem:[%s5047_s1 + $0x828] sm:$0xff]  ;;  %v320_v59 = vld [vmem:[%s5047_s1 + $0x920] sm:$0xff]  ;;  %v3056_v60 = vpack.c.bf16 %v337_v50, %v336_v49 }
  0x6d   :  { %v306_v63 = vld [vmem:[%s5047_s1 + $0x8b0] sm:$0xff]  ;;  %v296_v50 = vld [vmem:[%s5047_s1 + $0x860] sm:$0xff] }
  0x6e   :  { %2963 = vmatpush3.bf16.msra.mxu0 %v2962_v9  ;;  %v266_v9 = vld [vmem:[%s5047_s1 + $0x770] sm:$0xff] }
  0x6f   :  { %2995 = vmatpush3.bf16.msra.mxu1 %v2994_v12  ;;  %2965 = vmatprep.subr.bf16.mxu0 %v2964_v13  ;;  %v3012_v12 = vpack.c.bf16 %v283_v3, %v282_v2  ;;  %v267_v13 = vld [vmem:[%s5047_s1 + $0x778] sm:$0xff] }
  0x70   :  { %2997 = vmatprep.subr.bf16.mxu1 %v2996_v17  ;;  %v333_v17 = vld [vmem:[%s5047_s1 + $0x988] sm:$0xff]  ;;  %v3014_v19 = vpack.c.bf16 %v267_v13, %v266_v9  ;;  %v339_v2 = vld [vmem:[%s5047_s1 + $0x9b8] sm:$0xff]  ;;  %v308_v13 = vld [vmem:[%s5047_s1 + $0x8c0] sm:$0xff] }
  0x71   :  { %v3060_v9 = vpack.c.bf16 %v339_v2, %v338_v1  ;;  %v298_v1 = vld [vmem:[%s5047_s1 + $0x870] sm:$0xff]  ;;  %v299_v2 = vld [vmem:[%s5047_s1 + $0x878] sm:$0xff] }
  0x72   :  { %2967 = vmatpush3.bf16.msra.mxu0 %v2966_v24  ;;  %v316_v24 = vld [vmem:[%s5047_s1 + $0x900] sm:$0xff] }
  0x73   :  { %2999 = vmatpush3.bf16.msra.mxu1 %v2998_v25  ;;  %2969 = vmatprep.subr.bf16.mxu0 %v2968_v26  ;;  %v3048_v25 = vpack.c.bf16 %v333_v17, %v332_v16  ;;  %v317_v26 = vld [vmem:[%s5047_s1 + $0x908] sm:$0xff] }
  0x74   :  { %3001 = vmatprep.subr.bf16.mxu1 %v3000_v31  ;;  %v334_v31 = vld [vmem:[%s5047_s1 + $0x990] sm:$0xff]  ;;  %v3050_v37 = vpack.c.bf16 %v317_v26, %v316_v24  ;;  %v341_v16 = vld [vmem:[%s5047_s1 + $0x9c8] sm:$0xff] }
  0x75   :  { %v3052_v44 = vpack.c.bf16 %v335_v32, %v334_v31  ;;  %v3064_v24 = vpack.c.bf16 %v341_v16, %v340_v15  ;;  %v310_v26 = vld [vmem:[%s5047_s1 + $0x8d0] sm:$0xff]  ;;  %v348_v15 = vld [vmem:[%s5047_s1 + $0xa00] sm:$0xff]  ;;  %v349_v16 = vld [vmem:[%s5047_s1 + $0xa08] sm:$0xff] }
  0x76   :  { %2971 = vmatpush3.bf16.msra.mxu0 %v2970_v38  ;;  %v3020_v38 = vpack.c.bf16 %v303_v28, %v302_v27  ;;  %v311_v27 = vld [vmem:[%s5047_s1 + $0x8d8] sm:$0xff]  ;;  %v342_v28 = vld [vmem:[%s5047_s1 + $0x9d0] sm:$0xff] }
  0x77   :  { %3003 = vmatpush3.bf16.msra.mxu1 %v3002_v40  ;;  %2973 = vmatprep.subr.bf16.mxu0 %v2972_v41  ;;  %v286_v40 = vld [vmem:[%s5047_s1 + $0x810] sm:$0xff]  ;;  %v287_v41 = vld [vmem:[%s5047_s1 + $0x818] sm:$0xff] }
  0x78   :  { %3005 = vmatprep.subr.bf16.mxu1 %v3004_v46  ;;  %v305_v46 = vld [vmem:[%s5047_s1 + $0x8a8] sm:$0xff]  ;;  %v3022_v53 = vpack.c.bf16 %v287_v41, %v286_v40  ;;  %v327_v41 = vld [vmem:[%s5047_s1 + $0x958] sm:$0xff] }
  0x7a   :  { %2975 = vmatpush3.bf16.msra.mxu0 %v2974_v55  ;;  %v3054_v55 = vpack.c.bf16 %v319_v51, %v318_v42  ;;  %v312_v42 = vld [vmem:[%s5047_s1 + $0x8e0] sm:$0xff] }
  0x7b   :  { %3007 = vmatpush3.bf16.msra.mxu1 %v3006_v56  ;;  %2977 = vmatprep.subr.bf16.mxu0 %v2976_v20  ;;  %v3024_v56 = vpack.c.bf16 %v305_v46, %v304_v45  ;;  %v288_v20 = vld [vmem:[%s5047_s1 + $0x820] sm:$0xff]  ;;  %v345_v45 = vld [vmem:[%s5047_s1 + $0x9e8] sm:$0xff] }
  0x7c   :  { %3009 = vmatprep.subr.bf16.mxu1 %v3008_v62  ;;  %v321_v62 = vld [vmem:[%s5047_s1 + $0x928] sm:$0xff]  ;;  %v3026_v3 = vpack.c.bf16 %v289_v57, %v288_v20  ;;  %v344_v51 = vld [vmem:[%s5047_s1 + $0x9e0] sm:$0xff]  ;;  %v314_v20 = vld [vmem:[%s5047_s1 + $0x8f0] sm:$0xff] }
  0x7d   :  { %v315_v57 = vld [vmem:[%s5047_s1 + $0x8f8] sm:$0xff] }
  0x7e   :  { %2979 = vmatpush3.bf16.msra.mxu0 %v2978_v4  ;;  %v3058_v4 = vpack.c.bf16 %v321_v62, %v320_v59  ;;  %v346_v59 = vld [vmem:[%s5047_s1 + $0x9f0] sm:$0xff] }
  0x7f   :  { %3011 = vmatpush3.bf16.msra.mxu1 %v3010_v5  ;;  %2981 = vmatprep.subr.bf16.mxu0 %v2980_v6  ;;  %v3028_v5 = vpack.c.bf16 %v307_v0, %v306_v63  ;;  %v290_v6 = vld [vmem:[%s5047_s1 + $0x830] sm:$0xff]  ;;  %v3044_v0 = vpack.c.bf16 %v315_v57, %v314_v20  ;;  %v371_v20 = vld [vmem:[%s5047_s1 + $0xab8] sm:$0xff] }
  0x80   :  { %3013 = vmatprep.subr.bf16.mxu1 %v3012_v12  ;;  %v323_v12 = vld [vmem:[%s5047_s1 + $0x938] sm:$0xff]  ;;  %v3030_v17 = vpack.c.bf16 %v291_v7, %v290_v6  ;;  %v364_v6 = vld [vmem:[%s5047_s1 + $0xa80] sm:$0xff]  ;;  %v365_v7 = vld [vmem:[%s5047_s1 + $0xa88] sm:$0xff] }
  0x81   :  { %v402_v57 = vld [vmem:[%s5047_s1 + $0xbb0] sm:$0xff] }
  0x82   :  { %2983 = vmatpush3.bf16.msra.mxu0 %v2982_v18  ;;  %v3062_v18 = vpack.c.bf16 %v323_v12, %v322_v8  ;;  %v396_v8 = vld [vmem:[%s5047_s1 + $0xb80] sm:$0xff]  ;;  %v3046_v12 = vpack.c.bf16 %v299_v2, %v298_v1  ;;  %v355_v1 = vld [vmem:[%s5047_s1 + $0xa38] sm:$0xff]  ;;  %v386_v2 = vld [vmem:[%s5047_s1 + $0xb30] sm:$0xff] }
  0x83   :  { %3015 = vmatpush3.bf16.msra.mxu1 %v3014_v19  ;;  %3017 = vmatprep.subr.bf16.mxu0 %v3016_v21  ;;  %v3032_v19 = vpack.c.bf16 %v309_v14, %v308_v13  ;;  %v292_v21 = vld [vmem:[%s5047_s1 + $0x840] sm:$0xff]  ;;  %v3080_v14 = vpack.c.bf16 %v365_v7, %v364_v6  ;;  %v373_v6 = vld [vmem:[%s5047_s1 + $0xac8] sm:$0xff] }
  0x84   :  { %3049 = vmatprep.subr.bf16.mxu1 %v3048_v25  ;;  %v325_v25 = vld [vmem:[%s5047_s1 + $0x948] sm:$0xff]  ;;  %v3034_v31 = vpack.c.bf16 %v293_v22, %v292_v21  ;;  %v366_v21 = vld [vmem:[%s5047_s1 + $0xa90] sm:$0xff]  ;;  %v367_v22 = vld [vmem:[%s5047_s1 + $0xa98] sm:$0xff] }
  0x85   :  { %1189 = vmatmul.mubr.f32.vlgmr.msra.gmra.mrb[6].mxu0 %v595_v30  ;;  %v343_v30 = vld [vmem:[%s5047_s1 + $0x9d8] sm:$0xff]  ;;  %v3066_v32 = vpack.c.bf16 %v325_v25, %v324_v23  ;;  %v611_v23 = vrot.slane %v4191_v34, %v3534_v39  ;;  %v404_v7 = vld [vmem:[%s5047_s1 + $0xbc0] sm:$0xff] }
  0x86   :  { %3019 = vmatpush3.bf16.msra.mxu0 %v3018_v35  ;;  %1259 = vmatmul.mubr.f32.vlgmr.msra.gmra.mrb[6].mxu1 %v603_v36  ;;  %v3036_v35 = vpack.c.bf16 %v311_v27, %v310_v26  ;;  %v294_v36 = vld [vmem:[%s5047_s1 + $0x850] sm:$0xff]  ;;  %v3068_v40 = vpack.c.bf16 %v343_v30, %v342_v28  ;;  %v399_v25 = vld [vmem:[%s5047_s1 + $0xb98] sm:$0xff]  ;;  %v3082_v26 = vpack.c.bf16 %v349_v16, %v348_v15  ;;  %v357_v15 = vld [vmem:[%s5047_s1 + $0xa48] sm:$0xff] }
  0x87   :  { %3051 = vmatpush3.bf16.msra.mxu1 %v3050_v37  ;;  %3021 = vmatprep.subr.bf16.mxu0 %v3020_v38  ;;  %v295_v37 = vld [vmem:[%s5047_s1 + $0x858] sm:$0xff]  ;;  %v326_v38 = vld [vmem:[%s5047_s1 + $0x950] sm:$0xff]  ;;  %v619_v27 = vrot.slane %v4191_v34, %v3543_v43  ;;  %v3084_v30 = vpack.c.bf16 %v367_v22, %v366_v21  ;;  %v388_v16 = vld [vmem:[%s5047_s1 + $0xb40] sm:$0xff] }
  0x88   :  { %3053 = vmatprep.subr.bf16.mxu1 %v3052_v44  ;;  %1328 = vmatprep.mubr.f32.mxu0 %v615_v48  ;;  %v313_v44 = vld [vmem:[%s5047_s1 + $0x8e8] sm:$0xff]  ;;  %v3038_v46 = vpack.c.bf16 %v295_v37, %v294_v36  ;;  %v3070_v48 = vpack.c.bf16 %v327_v41, %v326_v38  ;;  %v383_v37 = vld [vmem:[%s5047_s1 + $0xb18] sm:$0xff]  ;;  %v368_v38 = vld [vmem:[%s5047_s1 + $0xaa0] sm:$0xff]  ;;  %v631_v41 = vrot.slane %v4191_v34, %v3564_v54 }
  0x89   :  { %1398 = vmatprep.mubr.f32.mxu1 %v623_v52  ;;  %v3040_v49 = vpack.c.bf16 %v313_v44, %v312_v42  ;;  %v297_v52 = vld [vmem:[%s5047_s1 + $0x868] sm:$0xff]  ;;  %v400_v42 = vld [vmem:[%s5047_s1 + $0xba0] sm:$0xff]  ;;  %v375_v21 = vld [vmem:[%s5047_s1 + $0xad8] sm:$0xff] }
  0x8a   :  { %3023 = vmatpush3.bf16.msra.mxu0 %v3022_v53  ;;  %v328_v53 = vld [vmem:[%s5047_s1 + $0x960] sm:$0xff]  ;;  %v3042_v62 = vpack.c.bf16 %v297_v52, %v296_v50  ;;  %v401_v44 = vld [vmem:[%s5047_s1 + $0xba8] sm:$0xff]  ;;  %v406_v22 = vld [vmem:[%s5047_s1 + $0xbd0] sm:$0xff] }
  0x8b   :  { %3055 = vmatpush3.bf16.msra.mxu1 %v3054_v55  ;;  %3025 = vmatprep.subr.bf16.mxu0 %v3024_v56  ;;  %v3072_v55 = vpack.c.bf16 %v345_v45, %v344_v51  ;;  %v329_v56 = vld [vmem:[%s5047_s1 + $0x968] sm:$0xff]  ;;  %v639_v51 = vrot.slane %v4191_v34, %v3575_v58  ;;  %v384_v52 = vld [vmem:[%s5047_s1 + $0xb20] sm:$0xff] }
  0x8c   :  { %3057 = vmatprep.subr.bf16.mxu1 %v3056_v60  ;;  %v347_v60 = vld [vmem:[%s5047_s1 + $0x9f8] sm:$0xff]  ;;  %v3074_v63 = vpack.c.bf16 %v329_v56, %v328_v53  ;;  %v353_v50 = vld [vmem:[%s5047_s1 + $0xa28] sm:$0xff]  ;;  %v3120_v53 = vpack.c.bf16 %v401_v44, %v400_v42  ;;  %v370_v56 = vld [vmem:[%s5047_s1 + $0xab0] sm:$0xff] }
  0x8d   :  { %v360_v44 = vld [vmem:[%s5047_s1 + $0xa60] sm:$0xff] }
  0x8e   :  { %3027 = vmatpush3.bf16.msra.mxu0 %v3026_v3  ;;  %v330_v3 = vld [vmem:[%s5047_s1 + $0x970] sm:$0xff] }
  0x8f   :  { %3059 = vmatpush3.bf16.msra.mxu1 %v3058_v4  ;;  %3029 = vmatprep.subr.bf16.mxu0 %v3028_v5  ;;  %v3076_v4 = vpack.c.bf16 %v347_v60, %v346_v59  ;;  %v331_v5 = vld [vmem:[%s5047_s1 + $0x978] sm:$0xff] }
  0x90   :  { %3061 = vmatprep.subr.bf16.mxu1 %v3060_v9  ;;  %v397_v9 = vld [vmem:[%s5047_s1 + $0xb88] sm:$0xff]  ;;  %v3078_v13 = vpack.c.bf16 %v331_v5, %v330_v3  ;;  %v403_v59 = vld [vmem:[%s5047_s1 + $0xbb8] sm:$0xff]  ;;  %v372_v5 = vld [vmem:[%s5047_s1 + $0xac0] sm:$0xff] }
  0x91   :  { %v3124_v3 = vpack.c.bf16 %v403_v59, %v402_v57  ;;  %v362_v57 = vld [vmem:[%s5047_s1 + $0xa70] sm:$0xff]  ;;  %v363_v59 = vld [vmem:[%s5047_s1 + $0xa78] sm:$0xff] }
  0x92   :  { %3031 = vmatpush3.bf16.msra.mxu0 %v3030_v17  ;;  %v380_v17 = vld [vmem:[%s5047_s1 + $0xb00] sm:$0xff] }
  0x93   :  { %3063 = vmatpush3.bf16.msra.mxu1 %v3062_v18  ;;  %3033 = vmatprep.subr.bf16.mxu0 %v3032_v19  ;;  %v3112_v18 = vpack.c.bf16 %v397_v9, %v396_v8  ;;  %v381_v19 = vld [vmem:[%s5047_s1 + $0xb08] sm:$0xff] }
  0x94   :  { %3065 = vmatprep.subr.bf16.mxu1 %v3064_v24  ;;  %v398_v24 = vld [vmem:[%s5047_s1 + $0xb90] sm:$0xff]  ;;  %v3114_v28 = vpack.c.bf16 %v381_v19, %v380_v17  ;;  %v405_v8 = vld [vmem:[%s5047_s1 + $0xbc8] sm:$0xff] }
  0x95   :  { %v3116_v36 = vpack.c.bf16 %v399_v25, %v398_v24  ;;  %v3128_v17 = vpack.c.bf16 %v405_v8, %v404_v7  ;;  %v374_v19 = vld [vmem:[%s5047_s1 + $0xad0] sm:$0xff]  ;;  %v412_v7 = vld [vmem:[%s5047_s1 + $0xc00] sm:$0xff]  ;;  %v413_v8 = vld [vmem:[%s5047_s1 + $0xc08] sm:$0xff] }
  0x96   :  { %3035 = vmatpush3.bf16.msra.mxu0 %v3034_v31  ;;  %v350_v31 = vld [vmem:[%s5047_s1 + $0xa10] sm:$0xff] }
  0x97   :  { %3067 = vmatpush3.bf16.msra.mxu1 %v3066_v32  ;;  %3037 = vmatprep.subr.bf16.mxu0 %v3036_v35  ;;  %v351_v32 = vld [vmem:[%s5047_s1 + $0xa18] sm:$0xff]  ;;  %v382_v35 = vld [vmem:[%s5047_s1 + $0xb10] sm:$0xff] }
  0x98   :  { %3069 = vmatprep.subr.bf16.mxu1 %v3068_v40  ;;  %v369_v40 = vld [vmem:[%s5047_s1 + $0xaa8] sm:$0xff]  ;;  %v3086_v45 = vpack.c.bf16 %v351_v32, %v350_v31  ;;  %v391_v32 = vld [vmem:[%s5047_s1 + $0xb58] sm:$0xff] }
  0x9a   :  { %3039 = vmatpush3.bf16.msra.mxu0 %v3038_v46  ;;  %v3118_v46 = vpack.c.bf16 %v383_v37, %v382_v35  ;;  %v376_v35 = vld [vmem:[%s5047_s1 + $0xae0] sm:$0xff] }
  0x9b   :  { %3071 = vmatpush3.bf16.msra.mxu1 %v3070_v48  ;;  %3041 = vmatprep.subr.bf16.mxu0 %v3040_v49  ;;  %v3088_v48 = vpack.c.bf16 %v369_v40, %v368_v38  ;;  %v352_v49 = vld [vmem:[%s5047_s1 + $0xa20] sm:$0xff]  ;;  %v409_v38 = vld [vmem:[%s5047_s1 + $0xbe8] sm:$0xff] }
  0x9c   :  { %3073 = vmatprep.subr.bf16.mxu1 %v3072_v55  ;;  %v385_v55 = vld [vmem:[%s5047_s1 + $0xb28] sm:$0xff]  ;;  %v3090_v60 = vpack.c.bf16 %v353_v50, %v352_v49  ;;  %v408_v37 = vld [vmem:[%s5047_s1 + $0xbe0] sm:$0xff]  ;;  %v378_v49 = vld [vmem:[%s5047_s1 + $0xaf0] sm:$0xff] }
  0x9d   :  { %v379_v50 = vld [vmem:[%s5047_s1 + $0xaf8] sm:$0xff] }
  0x9e   :  { %3043 = vmatpush3.bf16.msra.mxu0 %v3042_v62  ;;  %v3122_v62 = vpack.c.bf16 %v385_v55, %v384_v52  ;;  %v410_v52 = vld [vmem:[%s5047_s1 + $0xbf0] sm:$0xff] }
  0x9f   :  { %3075 = vmatpush3.bf16.msra.mxu1 %v3074_v63  ;;  %3045 = vmatprep.subr.bf16.mxu0 %v3044_v0  ;;  %v3092_v63 = vpack.c.bf16 %v371_v20, %v370_v56  ;;  %v354_v0 = vld [vmem:[%s5047_s1 + $0xa30] sm:$0xff]  ;;  %v3108_v20 = vpack.c.bf16 %v379_v50, %v378_v49  ;;  %v467_v49 = vld [vmem:[%s5047_s1 + $0xdb8] sm:$0xff] }
  0xa0   :  { %3077 = vmatprep.subr.bf16.mxu1 %v3076_v4  ;;  %v387_v4 = vld [vmem:[%s5047_s1 + $0xb38] sm:$0xff]  ;;  %v3094_v9 = vpack.c.bf16 %v355_v1, %v354_v0  ;;  %v428_v0 = vld [vmem:[%s5047_s1 + $0xc80] sm:$0xff]  ;;  %v429_v1 = vld [vmem:[%s5047_s1 + $0xc88] sm:$0xff] }
  0xa2   :  { %3047 = vmatpush3.bf16.msra.mxu0 %v3046_v12  ;;  %v3126_v12 = vpack.c.bf16 %v387_v4, %v386_v2  ;;  %v460_v2 = vld [vmem:[%s5047_s1 + $0xd80] sm:$0xff]  ;;  %v3110_v4 = vpack.c.bf16 %v363_v59, %v362_v57  ;;  %v451_v59 = vld [vmem:[%s5047_s1 + $0xd38] sm:$0xff] }
  0xa3   :  { %3079 = vmatpush3.bf16.msra.mxu1 %v3078_v13  ;;  %3081 = vmatprep.subr.bf16.mxu0 %v3080_v14  ;;  %v3096_v13 = vpack.c.bf16 %v373_v6, %v372_v5  ;;  %v356_v14 = vld [vmem:[%s5047_s1 + $0xa40] sm:$0xff]  ;;  %v3144_v6 = vpack.c.bf16 %v429_v1, %v428_v0  ;;  %v469_v0 = vld [vmem:[%s5047_s1 + $0xdc8] sm:$0xff] }
  0xa4   :  { %3113 = vmatprep.subr.bf16.mxu1 %v3112_v18  ;;  %v389_v18 = vld [vmem:[%s5047_s1 + $0xb48] sm:$0xff]  ;;  %v3098_v24 = vpack.c.bf16 %v357_v15, %v356_v14  ;;  %v430_v14 = vld [vmem:[%s5047_s1 + $0xc90] sm:$0xff]  ;;  %v431_v15 = vld [vmem:[%s5047_s1 + $0xc98] sm:$0xff] }
  0xa5   :  { %1329 = vmatmul.mubr.f32.vlgmr.msra.gmra.mrb[8].mxu0 %v611_v23  ;;  %v407_v23 = vld [vmem:[%s5047_s1 + $0xbd8] sm:$0xff]  ;;  %v3130_v25 = vpack.c.bf16 %v389_v18, %v388_v16  ;;  %v627_v16 = vrot.slane %v4191_v34, %v3746_v29 }
  0xa6   :  { %3083 = vmatpush3.bf16.msra.mxu0 %v3082_v26  ;;  %1399 = vmatmul.mubr.f32.vlgmr.msra.gmra.mrb[8].mxu1 %v619_v27  ;;  %v3100_v26 = vpack.c.bf16 %v375_v21, %v374_v19  ;;  %v358_v27 = vld [vmem:[%s5047_s1 + $0xa50] sm:$0xff]  ;;  %v3132_v31 = vpack.c.bf16 %v407_v23, %v406_v22  ;;  %v463_v18 = vld [vmem:[%s5047_s1 + $0xd98] sm:$0xff]  ;;  %v3146_v21 = vpack.c.bf16 %v413_v8, %v412_v7  ;;  %v453_v8 = vld [vmem:[%s5047_s1 + $0xd48] sm:$0xff] }
  0xa7   :  { %3115 = vmatpush3.bf16.msra.mxu1 %v3114_v28  ;;  %3085 = vmatprep.subr.bf16.mxu0 %v3084_v30  ;;  %v359_v28 = vld [vmem:[%s5047_s1 + $0xa58] sm:$0xff]  ;;  %v390_v30 = vld [vmem:[%s5047_s1 + $0xb50] sm:$0xff]  ;;  %v635_v22 = vrot.slane %v4191_v34, %v3755_v33 }
  0xa8   :  { %3117 = vmatprep.subr.bf16.mxu1 %v3116_v36  ;;  %1468 = vmatprep.mubr.f32.mxu0 %v631_v41  ;;  %v377_v36 = vld [vmem:[%s5047_s1 + $0xae8] sm:$0xff]  ;;  %v3102_v40 = vpack.c.bf16 %v359_v28, %v358_v27  ;;  %v3134_v41 = vpack.c.bf16 %v391_v32, %v390_v30  ;;  %v4596_v19 = vld [vmem:[%s5048_s0 + $0x18] sm:$0xff]  ;;  %v446_v27 = vld [vmem:[%s5047_s1 + $0xd10] sm:$0xff] }
  0xa9   :  { %1538 = vmatprep.mubr.f32.mxu1 %v639_v51  ;;  %v3104_v42 = vpack.c.bf16 %v377_v36, %v376_v35  ;;  %v361_v51 = vld [vmem:[%s5047_s1 + $0xa68] sm:$0xff]  ;;  %v447_v34 = vld [vmem:[%s5047_s1 + $0xd18] sm:$0xff]  ;;  %v432_v30 = vld [vmem:[%s5047_s1 + $0xca0] sm:$0xff]  ;;  %v647_v32 = vrot.slane %v4596_v19, %v3471_v10 }
  0xaa   :  { %3087 = vmatpush3.bf16.msra.mxu0 %v3086_v45  ;;  %v392_v45 = vld [vmem:[%s5047_s1 + $0xb60] sm:$0xff]  ;;  %v3106_v55 = vpack.c.bf16 %v361_v51, %v360_v44  ;;  %v465_v36 = vld [vmem:[%s5047_s1 + $0xda8] sm:$0xff] }
  0xab   :  { %3119 = vmatpush3.bf16.msra.mxu1 %v3118_v46  ;;  %3089 = vmatprep.subr.bf16.mxu0 %v3088_v48  ;;  %v3136_v46 = vpack.c.bf16 %v409_v38, %v408_v37  ;;  %v393_v48 = vld [vmem:[%s5047_s1 + $0xb68] sm:$0xff]  ;;  %v464_v35 = vld [vmem:[%s5047_s1 + $0xda0] sm:$0xff]  ;;  %v655_v37 = vrot.slane %v4596_v19, %v3474_v11 }
  0xac   :  { %3121 = vmatprep.subr.bf16.mxu1 %v3120_v53  ;;  %v411_v53 = vld [vmem:[%s5047_s1 + $0xbf8] sm:$0xff]  ;;  %v3138_v56 = vpack.c.bf16 %v393_v48, %v392_v45  ;;  %v416_v10 = vld [vmem:[%s5047_s1 + $0xc20] sm:$0xff]  ;;  %v3184_v11 = vpack.c.bf16 %v465_v36, %v464_v35  ;;  %v449_v51 = vld [vmem:[%s5047_s1 + $0xd28] sm:$0xff] }
  0xad   :  { %v448_v44 = vld [vmem:[%s5047_s1 + $0xd20] sm:$0xff]  ;;  %v434_v45 = vld [vmem:[%s5047_s1 + $0xcb0] sm:$0xff]  ;;  %v425_v35 = vld [vmem:[%s5047_s1 + $0xc68] sm:$0xff] }
  0xae   :  { %3091 = vmatpush3.bf16.msra.mxu0 %v3090_v60  ;;  %v394_v60 = vld [vmem:[%s5047_s1 + $0xb70] sm:$0xff]  ;;  %v456_v36 = vld [vmem:[%s5047_s1 + $0xd60] sm:$0xff] }
  0xaf   :  { %3123 = vmatpush3.bf16.msra.mxu1 %v3122_v62  ;;  %3093 = vmatprep.subr.bf16.mxu0 %v3092_v63  ;;  %v3140_v62 = vpack.c.bf16 %v411_v53, %v410_v52  ;;  %v395_v63 = vld [vmem:[%s5047_s1 + $0xb78] sm:$0xff]  ;;  %v466_v48 = vld [vmem:[%s5047_s1 + $0xdb0] sm:$0xff]  ;;  %v3186_v52 = vpack.c.bf16 %v449_v51, %v448_v44 }
  0xb0   :  { %3125 = vmatprep.subr.bf16.mxu1 %v3124_v3  ;;  %v461_v3 = vld [vmem:[%s5047_s1 + $0xd88] sm:$0xff]  ;;  %v3142_v5 = vpack.c.bf16 %v395_v63, %v394_v60  ;;  %v3188_v57 = vpack.c.bf16 %v467_v49, %v466_v48  ;;  %v436_v60 = vld [vmem:[%s5047_s1 + $0xcc0] sm:$0xff]  ;;  %v458_v48 = vld [vmem:[%s5047_s1 + $0xd70] sm:$0xff] }
  0xb1   :  { %v468_v63 = vld [vmem:[%s5047_s1 + $0xdc0] sm:$0xff] }
  0xb2   :  { %3095 = vmatpush3.bf16.msra.mxu0 %v3094_v9  ;;  %v444_v9 = vld [vmem:[%s5047_s1 + $0xd00] sm:$0xff]  ;;  %v3192_v7 = vpack.c.bf16 %v469_v0, %v468_v63 }
  0xb3   :  { %3127 = vmatpush3.bf16.msra.mxu1 %v3126_v12  ;;  %3097 = vmatprep.subr.bf16.mxu0 %v3096_v13  ;;  %v3176_v12 = vpack.c.bf16 %v461_v3, %v460_v2  ;;  %v445_v13 = vld [vmem:[%s5047_s1 + $0xd08] sm:$0xff]  ;;  %v508_v63 = vld [vmem:[%s5047_s1 + $0xf00] sm:$0xff] }
  0xb4   :  { %3129 = vmatprep.subr.bf16.mxu1 %v3128_v17  ;;  %v462_v17 = vld [vmem:[%s5047_s1 + $0xd90] sm:$0xff]  ;;  %v3178_v23 = vpack.c.bf16 %v445_v13, %v444_v9 }
  0xb5   :  { %v3180_v28 = vpack.c.bf16 %v463_v18, %v462_v17  ;;  %v438_v9 = vld [vmem:[%s5047_s1 + $0xcd0] sm:$0xff] }
  0xb6   :  { %3099 = vmatpush3.bf16.msra.mxu0 %v3098_v24  ;;  %v3148_v24 = vpack.c.bf16 %v431_v15, %v430_v14  ;;  %v470_v13 = vld [vmem:[%s5047_s1 + $0xdd0] sm:$0xff]  ;;  %v471_v14 = vld [vmem:[%s5047_s1 + $0xdd8] sm:$0xff] }
  0xb7   :  { %3131 = vmatpush3.bf16.msra.mxu1 %v3130_v25  ;;  %3101 = vmatprep.subr.bf16.mxu0 %v3100_v26  ;;  %v414_v25 = vld [vmem:[%s5047_s1 + $0xc10] sm:$0xff]  ;;  %v415_v26 = vld [vmem:[%s5047_s1 + $0xc18] sm:$0xff] }
  0xb8   :  { %3133 = vmatprep.subr.bf16.mxu1 %v3132_v31  ;;  %v433_v31 = vld [vmem:[%s5047_s1 + $0xca8] sm:$0xff]  ;;  %v3150_v38 = vpack.c.bf16 %v415_v26, %v414_v25  ;;  %v422_v18 = vld [vmem:[%s5047_s1 + $0xc50] sm:$0xff]  ;;  %v440_v25 = vld [vmem:[%s5047_s1 + $0xce0] sm:$0xff] }
  0xb9   :  { %v441_v26 = vld [vmem:[%s5047_s1 + $0xce8] sm:$0xff] }
  0xba   :  { %3103 = vmatpush3.bf16.msra.mxu0 %v3102_v40  ;;  %v3182_v40 = vpack.c.bf16 %v447_v34, %v446_v27  ;;  %v472_v27 = vld [vmem:[%s5047_s1 + $0xde0] sm:$0xff] }
  0xbb   :  { %3135 = vmatpush3.bf16.msra.mxu1 %v3134_v41  ;;  %3105 = vmatprep.subr.bf16.mxu0 %v3104_v42  ;;  %v3152_v41 = vpack.c.bf16 %v433_v31, %v432_v30  ;;  %v417_v42 = vld [vmem:[%s5047_s1 + $0xc28] sm:$0xff]  ;;  %v3168_v31 = vpack.c.bf16 %v441_v26, %v440_v25 }
  0xbc   :  { %3137 = vmatprep.subr.bf16.mxu1 %v3136_v46  ;;  %v435_v46 = vld [vmem:[%s5047_s1 + $0xcb8] sm:$0xff]  ;;  %v3154_v50 = vpack.c.bf16 %v417_v42, %v416_v10  ;;  %v474_v10 = vld [vmem:[%s5047_s1 + $0xdf0] sm:$0xff] }
  0xbd   :  { %v3156_v53 = vpack.c.bf16 %v435_v46, %v434_v45  ;;  %v475_v42 = vld [vmem:[%s5047_s1 + $0xdf8] sm:$0xff]  ;;  %v426_v45 = vld [vmem:[%s5047_s1 + $0xc70] sm:$0xff] }
  0xbe   :  { %3107 = vmatpush3.bf16.msra.mxu0 %v3106_v55  ;;  %v418_v55 = vld [vmem:[%s5047_s1 + $0xc30] sm:$0xff]  ;;  %v427_v46 = vld [vmem:[%s5047_s1 + $0xc78] sm:$0xff]  ;;  %v3204_v49 = vpack.c.bf16 %v475_v42, %v474_v10 }
  0xbf   :  { %3139 = vmatpush3.bf16.msra.mxu1 %v3138_v56  ;;  %3109 = vmatprep.subr.bf16.mxu0 %v3108_v20  ;;  %v419_v56 = vld [vmem:[%s5047_s1 + $0xc38] sm:$0xff]  ;;  %v450_v20 = vld [vmem:[%s5047_s1 + $0xd30] sm:$0xff] }
  0xc0   :  { %3141 = vmatprep.subr.bf16.mxu1 %v3140_v62  ;;  %v437_v62 = vld [vmem:[%s5047_s1 + $0xcc8] sm:$0xff]  ;;  %v3158_v1 = vpack.c.bf16 %v419_v56, %v418_v55  ;;  %v3190_v2 = vpack.c.bf16 %v451_v59, %v450_v20  ;;  %v524_v55 = vld [vmem:[%s5047_s1 + $0xf80] sm:$0xff]  ;;  %v3174_v20 = vpack.c.bf16 %v427_v46, %v426_v45  ;;  %v483_v10 = vld [vmem:[%s5047_s1 + $0xe38] sm:$0xff] }
  0xc1   :  { %v3160_v3 = vpack.c.bf16 %v437_v62, %v436_v60  ;;  %v525_v56 = vld [vmem:[%s5047_s1 + $0xf88] sm:$0xff]  ;;  %v476_v60 = vld [vmem:[%s5047_s1 + $0xe00] sm:$0xff]  ;;  %v514_v42 = vld [vmem:[%s5047_s1 + $0xf30] sm:$0xff] }
  0xc2   :  { %3111 = vmatpush3.bf16.msra.mxu0 %v3110_v4  ;;  %v420_v4 = vld [vmem:[%s5047_s1 + $0xc40] sm:$0xff]  ;;  %v477_v62 = vld [vmem:[%s5047_s1 + $0xe08] sm:$0xff]  ;;  %v3240_v0 = vpack.c.bf16 %v525_v56, %v524_v55 }
  0xc3   :  { %3143 = vmatpush3.bf16.msra.mxu1 %v3142_v5  ;;  %3145 = vmatprep.subr.bf16.mxu0 %v3144_v6  ;;  %v421_v5 = vld [vmem:[%s5047_s1 + $0xc48] sm:$0xff]  ;;  %v452_v6 = vld [vmem:[%s5047_s1 + $0xd40] sm:$0xff] }
  0xc4   :  { %3177 = vmatprep.subr.bf16.mxu1 %v3176_v12  ;;  %v439_v12 = vld [vmem:[%s5047_s1 + $0xcd8] sm:$0xff]  ;;  %v3162_v15 = vpack.c.bf16 %v421_v5, %v420_v4  ;;  %v643_v4 = vrot.slane %v4596_v19, %v3534_v39  ;;  %v526_v5 = vld [vmem:[%s5047_s1 + $0xf90] sm:$0xff]  ;;  %v501_v45 = vld [vmem:[%s5047_s1 + $0xec8] sm:$0xff] }
  0xc5   :  { %1469 = vmatmul.mubr.f32.vlgmr.msra.gmra.mrb[10].mxu0 %v627_v16  ;;  %v3194_v16 = vpack.c.bf16 %v453_v8, %v452_v6  ;;  %v3164_v17 = vpack.c.bf16 %v439_v12, %v438_v9  ;;  %v527_v6 = vld [vmem:[%s5047_s1 + $0xf98] sm:$0xff]  ;;  %v651_v8 = vrot.slane %v4596_v19, %v3543_v43  ;;  %v532_v46 = vld [vmem:[%s5047_s1 + $0xfc0] sm:$0xff]  ;;  %v485_v55 = vld [vmem:[%s5047_s1 + $0xe48] sm:$0xff] }
  0xc6   :  { %3147 = vmatpush3.bf16.msra.mxu0 %v3146_v21  ;;  %1539 = vmatmul.mubr.f32.vlgmr.msra.gmra.mrb[10].mxu1 %v635_v22  ;;  %v423_v21 = vld [vmem:[%s5047_s1 + $0xc58] sm:$0xff]  ;;  %v454_v22 = vld [vmem:[%s5047_s1 + $0xd50] sm:$0xff]  ;;  %v516_v56 = vld [vmem:[%s5047_s1 + $0xf40] sm:$0xff] }
  0xc7   :  { %3179 = vmatpush3.bf16.msra.mxu1 %v3178_v23  ;;  %3149 = vmatprep.subr.bf16.mxu0 %v3148_v24  ;;  %v3196_v23 = vpack.c.bf16 %v471_v14, %v470_v13  ;;  %v455_v24 = vld [vmem:[%s5047_s1 + $0xd58] sm:$0xff]  ;;  %v3166_v34 = vpack.c.bf16 %v423_v21, %v422_v18  ;;  %v478_v13 = vld [vmem:[%s5047_s1 + $0xe10] sm:$0xff]  ;;  %v497_v18 = vld [vmem:[%s5047_s1 + $0xea8] sm:$0xff]  ;;  %v663_v21 = vrot.slane %v4596_v19, %v3564_v54 }
  0xc8   :  { %3181 = vmatprep.subr.bf16.mxu1 %v3180_v28  ;;  %1608 = vmatprep.mubr.f32.mxu0 %v647_v32  ;;  %v473_v28 = vld [vmem:[%s5047_s1 + $0xde8] sm:$0xff]  ;;  %v3198_v30 = vpack.c.bf16 %v455_v24, %v454_v22  ;;  %v424_v32 = vld [vmem:[%s5047_s1 + $0xc60] sm:$0xff]  ;;  %v479_v14 = vld [vmem:[%s5047_s1 + $0xe18] sm:$0xff]  ;;  %v671_v24 = vrot.slane %v4596_v19, %v3575_v58 }
  0xc9   :  { %1678 = vmatprep.mubr.f32.mxu1 %v655_v37  ;;  %v3200_v37 = vpack.c.bf16 %v473_v28, %v472_v27  ;;  %v3170_v44 = vpack.c.bf16 %v425_v35, %v424_v32  ;;  %v511_v43 = vld [vmem:[%s5047_s1 + $0xf18] sm:$0xff]  ;;  %v528_v22 = vld [vmem:[%s5047_s1 + $0xfa0] sm:$0xff]  ;;  %v3214_v25 = vpack.c.bf16 %v479_v14, %v478_v13  ;;  %v481_v28 = vld [vmem:[%s5047_s1 + $0xe28] sm:$0xff] }
  0xca   :  { %3151 = vmatpush3.bf16.msra.mxu0 %v3150_v38  ;;  %v457_v38 = vld [vmem:[%s5047_s1 + $0xd68] sm:$0xff]  ;;  %v480_v54 = vld [vmem:[%s5047_s1 + $0xe20] sm:$0xff]  ;;  %v499_v32 = vld [vmem:[%s5047_s1 + $0xeb8] sm:$0xff] }
  0xcb   :  { %3183 = vmatpush3.bf16.msra.mxu1 %v3182_v40  ;;  %3153 = vmatprep.subr.bf16.mxu0 %v3152_v41  ;;  %v442_v40 = vld [vmem:[%s5047_s1 + $0xcf0] sm:$0xff]  ;;  %v443_v41 = vld [vmem:[%s5047_s1 + $0xcf8] sm:$0xff]  ;;  %v537_v13 = vld [vmem:[%s5047_s1 + $0xfe8] sm:$0xff] }
  0xcc   :  { %3185 = vmatprep.subr.bf16.mxu1 %v3184_v11  ;;  %v3202_v11 = vpack.c.bf16 %v457_v38, %v456_v36  ;;  %v3172_v51 = vpack.c.bf16 %v443_v41, %v442_v40  ;;  %v530_v35 = vld [vmem:[%s5047_s1 + $0xfb0] sm:$0xff]  ;;  %v531_v36 = vld [vmem:[%s5047_s1 + $0xfb8] sm:$0xff] }
  0xcd   :  { %v482_v41 = vld [vmem:[%s5047_s1 + $0xe30] sm:$0xff] }
  0xce   :  { %3155 = vmatpush3.bf16.msra.mxu0 %v3154_v50  ;;  %v459_v50 = vld [vmem:[%s5047_s1 + $0xd78] sm:$0xff] }
  0xcf   :  { %3187 = vmatpush3.bf16.msra.mxu1 %v3186_v52  ;;  %3157 = vmatprep.subr.bf16.mxu0 %v3156_v53  ;;  %v492_v52 = vld [vmem:[%s5047_s1 + $0xe80] sm:$0xff]  ;;  %v493_v53 = vld [vmem:[%s5047_s1 + $0xe88] sm:$0xff] }
  0xd0   :  { %3189 = vmatprep.subr.bf16.mxu1 %v3188_v57  ;;  %v3206_v57 = vpack.c.bf16 %v459_v50, %v458_v48  ;;  %v3208_v59 = vpack.c.bf16 %v493_v53, %v492_v52  ;;  %v533_v48 = vld [vmem:[%s5047_s1 + $0xfc8] sm:$0xff]  ;;  %v484_v53 = vld [vmem:[%s5047_s1 + $0xe40] sm:$0xff] }
  0xd2   :  { %3159 = vmatpush3.bf16.msra.mxu0 %v3158_v1  ;;  %v509_v1 = vld [vmem:[%s5047_s1 + $0xf08] sm:$0xff] }
  0xd3   :  { %3191 = vmatpush3.bf16.msra.mxu1 %v3190_v2  ;;  %3161 = vmatprep.subr.bf16.mxu0 %v3160_v3  ;;  %v494_v2 = vld [vmem:[%s5047_s1 + $0xe90] sm:$0xff]  ;;  %v495_v3 = vld [vmem:[%s5047_s1 + $0xe98] sm:$0xff]  ;;  %v3242_v9 = vpack.c.bf16 %v509_v1, %v508_v63 }
  0xd4   :  { %3193 = vmatprep.subr.bf16.mxu1 %v3192_v7  ;;  %v3210_v7 = vpack.c.bf16 %v477_v62, %v476_v60  ;;  %v3212_v12 = vpack.c.bf16 %v495_v3, %v494_v2  ;;  %v503_v60 = vld [vmem:[%s5047_s1 + $0xed8] sm:$0xff]  ;;  %v534_v62 = vld [vmem:[%s5047_s1 + $0xfd0] sm:$0xff] }
  0xd5   :  { %v535_v63 = vld [vmem:[%s5047_s1 + $0xfd8] sm:$0xff]  ;;  %v486_v3 = vld [vmem:[%s5047_s1 + $0xe50] sm:$0xff] }
  0xd6   :  { %3163 = vmatpush3.bf16.msra.mxu0 %v3162_v15  ;;  %v510_v15 = vld [vmem:[%s5047_s1 + $0xf10] sm:$0xff] }
  0xd7   :  { %3195 = vmatpush3.bf16.msra.mxu1 %v3194_v16  ;;  %3165 = vmatprep.subr.bf16.mxu0 %v3164_v17  ;;  %v3244_v16 = vpack.c.bf16 %v527_v6, %v526_v5  ;;  %v496_v17 = vld [vmem:[%s5047_s1 + $0xea0] sm:$0xff]  ;;  %v3246_v26 = vpack.c.bf16 %v511_v43, %v510_v15  ;;  %v518_v5 = vld [vmem:[%s5047_s1 + $0xf50] sm:$0xff]  ;;  %v3260_v6 = vpack.c.bf16 %v535_v63, %v534_v62 }
  0xd8   :  { %3197 = vmatprep.subr.bf16.mxu1 %v3196_v23  ;;  %v529_v23 = vld [vmem:[%s5047_s1 + $0xfa8] sm:$0xff]  ;;  %v3216_v27 = vpack.c.bf16 %v497_v18, %v496_v17  ;;  %v488_v43 = vld [vmem:[%s5047_s1 + $0xe60] sm:$0xff] }
  0xd9   :  { %v3248_v58 = vpack.c.bf16 %v529_v23, %v528_v22  ;;  %v489_v17 = vld [vmem:[%s5047_s1 + $0xe68] sm:$0xff]  ;;  %v520_v18 = vld [vmem:[%s5047_s1 + $0xf60] sm:$0xff] }
  0xda   :  { %3167 = vmatpush3.bf16.msra.mxu0 %v3166_v34  ;;  %v512_v34 = vld [vmem:[%s5047_s1 + $0xf20] sm:$0xff]  ;;  %v521_v23 = vld [vmem:[%s5047_s1 + $0xf68] sm:$0xff] }
  0xdb   :  { %3199 = vmatpush3.bf16.msra.mxu1 %v3198_v30  ;;  %3169 = vmatprep.subr.bf16.mxu0 %v3168_v31  ;;  %v513_v30 = vld [vmem:[%s5047_s1 + $0xf28] sm:$0xff]  ;;  %v498_v31 = vld [vmem:[%s5047_s1 + $0xeb0] sm:$0xff] }
  0xdc   :  { %3201 = vmatprep.subr.bf16.mxu1 %v3200_v37  ;;  %v3218_v37 = vpack.c.bf16 %v481_v28, %v480_v54  ;;  %v3250_v38 = vpack.c.bf16 %v513_v30, %v512_v34  ;;  %v3220_v40 = vpack.c.bf16 %v499_v32, %v498_v31  ;;  %v538_v54 = vld [vmem:[%s5047_s1 + $0xff0] sm:$0xff]  ;;  %v539_v28 = vld [vmem:[%s5047_s1 + $0xff8] sm:$0xff]  ;;  %v3234_v30 = vpack.c.bf16 %v489_v17, %v488_v43 }
  0xdd   :  { %v3266_v32 = vpack.c.bf16 %v521_v23, %v520_v18 }
  0xde   :  { %3171 = vmatpush3.bf16.msra.mxu0 %v3170_v44  ;;  %v3252_v44 = vpack.c.bf16 %v531_v36, %v530_v35  ;;  %v490_v36 = vld [vmem:[%s5047_s1 + $0xe70] sm:$0xff] }
  0xdf   :  { %3203 = vmatpush3.bf16.msra.mxu1 %v3202_v11  ;;  %3173 = vmatprep.subr.bf16.mxu0 %v3172_v51  ;;  %v515_v11 = vld [vmem:[%s5047_s1 + $0xf38] sm:$0xff]  ;;  %v500_v51 = vld [vmem:[%s5047_s1 + $0xec0] sm:$0xff] }
  0xe0   :  { %3205 = vmatprep.subr.bf16.mxu1 %v3204_v49  ;;  %v3222_v49 = vpack.c.bf16 %v483_v10, %v482_v41  ;;  %v3254_v50 = vpack.c.bf16 %v515_v11, %v514_v42  ;;  %v3224_v52 = vpack.c.bf16 %v501_v45, %v500_v51  ;;  %v523_v41 = vld [vmem:[%s5047_s1 + $0xf78] sm:$0xff]  ;;  %v1826_v10 = vld [vmem:[%s5049_s3] sm:$0xff]  ;;  %v1827_v42 = vld [vmem:[%s5049_s3 + $0x8] sm:$0xff] }
  0xe1   :  { %v3272_v45 = vpack.c.bf16 %v1827_v42, %v1826_v10  ;;  %v3281_v42 = vmov 1966171168  }
  0xe2   :  { %3175 = vmatpush3.bf16.msra.mxu0 %v3174_v20  ;;  %v3256_v20 = vpack.c.bf16 %v533_v48, %v532_v46  ;;  %v1828_v46 = vld [vmem:[%s5049_s3 + $0x10] sm:$0xff]  ;;  %v1829_v48 = vld [vmem:[%s5049_s3 + $0x18] sm:$0xff] }
  0xe3   :  { %3207 = vmatpush3.bf16.msra.mxu1 %v3206_v57  ;;  %3209 = vmatprep.subr.bf16.mxu0 %v3208_v59  ;;  %v517_v57 = vld [vmem:[%s5047_s1 + $0xf48] sm:$0xff]  ;;  %v502_v59 = vld [vmem:[%s5047_s1 + $0xed0] sm:$0xff] }
  0xe4   :  { %3241 = vmatprep.subr.bf16.mxu1 %v3240_v0  ;;  %v3226_v0 = vpack.c.bf16 %v485_v55, %v484_v53  ;;  %v3258_v1 = vpack.c.bf16 %v517_v57, %v516_v56  ;;  %v3228_v2 = vpack.c.bf16 %v503_v60, %v502_v59  ;;  %v1824_v53 = vld [vmem:[%s5050_s2] sm:$0xff] }
  0xe5   :  { %1609 = vmatmul.mubr.f32.vlgmr.msra.gmra.mrb[12].mxu0 %v643_v4  ;;  %v487_v4 = vld [vmem:[%s5047_s1 + $0xe58] sm:$0xff] }
  0xe6   :  { %3211 = vmatpush3.bf16.msra.mxu0 %v3210_v7  ;;  %1679 = vmatmul.mubr.f32.vlgmr.msra.gmra.mrb[12].mxu1 %v651_v8  ;;  %v519_v7 = vld [vmem:[%s5047_s1 + $0xf58] sm:$0xff]  ;;  %v504_v8 = vld [vmem:[%s5047_s1 + $0xee0] sm:$0xff]  ;;  %v3230_v14 = vpack.c.bf16 %v487_v4, %v486_v3 }
  0xe7   :  { %3243 = vmatpush3.bf16.msra.mxu1 %v3242_v9  ;;  %3213 = vmatprep.subr.bf16.mxu0 %v3212_v12  ;;  %v505_v9 = vld [vmem:[%s5047_s1 + $0xee8] sm:$0xff]  ;;  %v536_v12 = vld [vmem:[%s5047_s1 + $0xfe0] sm:$0xff]  ;;  %v3262_v15 = vpack.c.bf16 %v519_v7, %v518_v5 }
  0xe8   :  { %3245 = vmatprep.subr.bf16.mxu1 %v3244_v16  ;;  %1748 = vmatprep.mubr.f32.mxu0 %v663_v21  ;;  %v3232_v16 = vpack.c.bf16 %v505_v9, %v504_v8  ;;  %v3264_v22 = vpack.c.bf16 %v537_v13, %v536_v12 }
  0xe9   :  { %1818 = vmatprep.mubr.f32.mxu1 %v671_v24  ;;  %v506_v24 = vld [vmem:[%s5047_s1 + $0xef0] sm:$0xff] }
  0xea   :  { %3215 = vmatpush3.bf16.msra.mxu0 %v3214_v25  ;;  %v507_v25 = vld [vmem:[%s5047_s1 + $0xef8] sm:$0xff] }
  0xeb   :  { %3247 = vmatpush3.bf16.msra.mxu1 %v3246_v26  ;;  %3217 = vmatprep.subr.bf16.mxu0 %v3216_v27  ;;  %v3236_v35 = vpack.c.bf16 %v507_v25, %v506_v24 }
  0xec   :  { %3249 = vmatprep.subr.bf16.mxu1 %v3248_v58 }
  0xee   :  { %3219 = vmatpush3.bf16.msra.mxu0 %v3218_v37  ;;  %v491_v37 = vld [vmem:[%s5047_s1 + $0xe78] sm:$0xff] }
  0xef   :  { %3251 = vmatpush3.bf16.msra.mxu1 %v3250_v38  ;;  %3221 = vmatprep.subr.bf16.mxu0 %v3220_v40  ;;  %v522_v38 = vld [vmem:[%s5047_s1 + $0xf70] sm:$0xff]  ;;  %v3268_v40 = vpack.c.bf16 %v539_v28, %v538_v54  ;;  %v3238_v11 = vpack.c.bf16 %v491_v37, %v490_v36 }
  0xf0   :  { %3253 = vmatprep.subr.bf16.mxu1 %v3252_v44  ;;  %v3270_v51 = vpack.c.bf16 %v523_v41, %v522_v38 }
  0xf2   :  { %3223 = vmatpush3.bf16.msra.mxu0 %v3222_v49  ;;  %v659_v49 = vrot.slane %v4596_v19, %v3746_v29  ;;  %v1825_v29 = vld [vmem:[%s5050_s2 + $0x8] sm:$0x3] }
  0xf3   :  { %3255 = vmatpush3.bf16.msra.mxu1 %v3254_v50  ;;  %3225 = vmatprep.subr.bf16.mxu0 %v3224_v52  ;;  %v667_v50 = vrot.slane %v4596_v19, %v3755_v33  ;;  %v3276_v52 = vpack.c.bf16 %v1829_v48, %v1828_v46 }
  0xf4   :  { %3257 = vmatprep.subr.bf16.mxu1 %v3256_v20 }
  0xf6   :  { %3227 = vmatpush3.bf16.msra.mxu0 %v3226_v0 }
  0xf7   :  { %3259 = vmatpush3.bf16.msra.mxu1 %v3258_v1  ;;  %3229 = vmatprep.subr.bf16.mxu0 %v3228_v2 }
  0xf8   :  { %v2215_v21 = vpop.f32.mrb[0].mxu0  ;;  %3261 = vmatprep.subr.bf16.mxu1 %v3260_v6 }
  0xf9   :  { %v2250_v26 = vpop.f32.mrb[0].mxu1  ;;  %v2216_v27 = vpop.f32.mrb[1].mxu0 }
  0xfa   :  { %v2217_v34 = vadd.f32 %v2216_v27, %v2215_v21  ;;  %v2251_v58 = vpop.f32.mrb[1].mxu1  ;;  %3231 = vmatpush3.bf16.msra.mxu0 %v3230_v14 }
  0xfb   :  { %v2252_v31 = vadd.f32 %v2251_v58, %v2250_v26  ;;  %3263 = vmatpush3.bf16.msra.mxu1 %v3262_v15  ;;  %3233 = vmatprep.subr.bf16.mxu0 %v3232_v16 }
  0xfc   :  { %3265 = vmatprep.subr.bf16.mxu1 %v3264_v22 }
  0xfd   :  { %v841_v44 = vadd.f32 %v2252_v31, %v2217_v34 }
  0xfe   :  { %3235 = vmatpush3.bf16.msra.mxu0 %v3234_v30 }
  0xff   :  { %3267 = vmatpush3.bf16.msra.mxu1 %v3266_v32  ;;  %3237 = vmatprep.subr.bf16.mxu0 %v3236_v35 }
 0x100   :  { %3269 = vmatprep.subr.bf16.mxu1 %v3268_v40 }
 0x102   :  { %3239 = vmatpush3.bf16.msra.mxu0 %v3238_v11 }
 0x103   :  { %3271 = vmatpush3.bf16.msra.mxu1 %v3270_v51  ;;  %3273 = vmatprep.subr.bf16.mxu0 %v3272_v45 }
 0x105   :  { %1749 = vmatmul.mubr.f32.vlgmr.msra.gmra.mrb[14].mxu0 %v659_v49 }
 0x106   :  { %1819 = vmatmul.mubr.f32.vlgmr.msra.gmra.mrb[14].mxu1 %v667_v50  ;;  %3275 = vmatpush3.bf16.msra.mxu0 %v3272_v45 }
 0x107   :  { %3277 = vmatprep.subr.bf16.mxu0 %v3276_v52  ;;  %2757 = vmatprep.mubr.msk.f32.mxu0 %vm1830_vm0, %v1824_v53 }
 0x10a   :  { %3279 = vmatpush3.bf16.msra.mxu0 %v3276_v52 }
 0x10d   :  { %2758 = vmatmul.mubr.msk.f32.vlgmr.msra.gmra.mrb[16].mxu0 %vm1830_vm0, %v1825_v29 }
 0x118   :  { %v2285_v33 = vpop.f32.mrb[2].mxu0 }
 0x119   :  { %v2286_v19 = vpop.f32.mrb[3].mxu0  ;;  %v2320_v55 = vpop.f32.mrb[2].mxu1 }
 0x11a   :  { %v2287_v56 = vadd.f32 %v2286_v19, %v2285_v33  ;;  %v2321_v20 = vpop.f32.mrb[3].mxu1 }
 0x11b   :  { %v2322_v57 = vadd.f32 %v2321_v20, %v2320_v55 }
 0x11c   :  { %v911_v59 = vadd.f32 %v2287_v56, %v841_v44  ;;  %v1922_v44 = vunpack.c.l.s4 %v3281_v42 }
 0x11e   :  { %v981_v60 = vadd.f32 %v2322_v57, %v911_v59  ;;  %v1923_v50 = vunpack.c.0.s8 %v1922_v44  ;;  %v1999_v44 = vld [vmem:[%s5051_s4 + $0x10] sm:$0x3] }
 0x120   :  { %v1926_v33 = vsub.s32 %v1923_v50, %v3444_v61 }
 0x138   :  { %v2355_v62 = vpop.f32.mrb[4].mxu0 }
 0x139   :  { %v2356_v63 = vpop.f32.mrb[5].mxu0  ;;  %v2390_v0 = vpop.f32.mrb[4].mxu1 }
 0x13a   :  { %v2357_v1 = vadd.f32 %v2356_v63, %v2355_v62  ;;  %v2391_v2 = vpop.f32.mrb[5].mxu1 }
 0x13b   :  { %v2392_v3 = vadd.f32 %v2391_v2, %v2390_v0  ;;  %v1991_v0 = vld [vmem:[%s5051_s4] sm:$0x3] }
 0x13c   :  { %v1051_v4 = vadd.f32 %v2357_v1, %v981_v60 }
 0x13e   :  { %v1121_v5 = vadd.f32 %v2392_v3, %v1051_v4 }
 0x158   :  { %v2425_v6 = vpop.f32.mrb[6].mxu0 }
 0x159   :  { %v2426_v7 = vpop.f32.mrb[7].mxu0  ;;  %v2460_v8 = vpop.f32.mrb[6].mxu1 }
 0x15a   :  { %v2427_v9 = vadd.f32 %v2426_v7, %v2425_v6  ;;  %v2461_v12 = vpop.f32.mrb[7].mxu1  ;;  %v1993_v6 = vld [vmem:[%s5051_s4 + $0x4] sm:$0x3]  ;;  %v1992_v7 = vld [vmem:[%s5051_s4 + $0x2] sm:$0x3] }
 0x15b   :  { %v2462_v13 = vadd.f32 %v2461_v12, %v2460_v8 }
 0x15c   :  { %v1191_v14 = vadd.f32 %v2427_v9, %v1121_v5 }
 0x15e   :  { %v1261_v15 = vadd.f32 %v2462_v13, %v1191_v14 }
 0x178   :  { %v2495_v16 = vpop.f32.mrb[8].mxu0 }
 0x179   :  { %v2496_v43 = vpop.f32.mrb[9].mxu0  ;;  %v2530_v17 = vpop.f32.mrb[8].mxu1 }
 0x17a   :  { %v2497_v18 = vadd.f32 %v2496_v43, %v2495_v16  ;;  %v2531_v21 = vpop.f32.mrb[9].mxu1 }
 0x17b   :  { %v2532_v22 = vadd.f32 %v2531_v21, %v2530_v17 }
 0x17c   :  { %v1331_v23 = vadd.f32 %v2497_v18, %v1261_v15  ;;  %v1994_v15 = vld [vmem:[%s5051_s4 + $0x6] sm:$0x3] }
 0x17e   :  { %v1401_v24 = vadd.f32 %v2532_v22, %v1331_v23 }
 0x198   :  { %v2565_v25 = vpop.f32.mrb[10].mxu0 }
 0x199   :  { %v2566_v26 = vpop.f32.mrb[11].mxu0  ;;  %v2600_v27 = vpop.f32.mrb[10].mxu1 }
 0x19a   :  { %v2567_v54 = vadd.f32 %v2566_v26, %v2565_v25  ;;  %v2601_v28 = vpop.f32.mrb[11].mxu1 }
 0x19b   :  { %v2602_v34 = vadd.f32 %v2601_v28, %v2600_v27  ;;  %v1996_v28 = vld [vmem:[%s5051_s4 + $0xa] sm:$0x3] }
 0x19c   :  { %v1471_v58 = vadd.f32 %v2567_v54, %v1401_v24  ;;  %v1995_v24 = vld [vmem:[%s5051_s4 + $0x8] sm:$0x3] }
 0x19e   :  { %v1541_v30 = vadd.f32 %v2602_v34, %v1471_v58 }
 0x1b8   :  { %v2635_v31 = vpop.f32.mrb[12].mxu0 }
 0x1b9   :  { %v2636_v32 = vpop.f32.mrb[13].mxu0  ;;  %v2670_v35 = vpop.f32.mrb[12].mxu1 }
 0x1ba   :  { %v2637_v36 = vadd.f32 %v2636_v32, %v2635_v31  ;;  %v2671_v37 = vpop.f32.mrb[13].mxu1  ;;  %v1997_v32 = vld [vmem:[%s5051_s4 + $0xc] sm:$0x3] }
 0x1bb   :  { %v2672_v38 = vadd.f32 %v2671_v37, %v2670_v35 }
 0x1bc   :  { %v1611_v40 = vadd.f32 %v2637_v36, %v1541_v30 }
 0x1be   :  { %v1681_v41 = vadd.f32 %v2672_v38, %v1611_v40  ;;  %v1998_v40 = vld [vmem:[%s5051_s4 + $0xe] sm:$0x3] }
 0x1d8   :  { %v2705_v10 = vpop.f32.mrb[14].mxu0 }
 0x1d9   :  { %v2706_v11 = vpop.f32.mrb[15].mxu0  ;;  %v2740_v51 = vpop.f32.mrb[14].mxu1 }
 0x1da   :  { %v2707_v45 = vadd.f32 %v2706_v11, %v2705_v10  ;;  %v2741_v46 = vpop.f32.mrb[15].mxu1 }
 0x1db   :  { %v2742_v48 = vadd.f32 %v2741_v46, %v2740_v51  ;;  %v2000_v46 = vld [vmem:[%s5051_s4 + $0x12] sm:$0x3] }
 0x1dc   :  { %v1751_v49 = vadd.f32 %v2707_v45, %v1681_v41 }
 0x1de   :  { %v1821_v52 = vadd.f32 %v2742_v48, %v1751_v49 }
 0x1e0   :  { %v2759_v53 = vpop.f32.mrb[16].mxu0  ;;  %v1915_v29 = vrot.slane %v1821_v52, %v3534_v39 }
 0x1e1   :  { %v1903_v19 = vpop.f32.mrb[17].mxu0 }
 0x1e2   :  { %v1917_v55 = vadd.f32 %v2759_v53, %v1915_v29  ;;  %v1916_v56 = vadd.f32 %v1915_v29, %v1903_v19 }
 0x1e4   :  { %v1920_v20 = vcombine.high %v1916_v56, %v1916_v56  ;;  %v1927_v57 = vrot.slane %v1916_v56, %v1926_v33  ;;  %v1975_v5 = vrot.slane %v1917_v55, %v1926_v33 }
 0x1e6   :  { %v1934_v59 = vrot.slane %v1920_v20, %v1926_v33  ;;  %v1935_v60 = vcombine.high %v1927_v57, %v1927_v57  ;;  %v1943_v62 = vrot.slane %v1927_v57, %v1926_v33  ;;  %v1976_v23 = vcombine.high %v1975_v5, %v1975_v5 }
 0x1e7   :  { %v1983_v34 = vrot.slane %v1975_v5, %v1926_v33 }
 0x1e8   :  { %v1936_v63 = vcombine.high %v1934_v59, %v1934_v59  ;;  %v1957_v1 = vrot.slane %v1935_v60, %v1926_v33  ;;  %v1950_v2 = vrot.slane %v1934_v59, %v1926_v33  ;;  %v2004_v3 = vrot.slane %v1943_v62, %v3534_v39 }
 0x1e9   :  { %v1965_v4 = vcombine.high %v1943_v62, %v1943_v62  ;;  %v1990_v38 = vrot.slane %v1976_v23, %v1926_v33  ;;  %v2036_v42 = vrot.slane %v1983_v34, %v3534_v39 }
 0x1ea   :  { %v2008_v8 = vrot.slane %v1957_v1, %v3534_v39  ;;  %v1967_v9 = vcombine.high %v1957_v1, %v1957_v1  ;;  %v2051_v12 = vmul.f32 %v2004_v3, %v1991_v0  ;;  %v1964_v14 = vrot.slane %v1936_v63, %v1926_v33 }
 0x1eb   :  { %v2012_v13 = vrot.slane %v1965_v4, %v3534_v39  ;;  %v2020_v43 = vrot.slane %v1950_v2, %v3534_v39  ;;  %v1966_v22 = vcombine.high %v1950_v2, %v1950_v2  ;;  %v2040_v45 = vrot.slane %v1990_v38, %v3534_v39 }
 0x1ec   :  { %v2016_v16 = vrot.slane %v1967_v9, %v3534_v39  ;;  %v2062_v17 = vsel %vm2061_vm1, %v2051_v12, 0.0  ;;  %v2052_v21 = vmul.f32 %v2008_v8, %v1992_v7  ;;  %v2024_v27 = vrot.slane %v1964_v14, %v3534_v39 }
 0x1ed   :  { %v2053_v18 = vmul.f32 %v2012_v13, %v1993_v6  ;;  %2063 = vadd.xlane.f32.xlu0 %v2062_v17  ;;  %v1968_v54 = vcombine.high %v1964_v14, %v1964_v14  ;;  %v2055_v30 = vmul.f32 %v2020_v43, %v1995_v24  ;;  %v2028_v31 = vrot.slane %v1966_v22, %v3534_v39 }
 0x1ee   :  { %v2054_v26 = vmul.f32 %v2016_v16, %v1994_v15  ;;  %v2065_v58 = vsel %vm2061_vm1, %v2052_v21, 0.0  ;;  %v2056_v36 = vmul.f32 %v2024_v27, %v1996_v28  ;;  %v2059_v49 = vmul.f32 %v2036_v42, %v1999_v44 }
 0x1ef   :  { %v2068_v25 = vsel %vm2061_vm1, %v2053_v18, 0.0  ;;  %v2032_v37 = vrot.slane %v1968_v54, %v3534_v39  ;;  %v2074_v41 = vsel %vm2061_vm1, %v2055_v30, 0.0  ;;  %v2057_v10 = vmul.f32 %v2028_v31, %v1997_v32 }
 0x1f0   :  { %2069 = vadd.xlane.f32.xlu1 %v2068_v25  ;;  %v2071_v35 = vsel %vm2061_vm1, %v2054_v26, 0.0  ;;  %v2077_v11 = vsel %vm2061_vm1, %v2056_v36, 0.0  ;;  %v2060_v52 = vmul.f32 %v2040_v45, %v2000_v46  ;;  %v2086_v53 = vsel %vm2061_vm1, %v2059_v49, 0.0 }
 0x1f1   :  { %2066 = vadd.xlane.f32.xlu0 %v2065_v58  ;;  %v2058_v51 = vmul.f32 %v2032_v37, %v1998_v40  ;;  %v2080_v48 = vsel %vm2061_vm1, %v2057_v10, 0.0  ;;  %v2115_v39 = vand.u32 127, %v544_v47  ;;  %v2093_v33 = vstv %s5052_s5 }
 0x1f2   :  { %v2089_v29 = vsel %vm2061_vm1, %v2060_v52, 0.0 }
 0x1f3   :  { %v2083_v50 = vsel %vm2061_vm1, %v2058_v51, 0.0  ;;  %v2118_v56 = vsub.s32 %v2115_v39, %v3444_v61 }
 0x1f4   :  { %2072 = vadd.xlane.f32.xlu1 %v2071_v35 }
 0x1f5   :  { %2075 = vadd.xlane.f32.xlu0 %v2074_v41 }
 0x1f8   :  { %2078 = vadd.xlane.f32.xlu1 %v2077_v11 }
 0x1f9   :  { %2081 = vadd.xlane.f32.xlu0 %v2080_v48 }
 0x1fc   :  { %2084 = vadd.xlane.f32.xlu1 %v2083_v50 }
 0x1fd   :  { %2087 = vadd.xlane.f32.xlu0 %v2086_v53 }
 0x200   :  { %2090 = vadd.xlane.f32.xlu1 %v2089_v29 }
 0x27a   :  { %v2064_v19 = vpop.xlane.xlu0 %2063 }
 0x27b   :  { %v2094_v20 = vadd.f32 %v2093_v33, %v2064_v19 }
 0x27d   :  { %v2070_v55 = vpop.xlane.xlu1 %2069  ;;  %v2119_v63 = vrot.slane %v2094_v20, %v2118_v56 }
 0x27e   :  { %v2096_v57 = vadd.f32 %v2093_v33, %v2070_v55  ;;  %v2067_v59 = vpop.xlane.xlu0 %2066 }
 0x27f   :  { %v2095_v60 = vadd.f32 %v2093_v33, %v2067_v59 }
 0x280   :  { %v2127_v2 = vrot.slane %v2096_v57, %v2118_v56 }
 0x281   :  { %v2073_v62 = vpop.xlane.xlu1 %2072  ;;  %v2123_v0 = vrot.slane %v2095_v60, %v2118_v56 }
 0x282   :  { %v2097_v1 = vadd.f32 %v2093_v33, %v2073_v62  ;;  %v2076_v47 = vpop.xlane.xlu0 %2075 }
 0x283   :  { %v2157_v3 = vsel %vm2156_vm2, %v2123_v0, %v2119_v63  ;;  %v2098_v5 = vadd.f32 %v2093_v33, %v2076_v47 }
 0x284   :  { %v2131_v4 = vrot.slane %v2097_v1, %v2118_v56  ;;  %v2159_v6 = vsel %vm2158_vm3, %v2127_v2, %v2157_v3 }
 0x285   :  { %v2079_v61 = vpop.xlane.xlu1 %2078  ;;  %v2135_v8 = vrot.slane %v2098_v5, %v2118_v56 }
 0x286   :  { %v2161_v7 = vsel %vm2160_vm4, %v2131_v4, %v2159_v6  ;;  %v2099_v9 = vadd.f32 %v2093_v33, %v2079_v61  ;;  %v2082_v12 = vpop.xlane.xlu0 %2081 }
 0x287   :  { %v2163_v13 = vsel %vm2162_vm5, %v2135_v8, %v2161_v7  ;;  %v2100_v15 = vadd.f32 %v2093_v33, %v2082_v12 }
 0x288   :  { %v2139_v14 = vrot.slane %v2099_v9, %v2118_v56 }
 0x289   :  { %v2085_v16 = vpop.xlane.xlu1 %2084  ;;  %v2143_v17 = vrot.slane %v2100_v15, %v2118_v56 }
 0x28a   :  { %v2165_v43 = vsel %vm2164_vm6, %v2139_v14, %v2163_v13  ;;  %v2101_v18 = vadd.f32 %v2093_v33, %v2085_v16  ;;  %v2088_v21 = vpop.xlane.xlu0 %2087 }
 0x28b   :  { %v2167_v22 = vsel %vm2166_vm7, %v2143_v17, %v2165_v43  ;;  %v2102_v24 = vadd.f32 %v2093_v33, %v2088_v21 }
 0x28c   :  { %v2147_v23 = vrot.slane %v2101_v18, %v2118_v56 }
 0x28d   :  { %v2091_v25 = vpop.xlane.xlu1 %2090  ;;  %v2151_v54 = vrot.slane %v2102_v24, %v2118_v56 }
 0x28e   :  { %v2169_v26 = vsel %vm2168_vm8, %v2147_v23, %v2167_v22  ;;  %v2103_v27 = vadd.f32 %v2093_v33, %v2091_v25 }
 0x28f   :  { %2174 = vst.msk [vmem:[%s5053_s6] sm:$0xff] %vm2173_vm9, %v2169_v26 }
 0x290   :  { %v2155_v28 = vrot.slane %v2103_v27, %v2118_v56 }
 0x292   :  { %v2170_v34 = vsel %vm2156_vm2, %v2155_v28, %v2151_v54 }
 0x293   :  { %2176 = vst.msk [vmem:[%s5053_s6 + $0x8] sm:$0x3] %vm2175_vm10, %v2170_v34 }

// kernel: baseline_forward.2
= control target key start
LH: loop header
LB: loop body
LE: loop exit
PB: predicated region body
PF: predicated region fallthrough
CT: control target
= control target key end

     0   :  { %s4831_s24 = smov 0   ;;  %s5842_s0 = inlined_call_operand.vmem [shape: s32[2,24,1], index: 0, kind: input, shape index: {}]   ;;  %s5843_s1 = inlined_call_operand.vmem [shape: f32[2,192,32], index: 1, kind: input, shape index: {}]   ;;  %s5844_s2 = inlined_call_operand.vmem [shape: f32[2,32,384], index: 2, kind: input, shape index: {}]   ;;  %s5845_s3 = inlined_call_operand.vmem [shape: f32[2,128,384], index: 3, kind: input, shape index: {}]   ;;  %s5846_s4 = inlined_call_operand.vmem [shape: f32[2,1,256], index: 4, kind: input, shape index: {}]   ;;  %s5847_s5 = inlined_call_operand.vmem [shape: f32[2,1,128], index: 5, kind: input, shape index: {}]   ;;  %s5848_s6 = inlined_call_operand.vmem [shape: f32[2,1,128], index: 6, kind: input, shape index: {}]   ;;  %s5849_s7 = inlined_call_operand.vmem [shape: f32[2,24,32], index: 7, kind: output, shape index: {}]  }
   0x1 LB: > { %s3335_s25 = sadd.s32 4294967295, %s4785_s24   ;;  %p3339_p0 = scmp.ge.s32.totalorder %s4785_s24, 1  ;;  %s4785_s24 = sphi %s4831_s24, %s17_s24  }
   0x2   : > { %p292_p1 = scmp.lt.s32.totalorder %s4785_s24, 3 }
   0x4   : > { %p293_p2 = pnand %p3339_p0, %p292_p1 }
   0x6   : > { %296 = sbr.rel (%p293_p2) target bundleno = 2194 (0x892), region = 48 }
   0xd   : > { %p349_p3 = scmp.lt.s32.totalorder %s3335_s25, 1  ;;  %v5852_v0 = vmov 0.0   ;;  %v4788_v1 = vmov 0   ;;  %vm474_vm0 = vcmask 261120  }
   0xe   : > { %611 = vmatprep.mubr.f32.mxu0 %v5852_v0  ;;  %719 = vmatprep.mubr.f32.mxu1 %v5852_v0 }
   0xf   : > { %s5897_s25 = smov (!%p349_p3, %s3335_s25), 1  ;;  %4536 = vset.pattern.permute.xlu0 %v4788_v1  ;;  %4537 = vset.pattern.permute.xlu1 %v4788_v1 }
  0x10   : > { %s4522_s26 = smul.u32 96, %s5897_s25  ;;  %s375_s21 = scalar_lea.vmem %s5847_s5, %s5897_s25 }
  0x11   : > { %s4523_s27 = smul.u32 384, %s5897_s25  ;;  %s3344_s22 = sshll.u32 %s5897_s25, 1 }
  0x12   : > { %s4850_s30 = scalar_lea.vmem %s5844_s2, %s4522_s26  ;;  %s4521_s11 = smul.u32 192, %s5897_s25 }
  0x13   : > { %s4855_s10 = scalar_lea.vmem %s5845_s3, %s4523_s27  ;;  %v463_v2 = vld [vmem:[%s4850_s30 + $0x8] sm:$0xff]  ;;  %v466_v3 = vld [vmem:[%s4850_s30 + $0x20] sm:$0xff]  ;;  %v465_v6 = vld [vmem:[%s4850_s30 + $0x18] sm:$0xff]  ;;  %s4520_s15 = smul.u32 24, %s5897_s25 }
  0x14   : > { %v4004_v4 = vpack.c.bf16 %v466_v3, %v463_v2  ;;  %v462_v5 = vld [vmem:[%s4850_s30] sm:$0xff]  ;;  %v469_v8 = vld [vmem:[%s4850_s30 + $0x38] sm:$0xff]  ;;  %v472_v9 = vld [vmem:[%s4850_s30 + $0x50] sm:$0xff]  ;;  %s4871_s14 = scalar_lea.vmem %s5843_s1, %s4521_s11  ;;  %v5850_v3 = vmov 0.0|0.0   ;;  %s372_s27 = scalar_lea.vmem %s5846_s4, %s3344_s22 }
  0x15   : > { %v4006_v7 = vpack.c.bf16 %v465_v6, %v462_v5  ;;  %v468_v10 = vld [vmem:[%s4850_s30 + $0x30] sm:$0xff]  ;;  %v4008_v11 = vpack.c.bf16 %v472_v9, %v469_v8  ;;  %v471_v12 = vld [vmem:[%s4850_s30 + $0x48] sm:$0xff]  ;;  %v391_v14 = vld [vmem:[%s4855_s10 + $0x20] sm:$0xff]  ;;  %s353_s18 = scalar_lea.vmem %s5842_s0, %s4520_s15 }
  0x16   : > { %4005 = vmatprep.subr.bf16.mxu0 %v4004_v4  ;;  %v388_v13 = vld [vmem:[%s4855_s10 + $0x8] sm:$0xff]  ;;  %4468 = vmatprep.subr.bf16.mxu1 %v4004_v4  ;;  %v4010_v15 = vpack.c.bf16 %v471_v12, %v468_v10  ;;  %v387_v17 = vld [vmem:[%s4855_s10] sm:$0xff]  ;;  %v390_v18 = vld [vmem:[%s4855_s10 + $0x18] sm:$0xff] }
  0x17   : > { %4007 = vmatpush1.bf16.msra.mxu0 %v4006_v7  ;;  %4470 = vmatpush1.bf16.msra.mxu1 %v4006_v7  ;;  %v4873_v16 = vpack.c.bf16 %v391_v14, %v388_v13  ;;  %v394_v19 = vld [vmem:[%s4855_s10 + $0x38] sm:$0xff]  ;;  %v397_v20 = vld [vmem:[%s4855_s10 + $0x50] sm:$0xff]  ;;  %v4880_v21 = vld [vmem:[%s4871_s14] sm:$0xff]  ;;  %v4882_v22 = vpack.c.bf16 %v390_v18, %v387_v17 }
  0x18   : > { %4009 = vmatprep.subr.bf16.mxu0 %v4008_v11  ;;  %4469 = vmatprep.subr.bf16.mxu1 %v4008_v11  ;;  %v393_v23 = vld [vmem:[%s4855_s10 + $0x30] sm:$0xff]  ;;  %v4889_v25 = vpack.c.bf16 %v397_v20, %v394_v19  ;;  %v396_v26 = vld [vmem:[%s4855_s10 + $0x48] sm:$0xff]  ;;  %v403_v30 = vld [vmem:[%s4855_s10 + $0x80] sm:$0xff] }
  0x19   : > { %v4886_v24 = vld [vmem:[%s4871_s14 + $0x90] sm:$0xff]  ;;  %v467_v28 = vld [vmem:[%s4850_s30 + $0x28] sm:$0xff]  ;;  %v4905_v33 = vpack.c.bf16 %v396_v26, %v393_v23  ;;  %v4908_v34 = vld [vmem:[%s4871_s14 + $0x98] sm:$0xff] }
  0x1a   : > { %v464_v27 = vld [vmem:[%s4850_s30 + $0x10] sm:$0xff]  ;;  %v400_v29 = vld [vmem:[%s4855_s10 + $0x68] sm:$0xff]  ;;  %v399_v36 = vld [vmem:[%s4855_s10 + $0x60] sm:$0xff] }
  0x1b   : > { %4011 = vmatpush1.bf16.msra.mxu0 %v4010_v15  ;;  %4471 = vmatpush1.bf16.msra.mxu1 %v4010_v15  ;;  %v4012_v31 = vpack.c.bf16 %v467_v28, %v464_v27  ;;  %v4903_v32 = vld [vmem:[%s4871_s14 + $0x8] sm:$0xff]  ;;  %v4911_v35 = vpack.c.bf16 %v403_v30, %v400_v29  ;;  %v402_v37 = vld [vmem:[%s4855_s10 + $0x78] sm:$0xff]  ;;  %v409_v39 = vld [vmem:[%s4855_s10 + $0xb0] sm:$0xff] }
  0x1c   : > { %4021 = vmatprep.subr.bf16.mxu0 %v4873_v16  ;;  %v406_v38 = vld [vmem:[%s4855_s10 + $0x98] sm:$0xff]  ;;  %v470_v40 = vld [vmem:[%s4850_s30 + $0x40] sm:$0xff]  ;;  %v4926_v43 = vld [vmem:[%s4871_s14 + $0x10] sm:$0xff]  ;;  %v4929_v44 = vpack.c.bf16 %v402_v37, %v399_v36 }
  0x1d   : > { %4013 = vmatprep.subr.bf16.mxu1 %v4012_v31  ;;  %v473_v41 = vld [vmem:[%s4850_s30 + $0x58] sm:$0xff]  ;;  %v4932_v45 = vld [vmem:[%s4871_s14 + $0xa0] sm:$0xff]  ;;  %v4935_v46 = vpack.c.bf16 %v409_v39, %v406_v38  ;;  %v405_v47 = vld [vmem:[%s4855_s10 + $0x90] sm:$0xff]  ;;  %s5351_s30 = scalar_lea.vmem %s5848_s6, %s5897_s25 }
  0x1e   : > { %3346 = vmatmul.mubr.msk.f32.vlgmr.msra.gmra.mrb[0].mxu0 %vm474_vm0, %v4880_v21  ;;  %3364 = vmatmul.mubr.msk.f32.vlgmr.msra.gmra.mrb[0].mxu1 %vm474_vm0, %v4886_v24  ;;  %v4016_v42 = vpack.c.bf16 %v473_v41, %v470_v40  ;;  %v408_v48 = vld [vmem:[%s4855_s10 + $0xa8] sm:$0xff]  ;;  %v415_v50 = vld [vmem:[%s4855_s10 + $0xe0] sm:$0xff]  ;;  %v4948_v51 = vld [vmem:[%s4871_s14 + $0x18] sm:$0xff] }
  0x1f   : > { %4023 = vmatpush1.bf16.msra.mxu0 %v4882_v22  ;;  %617 = vmatprep.mubr.f32.mxu0 %v5852_v0  ;;  %v412_v49 = vld [vmem:[%s4855_s10 + $0xc8] sm:$0xff]  ;;  %v4951_v52 = vpack.c.bf16 %v408_v48, %v405_v47  ;;  %v411_v55 = vld [vmem:[%s4855_s10 + $0xc0] sm:$0xff]  ;;  %v414_v56 = vld [vmem:[%s4855_s10 + $0xd8] sm:$0xff] }
  0x20   : > { %4025 = vmatprep.subr.bf16.mxu0 %v4889_v25  ;;  %4015 = vmatpush3.bf16.msra.mxu1 %v4012_v31  ;;  %v4954_v53 = vld [vmem:[%s4871_s14 + $0xa8] sm:$0xff]  ;;  %v4958_v54 = vpack.c.bf16 %v415_v50, %v412_v49  ;;  %v418_v57 = vld [vmem:[%s4855_s10 + $0xf8] sm:$0xff]  ;;  %v421_v58 = vld [vmem:[%s4855_s10 + $0x110] sm:$0xff]  ;;  %v4974_v60 = vpack.c.bf16 %v414_v56, %v411_v55 }
  0x21   : > { %725 = vmatprep.mubr.f32.mxu1 %v5852_v0  ;;  %4017 = vmatprep.subr.bf16.mxu1 %v4016_v42  ;;  %v4971_v59 = vld [vmem:[%s4871_s14 + $0x20] sm:$0xff]  ;;  %v4977_v61 = vld [vmem:[%s4871_s14 + $0xb0] sm:$0xff]  ;;  %v4986_v62 = vpack.c.bf16 %v421_v58, %v418_v57  ;;  %v420_v2 = vld [vmem:[%s4855_s10 + $0x108] sm:$0xff] }
  0x22   : > { %3347 = vmatmul.mubr.msk.f32.gmra.mrb[2].mxu0 %vm474_vm0, %v4903_v32  ;;  %3365 = vmatmul.mubr.msk.f32.gmra.mrb[2].mxu1 %vm474_vm0, %v4908_v34  ;;  %v417_v63 = vld [vmem:[%s4855_s10 + $0xf0] sm:$0xff]  ;;  %v424_v4 = vld [vmem:[%s4855_s10 + $0x128] sm:$0xff]  ;;  %v427_v5 = vld [vmem:[%s4855_s10 + $0x140] sm:$0xff] }
  0x23   : > { %623 = vmatprep.mubr.f32.mxu0 %v5852_v0  ;;  %4027 = vmatpush1.bf16.msra.mxu0 %v4905_v33  ;;  %v4996_v6 = vld [vmem:[%s4871_s14 + $0x28] sm:$0xff]  ;;  %v5000_v7 = vld [vmem:[%s353_s18] sm:$0xff]  ;;  %v5005_v8 = vld [vmem:[%s4871_s14 + $0xb8] sm:$0xff]  ;;  %v5007_v9 = vpack.c.bf16 %v420_v2, %v417_v63  ;;  %v5018_v14 = vpack.c.bf16 %v427_v5, %v424_v4 }
  0x24   : > { %4029 = vmatprep.subr.bf16.mxu0 %v4911_v35  ;;  %731 = vmatprep.mubr.f32.mxu1 %v5852_v0  ;;  %vm1286_vm1 = vcmp.gt.s32.totalorder %v5000_v7, 0  ;;  %v5010_v10 = vld [vmem:[%s353_s18 + $0x8] sm:$0xff]  ;;  %v5012_v11 = vld [vmem:[%s353_s18 + $0x10] sm:$0xff]  ;;  %v423_v17 = vld [vmem:[%s4855_s10 + $0x120] sm:$0xff]  ;;  %vm1557_vm5 = vcmp.gt.s32.totalorder %v5000_v7, 1  ;;  %vm1828_vm6 = vcmp.gt.s32.totalorder %v5000_v7, 2 }
  0x25   : > { %4019 = vmatpush3.bf16.msra.mxu1 %v4016_v42  ;;  %v389_v12 = vld [vmem:[%s4855_s10 + $0x10] sm:$0xff]  ;;  %v392_v13 = vld [vmem:[%s4855_s10 + $0x28] sm:$0xff]  ;;  %v1289_v15 = vsel %vm1286_vm1, 1, %v4788_v1  ;;  %vm1287_vm2 = vcmp.gt.s32.totalorder %v5010_v10, 0  ;;  %vm1288_vm3 = vcmp.gt.s32.totalorder %v5012_v11, 0  ;;  %v426_v18 = vld [vmem:[%s4855_s10 + $0x138] sm:$0xff] }
  0x26   : > { %3348 = vmatmul.mubr.msk.f32.gmra.mrb[4].mxu0 %vm474_vm0, %v4926_v43  ;;  %3366 = vmatmul.mubr.msk.f32.gmra.mrb[4].mxu1 %vm474_vm0, %v4932_v45  ;;  %v430_v19 = vld [vmem:[%s4855_s10 + $0x158] sm:$0xff]  ;;  %v433_v20 = vld [vmem:[%s4855_s10 + $0x170] sm:$0xff]  ;;  %v1290_v23 = vsel %vm1287_vm2, 1, %v4788_v1  ;;  %v1291_v26 = vsel %vm1288_vm3, 1, %v4788_v1  ;;  %v5036_v28 = vpack.c.bf16 %v392_v13, %v389_v12  ;;  %v5041_v29 = vpack.c.bf16 %v426_v18, %v423_v17  ;;  %v395_v30 = vld [vmem:[%s4855_s10 + $0x40] sm:$0xff] }
  0x27   : > { %629 = vmatprep.mubr.f32.mxu0 %v5852_v0  ;;  %4031 = vmatpush1.bf16.msra.mxu0 %v4929_v44  ;;  %v444_v27 = vld [vmem:[%s4871_s14 + $0x30] sm:$0xff]  ;;  %v398_v31 = vld [vmem:[%s4855_s10 + $0x58] sm:$0xff]  ;;  %v5045_v36 = vpack.c.bf16 %v433_v20, %v430_v19  ;;  %v432_v38 = vld [vmem:[%s4855_s10 + $0x168] sm:$0xff]  ;;  %vm1558_vm4 = vcmp.gt.s32.totalorder %v5010_v10, 1  ;;  %v1560_v50 = vsel %vm1557_vm5, 1, %v4788_v1  ;;  %vm1559_vm7 = vcmp.gt.s32.totalorder %v5012_v11, 1 }
  0x28   : > { %4033 = vmatprep.subr.bf16.mxu0 %v4935_v46  ;;  %737 = vmatprep.mubr.f32.mxu1 %v5852_v0  ;;  %v429_v37 = vld [vmem:[%s4855_s10 + $0x150] sm:$0xff]  ;;  %v5059_v39 = vpack.c.bf16 %v398_v31, %v395_v30  ;;  %v404_v41 = vld [vmem:[%s4855_s10 + $0x88] sm:$0xff]  ;;  %v1561_v42 = vsel %vm1558_vm4, 1, %v4788_v1  ;;  %v407_v48 = vld [vmem:[%s4855_s10 + $0xa0] sm:$0xff]  ;;  %vm1830_vm8 = vcmp.gt.s32.totalorder %v5012_v11, 2  ;;  %vm1829_vm9 = vcmp.gt.s32.totalorder %v5010_v10, 2 }
  0x29   : > { %4052 = vmatprep.subr.bf16.mxu1 %v5850_v3  ;;  %1293 = vperm.xlu0 %4536, %v1289_v15   ;;  %v5061_v40 = vpack.c.bf16 %v432_v38, %v429_v37  ;;  %v410_v49 = vld [vmem:[%s4855_s10 + $0xb8] sm:$0xff]  ;;  %v447_v55 = vld [vmem:[%s4871_s14 + $0x48] sm:$0xff]  ;;  %v413_v57 = vld [vmem:[%s4855_s10 + $0xd0] sm:$0xff]  ;;  %v1833_v63 = vsel %vm1830_vm8, 1, %v4788_v1  ;;  %vm2100_vm10 = vcmp.gt.s32.totalorder %v5010_v10, 3  ;;  %v1832_v12 = vsel %vm1829_vm9, 1, %v4788_v1 }
  0x2a   : > { %3349 = vmatmul.mubr.msk.f32.gmra.mrb[6].mxu0 %vm474_vm0, %v4948_v51  ;;  %3367 = vmatmul.mubr.msk.f32.gmra.mrb[6].mxu1 %vm474_vm0, %v4954_v53  ;;  %v5095_v56 = vpack.c.bf16 %v410_v49, %v407_v48  ;;  %v416_v58 = vld [vmem:[%s4855_s10 + $0xe8] sm:$0xff]  ;;  %v448_v2 = vld [vmem:[%s4871_s14 + $0x50] sm:$0xff]  ;;  %v419_v5 = vld [vmem:[%s4855_s10 + $0x100] sm:$0xff]  ;;  %v2103_v13 = vsel %vm2100_vm10, 1, %v4788_v1  ;;  %vm2099_vm11 = vcmp.gt.s32.totalorder %v5000_v7, 3  ;;  %vm2370_vm12 = vcmp.gt.s32.totalorder %v5000_v7, 4 }
  0x2b   : > { %635 = vmatprep.mubr.f32.mxu0 %v5852_v0  ;;  %4035 = vmatpush1.bf16.msra.mxu0 %v4951_v52  ;;  %v5110_v4 = vpack.c.bf16 %v416_v58, %v413_v57  ;;  %v449_v15 = vld [vmem:[%s4871_s14 + $0x58] sm:$0xff]  ;;  %v425_v18 = vld [vmem:[%s4855_s10 + $0x130] sm:$0xff]  ;;  %v428_v19 = vld [vmem:[%s4855_s10 + $0x148] sm:$0xff]  ;;  %v2102_v20 = vsel %vm2099_vm11, 1, %v4788_v1  ;;  %vm2101_vm13 = vcmp.gt.s32.totalorder %v5012_v11, 3  ;;  %vm2372_vm14 = vcmp.gt.s32.totalorder %v5012_v11, 4 }
  0x2c   : > { %4037 = vmatprep.subr.bf16.mxu0 %v4958_v54  ;;  %743 = vmatprep.mubr.f32.mxu1 %v5852_v0  ;;  %v451_v30 = vld [vmem:[%s4871_s14 + $0x68] sm:$0xff]  ;;  %v431_v31 = vld [vmem:[%s4855_s10 + $0x160] sm:$0xff]  ;;  %v434_v37 = vld [vmem:[%s4855_s10 + $0x178] sm:$0xff]  ;;  %v2104_v38 = vsel %vm2101_vm13, 1, %v4788_v1  ;;  %vm2371_vm15 = vcmp.gt.s32.totalorder %v5010_v10, 4  ;;  %vm2642_vm1 = vcmp.gt.s32.totalorder %v5010_v10, 5 }
  0x2d   : > { %1296 = vperm.xlu0 %4536, %v1290_v23   ;;  %1299 = vperm.xlu1 %4537, %v1291_v26   ;;  %v450_v23 = vld [vmem:[%s4871_s14 + $0x60] sm:$0xff]  ;;  %v2373_v26 = vsel %vm2370_vm12, 1, %v4788_v1  ;;  %v2645_v49 = vsel %vm2642_vm1, 1, %v4788_v1  ;;  %vm2641_vm2 = vcmp.gt.s32.totalorder %v5000_v7, 5  ;;  %vm2912_vm3 = vcmp.gt.s32.totalorder %v5000_v7, 6 }
  0x2e   : > { %3350 = vmatmul.mubr.msk.f32.gmra.mrb[8].mxu0 %vm474_vm0, %v4971_v59  ;;  %3368 = vmatmul.mubr.msk.f32.gmra.mrb[8].mxu1 %vm474_vm0, %v4977_v61  ;;  %v454_v48 = vld [vmem:[%s4871_s14 + $0x80] sm:$0xff]  ;;  %vm2643_vm4 = vcmp.gt.s32.totalorder %v5012_v11, 5  ;;  %vm2914_vm5 = vcmp.gt.s32.totalorder %v5012_v11, 6  ;;  %vm3183_vm8 = vcmp.gt.s32.totalorder %v5000_v7, 7  ;;  %vm3185_vm9 = vcmp.gt.s32.totalorder %v5012_v11, 7 }
  0x2f   : > { %641 = vmatprep.mubr.f32.mxu0 %v5852_v0  ;;  %4039 = vmatpush1.bf16.msra.mxu0 %v4974_v60  ;;  %v2646_v57 = vsel %vm2643_vm4, 1, %v4788_v1  ;;  %v2917_v58 = vsel %vm2914_vm5, 1, %v4788_v1  ;;  %vm4790_vm10 = vmmov 0  }
  0x30   : > { %749 = vmatprep.mubr.f32.mxu1 %v5852_v0  ;;  %4041 = vmatprep.subr.bf16.mxu0 %v4986_v62 }
  0x31   : > { %1567 = vperm.xlu0 %4536, %v1561_v42   ;;  %1564 = vperm.xlu1 %4537, %v1560_v50   ;;  %v453_v42 = vld [vmem:[%s4871_s14 + $0x78] sm:$0xff]  ;;  %v455_v50 = vld [vmem:[%s4871_s14 + $0x88] sm:$0xff] }
  0x32   : > { %3351 = vmatmul.mubr.msk.f32.gmra.mrb[10].mxu0 %vm474_vm0, %v4996_v6  ;;  %3369 = vmatmul.mubr.msk.f32.gmra.mrb[10].mxu1 %vm474_vm0, %v5005_v8 }
  0x33   : > { %647 = vmatprep.mubr.f32.mxu0 %v5852_v0  ;;  %4043 = vmatpush1.bf16.msra.mxu0 %v5007_v9 }
  0x34   : > { %3640 = vmatprep.mubr.msk.f32.mxu1 %vm474_vm0, %v4880_v21  ;;  %4045 = vmatprep.subr.bf16.mxu0 %v5018_v14  ;;  %v445_v21 = vld [vmem:[%s4871_s14 + $0x38] sm:$0xff] }
  0x36   : > { %3352 = vmatmul.mubr.msk.f32.gmra.mrb[12].mxu0 %vm474_vm0, %v444_v27  ;;  %3641 = vmatmul.mubr.msk.f32.vlgmr.msra.gmra.mrb[12].mxu1 %vm474_vm0, %v4903_v32  ;;  %v401_v32 = vld [vmem:[%s4855_s10 + $0x70] sm:$0xff] }
  0x37   : > { %653 = vmatprep.mubr.f32.mxu0 %v5852_v0  ;;  %4054 = vmatpush3.bf16.msra.mxu1 %v5036_v28  ;;  %v5078_v47 = vpack.c.bf16 %v404_v41, %v401_v32  ;;  %v2375_v32 = vsel %vm2372_vm14, 1, %v4788_v1  ;;  %v5156_v41 = vpack.c.bf16 %v434_v37, %v431_v31 }
  0x38   : > { %3643 = vmatprep.mubr.msk.f32.mxu1 %vm474_vm0, %v4926_v43  ;;  %4047 = vmatpush1.bf16.msra.mxu0 %v5041_v29  ;;  %v446_v43 = vld [vmem:[%s4871_s14 + $0x40] sm:$0xff] }
  0x39   : > { %4055 = vmatprep.subr.bf16.mxu1 %v5850_v3  ;;  %4049 = vmatprep.subr.bf16.mxu0 %v5045_v36 }
  0x3a   : > { %3353 = vmatmul.mubr.msk.f32.gmra.mrb[14].mxu0 %vm474_vm0, %v445_v21  ;;  %3644 = vmatmul.mubr.msk.f32.gmra.mrb[14].mxu1 %vm474_vm0, %v4948_v51  ;;  %v1831_v51 = vsel %vm1828_vm6, 1, %v4788_v1  ;;  %vm2913_vm6 = vcmp.gt.s32.totalorder %v5010_v10, 6 }
  0x3b   : > { %659 = vmatprep.mubr.f32.mxu0 %v5852_v0  ;;  %3646 = vmatprep.mubr.msk.f32.mxu1 %vm474_vm0, %v4971_v59  ;;  %v1562_v59 = vsel %vm1559_vm7, 1, %v4788_v1  ;;  %vm3184_vm7 = vcmp.gt.s32.totalorder %v5010_v10, 7 }
  0x3c   : > { %4057 = vmatpush3.bf16.msra.mxu1 %v5059_v39  ;;  %4051 = vmatpush1.bf16.msra.mxu0 %v5061_v40 }
  0x3d   : > { %4058 = vmatprep.subr.bf16.mxu1 %v5850_v3  ;;  %1835 = vperm.xlu0 %4536, %v1831_v51   ;;  %v2644_v51 = vsel %vm2641_vm2, 1, %v4788_v1 }
  0x3e   : > { %3354 = vmatmul.mubr.msk.f32.gmra.mrb[16].mxu0 %vm474_vm0, %v446_v43  ;;  %3647 = vmatmul.mubr.msk.f32.gmra.mrb[16].mxu1 %vm474_vm0, %v4996_v6  ;;  %v422_v6 = vld [vmem:[%s4855_s10 + $0x118] sm:$0xff]  ;;  %s383_s10 = scalar_lea.vmem %s5849_s7, %s4520_s15 }
  0x3f   : > { %665 = vmatprep.mubr.f32.mxu0 %v5852_v0  ;;  %3649 = vmatprep.mubr.msk.f32.mxu1 %vm474_vm0, %v444_v27  ;;  %v5125_v17 = vpack.c.bf16 %v422_v6, %v419_v5  ;;  %v5140_v27 = vpack.c.bf16 %v428_v19, %v425_v18 }
  0x40   : > { %4060 = vmatpush3.bf16.msra.mxu1 %v5078_v47  ;;  %1570 = vperm.xlu1 %4537, %v1562_v59  }
  0x41   : > { %4061 = vmatprep.subr.bf16.mxu1 %v5850_v3  ;;  %1841 = vperm.xlu0 %4536, %v1833_v63  }
  0x42   : > { %3355 = vmatmul.mubr.msk.f32.gmra.mrb[18].mxu0 %vm474_vm0, %v447_v55  ;;  %3650 = vmatmul.mubr.msk.f32.gmra.mrb[18].mxu1 %vm474_vm0, %v445_v21  ;;  %v452_v21 = vld [vmem:[%s4871_s14 + $0x70] sm:$0xff] }
  0x43   : > { %671 = vmatprep.mubr.f32.mxu0 %v5852_v0  ;;  %3652 = vmatprep.mubr.msk.f32.mxu1 %vm474_vm0, %v446_v43  ;;  %v2374_v43 = vsel %vm2371_vm15, 1, %v4788_v1 }
  0x44   : > { %4063 = vmatpush3.bf16.msra.mxu1 %v5095_v56  ;;  %1838 = vperm.xlu1 %4537, %v1832_v12  }
  0x45   : > { %4064 = vmatprep.subr.bf16.mxu1 %v5850_v3  ;;  %2109 = vperm.xlu0 %4536, %v2103_v13   ;;  %v3400_v13 = vld [vmem:[%s375_s21] ss:$0 sm:$0xff] }
  0x46   : > { %3356 = vmatmul.mubr.msk.f32.gmra.mrb[20].mxu0 %vm474_vm0, %v448_v2  ;;  %3653 = vmatmul.mubr.msk.f32.gmra.mrb[20].mxu1 %vm474_vm0, %v447_v55  ;;  %v2915_v55 = vsel %vm2912_vm3, 1, %v4788_v1 }
  0x47   : > { %677 = vmatprep.mubr.f32.mxu0 %v5852_v0  ;;  %3655 = vmatprep.mubr.msk.f32.mxu1 %vm474_vm0, %v448_v2 }
  0x48   : > { %4066 = vmatpush3.bf16.msra.mxu1 %v5110_v4  ;;  %2106 = vperm.xlu1 %4537, %v2102_v20  }
  0x49   : > { %4067 = vmatprep.subr.bf16.mxu1 %v5850_v3  ;;  %2377 = vperm.xlu0 %4536, %v2373_v26  }
  0x4a   : > { %3357 = vmatmul.mubr.msk.f32.gmra.mrb[22].mxu0 %vm474_vm0, %v449_v15  ;;  %3656 = vmatmul.mubr.msk.f32.gmra.mrb[22].mxu1 %vm474_vm0, %v449_v15 }
  0x4b   : > { %683 = vmatprep.mubr.f32.mxu0 %v5852_v0  ;;  %3658 = vmatprep.mubr.msk.f32.mxu1 %vm474_vm0, %v450_v23 }
  0x4c   : > { %4069 = vmatpush3.bf16.msra.mxu1 %v5125_v17  ;;  %2112 = vperm.xlu1 %4537, %v2104_v38  }
  0x4d   : > { %4070 = vmatprep.subr.bf16.mxu1 %v5850_v3  ;;  %2383 = vperm.xlu0 %4536, %v2375_v32  }
  0x4e   : > { %3358 = vmatmul.mubr.msk.f32.gmra.mrb[24].mxu0 %vm474_vm0, %v450_v23  ;;  %3659 = vmatmul.mubr.msk.f32.gmra.mrb[24].mxu1 %vm474_vm0, %v451_v30 }
  0x4f   : > { %689 = vmatprep.mubr.f32.mxu0 %v5852_v0  ;;  %3661 = vmatprep.mubr.msk.f32.mxu1 %vm474_vm0, %v452_v21 }
  0x50   : > { %4072 = vmatpush3.bf16.msra.mxu1 %v5140_v27  ;;  %2380 = vperm.xlu1 %4537, %v2374_v43  }
  0x51   : > { %4073 = vmatprep.subr.bf16.mxu1 %v5850_v3  ;;  %2651 = vperm.xlu0 %4536, %v2645_v49  }
  0x52   : > { %3359 = vmatmul.mubr.msk.f32.gmra.mrb[26].mxu0 %vm474_vm0, %v451_v30  ;;  %3662 = vmatmul.mubr.msk.f32.gmra.mrb[26].mxu1 %vm474_vm0, %v453_v42 }
  0x53   : > { %695 = vmatprep.mubr.f32.mxu0 %v5852_v0  ;;  %3664 = vmatprep.mubr.msk.f32.mxu1 %vm474_vm0, %v454_v48 }
  0x54   : > { %4075 = vmatpush3.bf16.msra.mxu1 %v5156_v41  ;;  %4077 = vmatprep.subr.bf16.mxu0 %v4873_v16 }
  0x55   : > { %2648 = vperm.xlu1 %4537, %v2644_v51   ;;  %4108 = vmatprep.subr.bf16.mxu1 %v5850_v3 }
  0x56   : > { %3360 = vmatmul.mubr.msk.f32.gmra.mrb[28].mxu0 %vm474_vm0, %v452_v21  ;;  %3665 = vmatmul.mubr.msk.f32.gmra.mrb[28].mxu1 %vm474_vm0, %v455_v50 }
  0x57   : > { %701 = vmatprep.mubr.f32.mxu0 %v5852_v0  ;;  %3667 = vmatprep.mubr.msk.f32.mxu1 %vm474_vm0, %v4886_v24  ;;  %v2916_v24 = vsel %vm2913_vm6, 1, %v4788_v1 }
  0x58   : > { %2919 = vperm.xlu0 %4536, %v2915_v55  }
  0x59   : > { %2654 = vperm.xlu1 %4537, %v2646_v57  }
  0x5a   : > { %3361 = vmatmul.mubr.msk.f32.gmra.mrb[30].mxu0 %vm474_vm0, %v453_v42  ;;  %3668 = vmatmul.mubr.msk.f32.gmra.mrb[30].mxu1 %vm474_vm0, %v4908_v34  ;;  %v3187_v34 = vsel %vm3184_vm7, 1, %v4788_v1 }
  0x5b   : > { %707 = vmatprep.mubr.f32.mxu0 %v5852_v0  ;;  %3670 = vmatprep.mubr.msk.f32.mxu1 %vm474_vm0, %v4932_v45  ;;  %v3186_v45 = vsel %vm3183_vm8, 1, %v4788_v1 }
  0x5c   : > { %2925 = vperm.xlu0 %4536, %v2917_v58  }
  0x5d   : > { %2922 = vperm.xlu1 %4537, %v2916_v24  }
  0x5e   : > { %3362 = vmatmul.mubr.msk.f32.gmra.mrb[32].mxu0 %vm474_vm0, %v454_v48  ;;  %3671 = vmatmul.mubr.msk.f32.gmra.mrb[32].mxu1 %vm474_vm0, %v4954_v53  ;;  %v3188_v53 = vsel %vm3185_vm9, 1, %v4788_v1 }
  0x5f   : > { %713 = vmatprep.mubr.f32.mxu0 %v5852_v0  ;;  %3673 = vmatprep.mubr.msk.f32.mxu1 %vm474_vm0, %v4977_v61 }
  0x60   : > { %3193 = vperm.xlu0 %4536, %v3187_v34  }
  0x61   : > { %3190 = vperm.xlu1 %4537, %v3186_v45  }
  0x62   : > { %3363 = vmatmul.mubr.msk.f32.gmra.mrb[34].mxu0 %vm474_vm0, %v455_v50  ;;  %3674 = vmatmul.mubr.msk.f32.gmra.mrb[34].mxu1 %vm474_vm0, %v5005_v8 }
  0x63   : > { %1089 = vmatprep.mubr.f32.mxu0 %v5852_v0  ;;  %3708 = vmatprep.mubr.msk.f32.mxu1 %vm4790_vm10, %v5852_v0 }
  0x65   : > { %3196 = vperm.xlu1 %4537, %v3188_v53  }
  0x66   : > { %1090 = vmatmul.mubr.f32.vlgmr.msra.gmra.mrb[0].mxu0 %v5852_v0  ;;  %3709 = vmatmul.mubr.f32.vlgmr.msra.gmra.mrb[36].mxu1 %v5852_v0 }
  0x67   : > { %1095 = vmatprep.mubr.f32.mxu0 %v5852_v0  ;;  %3711 = vmatprep.mubr.msk.f32.mxu1 %vm4790_vm10, %v5852_v0 }
  0x68   : > { %4079 = vmatpush1.bf16.msra.mxu0 %v4882_v22  ;;  %4110 = vmatpush3.bf16.msra.mxu1 %v5036_v28 }
  0x69   : > { %4081 = vmatprep.subr.bf16.mxu0 %v4889_v25  ;;  %4111 = vmatprep.subr.bf16.mxu1 %v5850_v3 }
  0x6a   : > { %1096 = vmatmul.mubr.f32.gmra.mrb[2].mxu0 %v5852_v0  ;;  %3712 = vmatmul.mubr.f32.gmra.mrb[38].mxu1 %v5852_v0 }
  0x6b   : > { %1101 = vmatprep.mubr.f32.mxu0 %v5852_v0  ;;  %3714 = vmatprep.mubr.msk.f32.mxu1 %vm4790_vm10, %v5852_v0 }
  0x6c   : > { %4083 = vmatpush1.bf16.msra.mxu0 %v4905_v33  ;;  %4113 = vmatpush3.bf16.msra.mxu1 %v5059_v39 }
  0x6d   : > { %4085 = vmatprep.subr.bf16.mxu0 %v4911_v35  ;;  %4114 = vmatprep.subr.bf16.mxu1 %v5850_v3 }
  0x6e   : > { %1102 = vmatmul.mubr.f32.gmra.mrb[4].mxu0 %v5852_v0  ;;  %3715 = vmatmul.mubr.f32.gmra.mrb[40].mxu1 %v5852_v0 }
  0x6f   : > { %1383 = vmatprep.mubr.f32.mxu0 %v5852_v0  ;;  %3749 = vmatprep.mubr.msk.f32.mxu1 %vm4790_vm10, %v5852_v0 }
  0x70   : > { %4087 = vmatpush1.bf16.msra.mxu0 %v4929_v44  ;;  %4116 = vmatpush3.bf16.msra.mxu1 %v5078_v47 }
  0x71   : > { %4089 = vmatprep.subr.bf16.mxu0 %v4935_v46  ;;  %4117 = vmatprep.subr.bf16.mxu1 %v5850_v3 }
  0x74   : > { %4091 = vmatpush1.bf16.msra.mxu0 %v4951_v52  ;;  %4119 = vmatpush3.bf16.msra.mxu1 %v5095_v56 }
  0x75   : > { %4093 = vmatprep.subr.bf16.mxu0 %v4958_v54  ;;  %4120 = vmatprep.subr.bf16.mxu1 %v5850_v3 }
  0x78   : > { %4095 = vmatpush1.bf16.msra.mxu0 %v4974_v60  ;;  %4122 = vmatpush3.bf16.msra.mxu1 %v5110_v4 }
  0x79   : > { %4097 = vmatprep.subr.bf16.mxu0 %v4986_v62  ;;  %4123 = vmatprep.subr.bf16.mxu1 %v5850_v3 }
  0x7c   : > { %4099 = vmatpush1.bf16.msra.mxu0 %v5007_v9  ;;  %4125 = vmatpush3.bf16.msra.mxu1 %v5125_v17 }
  0x7d   : > { %4101 = vmatprep.subr.bf16.mxu0 %v5018_v14  ;;  %4126 = vmatprep.subr.bf16.mxu1 %v5850_v3 }
  0x80   : > { %4103 = vmatpush1.bf16.msra.mxu0 %v5041_v29  ;;  %4128 = vmatpush3.bf16.msra.mxu1 %v5140_v27 }
  0x81   : > { %4105 = vmatprep.subr.bf16.mxu0 %v5045_v36  ;;  %4129 = vmatprep.subr.bf16.mxu1 %v5850_v3 }
  0x84   : > { %4107 = vmatpush1.bf16.msra.mxu0 %v5061_v40  ;;  %4131 = vmatpush3.bf16.msra.mxu1 %v5156_v41 }
  0x85   : > { %4133 = vmatprep.subr.bf16.mxu0 %v4873_v16  ;;  %4164 = vmatprep.subr.bf16.mxu1 %v5850_v3 }
  0xf1   : > { %v5257_v1 = vpop.f32.mrb[0].mxu1 }
  0xf2   : > { %5854 = vst [vmem:[#allocation3_spill] sm:$0xff] %v5257_v1  ;;  %v5259_v61 = vpop.f32.mrb[1].mxu1 }
  0xf3   : > { %5855 = vst [vmem:[#allocation4_spill] sm:$0xff] %v5259_v61 }
  0xf5   : > { %v5261_v7 = vpop.f32.mrb[2].mxu1 }
  0xf6   : > { %5856 = vst [vmem:[#allocation5_spill] sm:$0xff] %v5261_v7  ;;  %v5263_v8 = vpop.f32.mrb[3].mxu1 }
  0xf7   : > { %5857 = vst [vmem:[#allocation6_spill] sm:$0xff] %v5263_v8 }
  0xf9   : > { %v5265_v10 = vpop.f32.mrb[4].mxu1 }
  0xfa   : > { %5858 = vst [vmem:[#allocation7_spill] sm:$0xff] %v5265_v10  ;;  %v5267_v11 = vpop.f32.mrb[5].mxu1 }
  0xfb   : > { %5859 = vst [vmem:[#allocation8_spill] sm:$0xff] %v5267_v11 }
  0xfd   : > { %v5269_v59 = vpop.f32.mrb[6].mxu1 }
  0xfe   : > { %5860 = vst [vmem:[#allocation9_spill] sm:$0xff] %v5269_v59  ;;  %v5271_v63 = vpop.f32.mrb[7].mxu1 }
  0xff   : > { %5861 = vst [vmem:[#allocation10_spill] sm:$0xff] %v5271_v63 }
 0x101   : > { %v5273_v2 = vpop.f32.mrb[8].mxu1 }
 0x102   : > { %5862 = vst [vmem:[#allocation11_spill] sm:$0xff] %v5273_v2  ;;  %v5275_v5 = vpop.f32.mrb[9].mxu1 }
 0x103   : > { %5863 = vst [vmem:[#allocation12_spill] sm:$0xff] %v5275_v5  ;;  %v435_v5 = vld [vmem:[%s372_s27] sm:$0x3] }
 0x105   : > { %v5281_v6 = vpop.f32.mrb[10].mxu1 }
 0x106   : > { %5864 = vst [vmem:[#allocation13_spill] sm:$0xff] %v5281_v6  ;;  %v5283_v12 = vpop.f32.mrb[11].mxu1 }
 0x107   : > { %5865 = vst [vmem:[#allocation14_spill] sm:$0xff] %v5283_v12 }
 0x109   : > { %v3642_v15 = vpop.f32.mrb[12].mxu1 }
 0x10a   : > { %v5285_v18 = vadd.f32 %v3642_v15, %v3400_v13  ;;  %v822_v19 = vpop.f32.mrb[13].mxu1 }
 0x10b   : > { %v5287_v20 = vadd.f32 %v3400_v13, %v822_v19 }
 0x10d   : > { %v3645_v23 = vpop.f32.mrb[14].mxu1 }
 0x10e   : > { %v5289_v26 = vadd.f32 %v3645_v23, %v3400_v13  ;;  %v832_v30 = vpop.f32.mrb[15].mxu1 }
 0x10f   : > { %v5291_v31 = vadd.f32 %v3400_v13, %v832_v30 }
 0x111   : > { %v3648_v37 = vpop.f32.mrb[16].mxu1 }
 0x112   : > { %v5293_v38 = vadd.f32 %v3648_v37, %v3400_v13  ;;  %v842_v21 = vpop.f32.mrb[17].mxu1 }
 0x113   : > { %v5295_v32 = vadd.f32 %v3400_v13, %v842_v21 }
 0x115   : > { %v3651_v42 = vpop.f32.mrb[18].mxu1 }
 0x116   : > { %v5297_v43 = vadd.f32 %v3651_v42, %v3400_v13  ;;  %v852_v48 = vpop.f32.mrb[19].mxu1 }
 0x117   : > { %v5299_v49 = vadd.f32 %v3400_v13, %v852_v48 }
 0x119   : > { %v3654_v50 = vpop.f32.mrb[20].mxu1 }
 0x11a   : > { %v5301_v51 = vadd.f32 %v3654_v50, %v3400_v13  ;;  %v862_v55 = vpop.f32.mrb[21].mxu1  ;;  %v1195_v50 = vlaneseq }
 0x11b   : > { %v5303_v57 = vadd.f32 %v3400_v13, %v862_v55 }
 0x11d   : > { %v3657_v58 = vpop.f32.mrb[22].mxu1 }
 0x11e   : > { %v5305_v24 = vadd.f32 %v3657_v58, %v3400_v13  ;;  %v872_v34 = vpop.f32.mrb[23].mxu1 }
 0x11f   : > { %v5307_v45 = vadd.f32 %v3400_v13, %v872_v34 }
 0x121   : > { %v3660_v53 = vpop.f32.mrb[24].mxu1 }
 0x122   : > { %v5309_v15 = vadd.f32 %v3660_v53, %v3400_v13  ;;  %v882_v19 = vpop.f32.mrb[25].mxu1  ;;  %v1196_v53 = vshrl.u32 %v1195_v50, 7 }
 0x123   : > { %v5311_v23 = vadd.f32 %v3400_v13, %v882_v19 }
 0x124   : > { %v1201_v2 = vsub.s32 1, %v1196_v53 }
 0x125   : > { %v3663_v30 = vpop.f32.mrb[26].mxu1 }
 0x126   : > { %v5313_v37 = vadd.f32 %v3663_v30, %v3400_v13  ;;  %v892_v21 = vpop.f32.mrb[27].mxu1 }
 0x127   : > { %v5315_v42 = vadd.f32 %v3400_v13, %v892_v21  ;;  %v1197_v21 = vsub.s32 0, %v1196_v53 }
 0x129   : > { %v3666_v48 = vpop.f32.mrb[28].mxu1  ;;  %v5333_v50 = vrot.slane %v435_v5, %v1197_v21 }
 0x12a   : > { %v5317_v55 = vadd.f32 %v3666_v48, %v3400_v13  ;;  %v902_v58 = vpop.f32.mrb[29].mxu1 }
 0x12b   : > { %v5319_v3 = vadd.f32 %v3400_v13, %v902_v58 }
 0x12c   : > { %5866 = vst [vmem:[#allocation15_spill] sm:$0xff] %v5317_v55 }
 0x12d   : > { %5867 = vst [vmem:[#allocation16_spill] sm:$0xff] %v5319_v3  ;;  %v3669_v34 = vpop.f32.mrb[30].mxu1 }
 0x12e   : > { %v5322_v0 = vadd.f32 %v3669_v34, %v3400_v13  ;;  %v912_v19 = vpop.f32.mrb[31].mxu1 }
 0x12f   : > { %v5324_v12 = vadd.f32 %v3400_v13, %v912_v19 }
 0x130   : > { %5868 = vst [vmem:[#allocation17_spill] sm:$0xff] %v5322_v0  ;;  %v5339_v0 = vrot.slane %v435_v5, %v1201_v2 }
 0x131   : > { %5869 = vst [vmem:[#allocation18_spill] sm:$0xff] %v5324_v12  ;;  %v3672_v30 = vpop.f32.mrb[32].mxu1 }
 0x132   : > { %v5329_v6 = vadd.f32 %v3672_v30, %v3400_v13  ;;  %v922_v48 = vpop.f32.mrb[33].mxu1 }
 0x133   : > { %v5331_v58 = vadd.f32 %v3400_v13, %v922_v48 }
 0x134   : > { %5870 = vst [vmem:[#allocation19_spill] sm:$0xff] %v5329_v6 }
 0x135   : > { %5871 = vst [vmem:[#allocation20_spill] sm:$0xff] %v5331_v58  ;;  %v3675_v63 = vpop.f32.mrb[34].mxu1 }
 0x136   : > { %v5335_v34 = vadd.f32 %v3675_v63, %v3400_v13  ;;  %v932_v19 = vpop.f32.mrb[35].mxu1 }
 0x137   : > { %v5337_v59 = vadd.f32 %v3400_v13, %v932_v19 }
 0x138   : > { %5872 = vst [vmem:[#allocation21_spill] sm:$0xff] %v5335_v34 }
 0x139   : > { %5873 = vst [vmem:[#allocation22_spill] sm:$0xff] %v5337_v59  ;;  %v1091_v12 = vpop.f32.mrb[0].mxu0  ;;  %v1174_v11 = vpop.f32.mrb[36].mxu1 }
 0x13a   : > { %v1205_v30 = vadd.f32 %v5333_v50, %v1091_v12  ;;  %v1093_v6 = vpop.f32.mrb[1].mxu0  ;;  %v3710_v10 = vpop.f32.mrb[37].mxu1 }
 0x13b   : > { %v1206_v48 = vadd.f32 %v5339_v0, %v1093_v6 }
 0x13c   : > { %v3394_v8 = vmul.f32 -1.442695, %v1205_v30 }
 0x13d   : > { %v1097_v53 = vpop.f32.mrb[2].mxu0  ;;  %v1179_v58 = vpop.f32.mrb[38].mxu1  ;;  %v3395_v5 = vmul.f32 -1.442695, %v1206_v48 }
 0x13e   : > { %4538 = vpow2.f32 %v3394_v8  ;;  %v1207_v63 = vadd.f32 %v5333_v50, %v1097_v53  ;;  %v1099_v21 = vpop.f32.mrb[3].mxu0  ;;  %v3713_v34 = vpop.f32.mrb[39].mxu1 }
 0x13f   : > { %v1208_v2 = vadd.f32 %v5339_v0, %v1099_v21 }
 0x140   : > { %v3396_v13 = vmul.f32 -1.442695, %v1207_v63 }
 0x141   : > { %v1103_v19 = vpop.f32.mrb[4].mxu0  ;;  %v1184_v59 = vpop.f32.mrb[40].mxu1  ;;  %v3397_v6 = vmul.f32 -1.442695, %v1208_v2  ;;  %v5354_v2 = vld [vmem:[%s5351_s30] ss:$0 sm:$0xff] }
 0x142   : > { %4540 = vpow2.f32 %v3396_v13  ;;  %v1209_v10 = vadd.f32 %v5333_v50, %v1103_v19  ;;  %v1105_v12 = vpop.f32.mrb[5].mxu0  ;;  %v3716_v30 = vpop.f32.mrb[41].mxu1 }
 0x143   : > { %v1210_v8 = vadd.f32 %v5339_v0, %v1105_v12  ;;  %4542 = vpow2.f32 %v3395_v5  ;;  %v1262_v12 = vadd.f32 %v5354_v2, %v1174_v11 }
 0x144   : > { %v3398_v7 = vmul.f32 -1.442695, %v1209_v10 }
 0x145   : > { %v3399_v34 = vmul.f32 -1.442695, %v1210_v8 }
 0x146   : > { %4544 = vpow2.f32 %v3398_v7 }
 0x147   : > { %4546 = vpow2.f32 %v3397_v6 }
 0x148   : > { %v4539_v53 = vpop.eup %4538 }
 0x149   : > { %v1229_v63 = vadd.f32 1.0, %v4539_v53 }
 0x14b   : > { %4548 = vrcp.f32 %v1229_v63  ;;  %v1263_v63 = vadd.f32 %v5354_v2, %v1179_v58 }
 0x14c   : > { %v4541_v48 = vpop.eup %4540  ;;  %4550 = vpow2.f32 %v3399_v34 }
 0x14d   : > { %v1231_v21 = vadd.f32 1.0, %v4541_v48  ;;  %v4543_v13 = vpop.eup %4542 }
 0x14e   : > { %v1230_v10 = vadd.f32 1.0, %v4543_v13 }
 0x14f   : > { %4552 = vrcp.f32 %v1231_v21 }
 0x150   : > { %v4545_v5 = vpop.eup %4544 }
 0x151   : > { %v1233_v7 = vadd.f32 1.0, %v4545_v5  ;;  %v4547_v19 = vpop.eup %4546  ;;  %v1264_v5 = vadd.f32 %v5354_v2, %v1184_v59 }
 0x152   : > { %v1232_v6 = vadd.f32 1.0, %v4547_v19 }
 0x153   : > { %4554 = vrcp.f32 %v1233_v7 }
 0x154   : > { %4556 = vrcp.f32 %v1230_v10 }
 0x155   : > { %v4549_v30 = vpop.eup %4548  ;;  %4558 = vrcp.f32 %v1232_v6  ;;  %v1294_v6 = vpop.permute.xlu0 %1293 }
 0x156   : > { %v4551_v8 = vpop.eup %4550  ;;  %v1265_v53 = vmul.f32 %v4549_v30, %v1262_v12  ;;  %vm1301_vm11 = vcmp.eq.s32.totalorder %v1294_v6, 1 }
 0x157   : > { %v1234_v61 = vadd.f32 1.0, %v4551_v8 }
 0x158   : > { %v1268_v34 = vadd.f32 %v1265_v53, %v5287_v20 }
 0x159   : > { %v4553_v48 = vpop.eup %4552 }
 0x15a   : > { %4560 = vtanh.f32 %v1268_v34  ;;  %v1266_v21 = vmul.f32 %v4553_v48, %v1263_v63 }
 0x15b   : > { %4562 = vrcp.f32 %v1234_v61 }
 0x15c   : > { %v1269_v13 = vadd.f32 %v1266_v21, %v5285_v18  ;;  %v5874_v21 = vmov 0.0  }
 0x15d   : > { %v4555_v11 = vpop.eup %4554 }
 0x15e   : > { %4564 = vtanh.f32 %v1269_v13  ;;  %v1267_v7 = vmul.f32 %v4555_v11, %v1264_v5  ;;  %v4557_v19 = vpop.eup %4556 }
 0x15f   : > { %v4559_v58 = vpop.eup %4558  ;;  %v1274_v12 = vsub.f32 1.0, %v4557_v19  ;;  %v1280_v30 = vmul.f32 0.0, %v4557_v19  ;;  %v1300_v19 = vpop.permute.xlu1 %1299 }
 0x160   : > { %v1270_v10 = vadd.f32 %v1267_v7, %v5291_v31  ;;  %v1275_v59 = vsub.f32 1.0, %v4559_v58  ;;  %v1281_v18 = vmul.f32 0.0, %v4559_v58  ;;  %v1297_v31 = vpop.permute.xlu0 %1296  ;;  %v5875_v7 = vmov 0.0|0.0  }
 0x161   : > { %vm1302_vm12 = vcmp.eq.s32.totalorder %v1297_v31, 1  ;;  %vm1303_vm13 = vcmp.eq.s32.totalorder %v1300_v19, 1 }
 0x162   : > { %4566 = vtanh.f32 %v1270_v10 }
 0x164   : > { %v4561_v20 = vpop.eup %4560 }
 0x165   : > { %v1277_v8 = vmul.f32 %v4561_v20, %v1274_v12  ;;  %v4563_v53 = vpop.eup %4562 }
 0x166   : > { %v1276_v13 = vsub.f32 1.0, %v4563_v53  ;;  %v1282_v58 = vmul.f32 0.0, %v4563_v53 }
 0x167   : > { %v1283_v63 = vadd.f32 %v1280_v30, %v1277_v8 }
 0x168   : > { %v4565_v34 = vpop.eup %4564 }
 0x169   : > { %3402 = vmatmul.mubr.msk.f32.vlgmr.msra.gmra.mrb[6].mxu0 %vm1301_vm11, %v1283_v63  ;;  %3750 = vmatmul.mubr.msk.f32.vlgmr.msra.gmra.mrb[42].mxu1 %vm1301_vm11, %v1283_v63  ;;  %v1278_v61 = vmul.f32 %v4565_v34, %v1275_v59  ;;  %v5362_v48 = vsel %vm1301_vm11, %v1283_v63, 0.0 }
 0x16a   : > { %1389 = vmatprep.mubr.f32.mxu0 %v5874_v21  ;;  %3752 = vmatprep.mubr.msk.f32.mxu1 %vm4790_vm10, %v5874_v21 }
 0x16b   : > { %v1284_v5 = vadd.f32 %v1281_v18, %v1278_v61  ;;  %4135 = vmatpush1.bf16.msra.mxu0 %v4882_v22  ;;  %4166 = vmatpush3.bf16.msra.mxu1 %v5036_v28 }
 0x16c   : > { %v4567_v11 = vpop.eup %4566  ;;  %4137 = vmatprep.subr.bf16.mxu0 %v4889_v25  ;;  %4167 = vmatprep.subr.bf16.mxu1 %v5875_v7 }
 0x16d   : > { %3403 = vmatmul.mubr.msk.f32.gmra.mrb[8].mxu0 %vm1302_vm12, %v1284_v5  ;;  %3753 = vmatmul.mubr.msk.f32.gmra.mrb[44].mxu1 %vm1302_vm12, %v1284_v5  ;;  %v1279_v10 = vmul.f32 %v4567_v11, %v1276_v13  ;;  %v5371_v12 = vsel %vm1302_vm12, %v1284_v5, 0.0 }
 0x16e   : > { %1395 = vmatprep.mubr.f32.mxu0 %v5874_v21  ;;  %3755 = vmatprep.mubr.msk.f32.mxu1 %vm4790_vm10, %v5874_v21 }
 0x16f   : > { %v1285_v20 = vadd.f32 %v1282_v58, %v1279_v10  ;;  %4139 = vmatpush1.bf16.msra.mxu0 %v4905_v33  ;;  %4169 = vmatpush3.bf16.msra.mxu1 %v5059_v39 }
 0x170   : > { %4141 = vmatprep.subr.bf16.mxu0 %v4911_v35  ;;  %4170 = vmatprep.subr.bf16.mxu1 %v5875_v7 }
 0x171   : > { %3404 = vmatmul.mubr.msk.f32.gmra.mrb[10].mxu0 %vm1303_vm13, %v1285_v20  ;;  %3756 = vmatmul.mubr.msk.f32.gmra.mrb[46].mxu1 %vm1303_vm13, %v1285_v20  ;;  %v5380_v30 = vsel %vm1303_vm13, %v1285_v20, 0.0 }
 0x172   : > { %1654 = vmatprep.mubr.f32.mxu0 %v5874_v21  ;;  %3790 = vmatprep.mubr.msk.f32.mxu1 %vm4790_vm10, %v5874_v21 }
 0x173   : > { %4143 = vmatpush1.bf16.msra.mxu0 %v4929_v44  ;;  %4172 = vmatpush3.bf16.msra.mxu1 %v5078_v47 }
 0x174   : > { %4145 = vmatprep.subr.bf16.mxu0 %v4935_v46  ;;  %4173 = vmatprep.subr.bf16.mxu1 %v5875_v7 }
 0x177   : > { %4147 = vmatpush1.bf16.msra.mxu0 %v4951_v52  ;;  %4175 = vmatpush3.bf16.msra.mxu1 %v5095_v56 }
 0x178   : > { %4149 = vmatprep.subr.bf16.mxu0 %v4958_v54  ;;  %4176 = vmatprep.subr.bf16.mxu1 %v5875_v7 }
 0x17b   : > { %4151 = vmatpush1.bf16.msra.mxu0 %v4974_v60  ;;  %4178 = vmatpush3.bf16.msra.mxu1 %v5110_v4 }
 0x17c   : > { %4153 = vmatprep.subr.bf16.mxu0 %v4986_v62  ;;  %4179 = vmatprep.subr.bf16.mxu1 %v5875_v7 }
 0x17f   : > { %4155 = vmatpush1.bf16.msra.mxu0 %v5007_v9  ;;  %4181 = vmatpush3.bf16.msra.mxu1 %v5125_v17 }
 0x180   : > { %4157 = vmatprep.subr.bf16.mxu0 %v5018_v14  ;;  %4182 = vmatprep.subr.bf16.mxu1 %v5875_v7 }
 0x183   : > { %4159 = vmatpush1.bf16.msra.mxu0 %v5041_v29  ;;  %4184 = vmatpush3.bf16.msra.mxu1 %v5140_v27 }
 0x184   : > { %4161 = vmatprep.subr.bf16.mxu0 %v5045_v36  ;;  %4185 = vmatprep.subr.bf16.mxu1 %v5875_v7 }
 0x187   : > { %4163 = vmatpush1.bf16.msra.mxu0 %v5061_v40  ;;  %4187 = vmatpush3.bf16.msra.mxu1 %v5156_v41 }
 0x188   : > { %4189 = vmatprep.subr.bf16.mxu0 %v4873_v16  ;;  %4220 = vmatprep.subr.bf16.mxu1 %v5875_v7 }
 0x23c   : > { %v1385_v6 = vpop.f32.mrb[6].mxu0  ;;  %v1468_v8 = vpop.f32.mrb[42].mxu1 }
 0x23d   : > { %v1488_v53 = vadd.f32 %v1385_v6, %v5333_v50  ;;  %v1387_v63 = vpop.f32.mrb[7].mxu0  ;;  %v3751_v59 = vpop.f32.mrb[43].mxu1 }
 0x23e   : > { %v1489_v34 = vadd.f32 %v1387_v63, %v5339_v0 }
 0x23f   : > { %v3408_v61 = vmul.f32 -1.442695, %v1488_v53 }
 0x240   : > { %v3409_v18 = vmul.f32 -1.442695, %v1489_v34  ;;  %v1391_v31 = vpop.f32.mrb[8].mxu0  ;;  %v1473_v5 = vpop.f32.mrb[44].mxu1 }
 0x241   : > { %4568 = vpow2.f32 %v3408_v61  ;;  %v1490_v13 = vadd.f32 %v1391_v31, %v5333_v50  ;;  %v1393_v11 = vpop.f32.mrb[9].mxu0  ;;  %v3754_v19 = vpop.f32.mrb[45].mxu1 }
 0x242   : > { %4570 = vpow2.f32 %v3409_v18  ;;  %v1491_v10 = vadd.f32 %v1393_v11, %v5339_v0 }
 0x243   : > { %v3410_v58 = vmul.f32 -1.442695, %v1490_v13 }
 0x244   : > { %v3411_v20 = vmul.f32 -1.442695, %v1491_v10  ;;  %v1397_v1 = vpop.f32.mrb[10].mxu0  ;;  %v1478_v6 = vpop.f32.mrb[46].mxu1 }
 0x245   : > { %4572 = vpow2.f32 %v3410_v58  ;;  %v1492_v59 = vadd.f32 %v1397_v1, %v5333_v50  ;;  %v1399_v63 = vpop.f32.mrb[11].mxu0  ;;  %v3757_v53 = vpop.f32.mrb[47].mxu1 }
 0x246   : > { %4574 = vpow2.f32 %v3411_v20  ;;  %v1493_v34 = vadd.f32 %v1399_v63, %v5339_v0 }
 0x247   : > { %v3412_v61 = vmul.f32 -1.442695, %v1492_v59  ;;  %v1533_v59 = vadd.f32 %v5354_v2, %v1468_v8  ;;  %v1535_v8 = vadd.f32 %v5354_v2, %v1478_v6 }
 0x248   : > { %v3413_v55 = vmul.f32 -1.442695, %v1493_v34 }
 0x249   : > { %4576 = vpow2.f32 %v3412_v61 }
 0x24a   : > { %4578 = vpow2.f32 %v3413_v55 }
 0x24b   : > { %v4569_v31 = vpop.eup %4568 }
 0x24c   : > { %v4571_v18 = vpop.eup %4570  ;;  %v1512_v19 = vadd.f32 1.0, %v4569_v31 }
 0x24d   : > { %v1513_v11 = vadd.f32 1.0, %v4571_v18 }
 0x24e   : > { %4580 = vrcp.f32 %v1512_v19  ;;  %v1534_v19 = vadd.f32 %v5354_v2, %v1473_v5 }
 0x24f   : > { %v4573_v13 = vpop.eup %4572  ;;  %4582 = vrcp.f32 %v1513_v11 }
 0x250   : > { %v4575_v10 = vpop.eup %4574  ;;  %v1514_v58 = vadd.f32 1.0, %v4573_v13 }
 0x251   : > { %v1515_v3 = vadd.f32 1.0, %v4575_v10 }
 0x252   : > { %4584 = vrcp.f32 %v1514_v58 }
 0x253   : > { %v4577_v1 = vpop.eup %4576  ;;  %4586 = vrcp.f32 %v1515_v3 }
 0x254   : > { %v4579_v20 = vpop.eup %4578  ;;  %v1516_v53 = vadd.f32 1.0, %v4577_v1 }
 0x255   : > { %v1517_v63 = vadd.f32 1.0, %v4579_v20 }
 0x256   : > { %4588 = vrcp.f32 %v1516_v53 }
 0x257   : > { %4590 = vrcp.f32 %v1517_v63 }
 0x258   : > { %v4581_v55 = vpop.eup %4580 }
 0x259   : > { %v4583_v34 = vpop.eup %4582  ;;  %v1536_v61 = vmul.f32 %v4581_v55, %v1533_v59 }
 0x25a   : > { %v1551_v31 = vmul.f32 %v4583_v34, %v5362_v48  ;;  %v1545_v5 = vsub.f32 1.0, %v4583_v34 }
 0x25b   : > { %v1539_v18 = vadd.f32 %v1536_v61, %v5289_v26  ;;  %v1565_v61 = vpop.permute.xlu1 %1564 }
 0x25c   : > { %v4585_v11 = vpop.eup %4584  ;;  %vm1572_vm14 = vcmp.eq.s32.totalorder %v1565_v61, 1 }
 0x25d   : > { %v4587_v13 = vpop.eup %4586  ;;  %4592 = vtanh.f32 %v1539_v18  ;;  %v1537_v3 = vmul.f32 %v4585_v11, %v1534_v19 }
 0x25e   : > { %v1552_v10 = vmul.f32 %v4587_v13, %v5371_v12  ;;  %v1546_v19 = vsub.f32 1.0, %v4587_v13 }
 0x25f   : > { %v1540_v58 = vadd.f32 %v1537_v3, %v5295_v32  ;;  %v1568_v3 = vpop.permute.xlu0 %1567 }
 0x260   : > { %v4589_v1 = vpop.eup %4588  ;;  %vm1573_vm15 = vcmp.eq.s32.totalorder %v1568_v3, 1 }
 0x261   : > { %v4591_v20 = vpop.eup %4590  ;;  %4594 = vtanh.f32 %v1540_v58  ;;  %v1538_v53 = vmul.f32 %v4589_v1, %v1535_v8 }
 0x262   : > { %v1553_v63 = vmul.f32 %v4591_v20, %v5380_v30  ;;  %v1547_v34 = vsub.f32 1.0, %v4591_v20 }
 0x263   : > { %v1541_v26 = vadd.f32 %v1538_v53, %v5293_v38 }
 0x265   : > { %4596 = vtanh.f32 %v1541_v26 }
 0x267   : > { %v4593_v59 = vpop.eup %4592 }
 0x268   : > { %v1548_v55 = vmul.f32 %v4593_v59, %v1545_v5 }
 0x26a   : > { %v1554_v18 = vadd.f32 %v1551_v31, %v1548_v55 }
 0x26b   : > { %v4595_v11 = vpop.eup %4594 }
 0x26c   : > { %v5425_v32 = vsel %vm1572_vm14, %v1554_v18, %v5362_v48  ;;  %v1549_v6 = vmul.f32 %v4595_v11, %v1546_v19 }
 0x26d   : > { %1655 = vmatmul.mubr.f32.vlgmr.msra.gmra.mrb[12].mxu0 %v5425_v32  ;;  %3791 = vmatmul.mubr.f32.vlgmr.msra.gmra.mrb[48].mxu1 %v5425_v32 }
 0x26e   : > { %1660 = vmatprep.mubr.f32.mxu0 %v5874_v21  ;;  %3793 = vmatprep.mubr.msk.f32.mxu1 %vm4790_vm10, %v5874_v21  ;;  %v1555_v38 = vadd.f32 %v1552_v10, %v1549_v6  ;;  %v1571_v10 = vpop.permute.xlu1 %1570 }
 0x26f   : > { %v4597_v31 = vpop.eup %4596  ;;  %4191 = vmatpush1.bf16.msra.mxu0 %v4882_v22  ;;  %4222 = vmatpush3.bf16.msra.mxu1 %v5036_v28  ;;  %vm1574_vm1 = vcmp.eq.s32.totalorder %v1571_v10, 1 }
 0x270   : > { %v5435_v48 = vsel %vm1573_vm15, %v1555_v38, %v5371_v12  ;;  %v1550_v13 = vmul.f32 %v4597_v31, %v1547_v34  ;;  %4193 = vmatprep.subr.bf16.mxu0 %v4889_v25  ;;  %4223 = vmatprep.subr.bf16.mxu1 %v5875_v7 }
 0x271   : > { %1661 = vmatmul.mubr.f32.gmra.mrb[14].mxu0 %v5435_v48  ;;  %3794 = vmatmul.mubr.f32.gmra.mrb[50].mxu1 %v5435_v48 }
 0x272   : > { %1666 = vmatprep.mubr.f32.mxu0 %v5874_v21  ;;  %3796 = vmatprep.mubr.msk.f32.mxu1 %vm4790_vm10, %v5874_v21  ;;  %v1556_v58 = vadd.f32 %v1553_v63, %v1550_v13 }
 0x273   : > { %4195 = vmatpush1.bf16.msra.mxu0 %v4905_v33  ;;  %4225 = vmatpush3.bf16.msra.mxu1 %v5059_v39 }
 0x274   : > { %v5447_v12 = vsel %vm1574_vm1, %v1556_v58, %v5380_v30  ;;  %4197 = vmatprep.subr.bf16.mxu0 %v4911_v35  ;;  %4226 = vmatprep.subr.bf16.mxu1 %v5875_v7 }
 0x275   : > { %1667 = vmatmul.mubr.f32.gmra.mrb[16].mxu0 %v5447_v12  ;;  %3797 = vmatmul.mubr.f32.gmra.mrb[52].mxu1 %v5447_v12 }
 0x276   : > { %1925 = vmatprep.mubr.f32.mxu0 %v5874_v21  ;;  %3831 = vmatprep.mubr.msk.f32.mxu1 %vm4790_vm10, %v5874_v21 }
 0x277   : > { %4199 = vmatpush1.bf16.msra.mxu0 %v4929_v44  ;;  %4228 = vmatpush3.bf16.msra.mxu1 %v5078_v47 }
 0x278   : > { %4201 = vmatprep.subr.bf16.mxu0 %v4935_v46  ;;  %4229 = vmatprep.subr.bf16.mxu1 %v5875_v7 }
 0x27b   : > { %4203 = vmatpush1.bf16.msra.mxu0 %v4951_v52  ;;  %4231 = vmatpush3.bf16.msra.mxu1 %v5095_v56 }
 0x27c   : > { %4205 = vmatprep.subr.bf16.mxu0 %v4958_v54  ;;  %4232 = vmatprep.subr.bf16.mxu1 %v5875_v7 }
 0x27f   : > { %4207 = vmatpush1.bf16.msra.mxu0 %v4974_v60  ;;  %4234 = vmatpush3.bf16.msra.mxu1 %v5110_v4 }
 0x280   : > { %4209 = vmatprep.subr.bf16.mxu0 %v4986_v62  ;;  %4235 = vmatprep.subr.bf16.mxu1 %v5875_v7 }
 0x283   : > { %4211 = vmatpush1.bf16.msra.mxu0 %v5007_v9  ;;  %4237 = vmatpush3.bf16.msra.mxu1 %v5125_v17 }
 0x284   : > { %4213 = vmatprep.subr.bf16.mxu0 %v5018_v14  ;;  %4238 = vmatprep.subr.bf16.mxu1 %v5875_v7 }
 0x287   : > { %4215 = vmatpush1.bf16.msra.mxu0 %v5041_v29  ;;  %4240 = vmatpush3.bf16.msra.mxu1 %v5140_v27 }
 0x288   : > { %4217 = vmatprep.subr.bf16.mxu0 %v5045_v36  ;;  %4241 = vmatprep.subr.bf16.mxu1 %v5875_v7 }
 0x28b   : > { %4219 = vmatpush1.bf16.msra.mxu0 %v5061_v40  ;;  %4243 = vmatpush3.bf16.msra.mxu1 %v5156_v41 }
 0x28c   : > { %4245 = vmatprep.subr.bf16.mxu0 %v4873_v16  ;;  %4276 = vmatprep.subr.bf16.mxu1 %v5875_v7 }
 0x340   : > { %v1656_v30 = vpop.f32.mrb[12].mxu0  ;;  %v1739_v8 = vpop.f32.mrb[48].mxu1 }
 0x341   : > { %v1759_v1 = vadd.f32 %v1656_v30, %v5333_v50  ;;  %v1658_v20 = vpop.f32.mrb[13].mxu0  ;;  %v3792_v53 = vpop.f32.mrb[49].mxu1 }
 0x342   : > { %v1760_v26 = vadd.f32 %v1658_v20, %v5339_v0 }
 0x343   : > { %v3414_v63 = vmul.f32 -1.442695, %v1759_v1 }
 0x344   : > { %v1662_v5 = vpop.f32.mrb[14].mxu0  ;;  %v1744_v59 = vpop.f32.mrb[50].mxu1  ;;  %v3415_v6 = vmul.f32 -1.442695, %v1760_v26 }
 0x345   : > { %4598 = vpow2.f32 %v3414_v63  ;;  %v1761_v55 = vadd.f32 %v1662_v5, %v5333_v50  ;;  %v1664_v61 = vpop.f32.mrb[15].mxu0  ;;  %v3795_v18 = vpop.f32.mrb[51].mxu1 }
 0x346   : > { %v1762_v11 = vadd.f32 %v1664_v61, %v5339_v0 }
 0x347   : > { %v3416_v19 = vmul.f32 -1.442695, %v1761_v55 }
 0x348   : > { %v1668_v3 = vpop.f32.mrb[16].mxu0  ;;  %v1749_v38 = vpop.f32.mrb[52].mxu1  ;;  %v3417_v10 = vmul.f32 -1.442695, %v1762_v11  ;;  %v1804_v11 = vadd.f32 %v5354_v2, %v1739_v8 }
 0x349   : > { %4600 = vpow2.f32 %v3416_v19  ;;  %v1763_v34 = vadd.f32 %v1668_v3, %v5333_v50  ;;  %v1670_v31 = vpop.f32.mrb[17].mxu0  ;;  %v3798_v13 = vpop.f32.mrb[53].mxu1 }
 0x34a   : > { %v1764_v30 = vadd.f32 %v1670_v31, %v5339_v0  ;;  %4602 = vpow2.f32 %v3415_v6 }
 0x34b   : > { %v3418_v58 = vmul.f32 -1.442695, %v1763_v34 }
 0x34c   : > { %v3419_v20 = vmul.f32 -1.442695, %v1764_v30 }
 0x34d   : > { %4604 = vpow2.f32 %v3418_v58 }
 0x34e   : > { %4606 = vpow2.f32 %v3417_v10  ;;  %v1805_v10 = vadd.f32 %v5354_v2, %v1744_v59 }
 0x34f   : > { %v4599_v1 = vpop.eup %4598 }
 0x350   : > { %v1783_v53 = vadd.f32 1.0, %v4599_v1 }
 0x352   : > { %4608 = vrcp.f32 %v1783_v53  ;;  %v1806_v53 = vadd.f32 %v5354_v2, %v1749_v38 }
 0x353   : > { %v4601_v63 = vpop.eup %4600  ;;  %4610 = vpow2.f32 %v3419_v20 }
 0x354   : > { %v1785_v26 = vadd.f32 1.0, %v4601_v63  ;;  %v4603_v5 = vpop.eup %4602 }
 0x355   : > { %v1784_v19 = vadd.f32 1.0, %v4603_v5 }
 0x356   : > { %4612 = vrcp.f32 %v1785_v26 }
 0x357   : > { %v4605_v55 = vpop.eup %4604 }
 0x358   : > { %v1787_v61 = vadd.f32 1.0, %v4605_v55  ;;  %v4607_v18 = vpop.eup %4606 }
 0x359   : > { %v1786_v6 = vadd.f32 1.0, %v4607_v18 }
 0x35a   : > { %4614 = vrcp.f32 %v1787_v61 }
 0x35b   : > { %4616 = vrcp.f32 %v1784_v19 }
 0x35c   : > { %v4609_v3 = vpop.eup %4608  ;;  %4618 = vrcp.f32 %v1786_v6 }
 0x35d   : > { %v4611_v34 = vpop.eup %4610  ;;  %v1807_v31 = vmul.f32 %v4609_v3, %v1804_v11  ;;  %v1836_v11 = vpop.permute.xlu0 %1835 }
 0x35e   : > { %v1788_v30 = vadd.f32 1.0, %v4611_v34  ;;  %vm1843_vm2 = vcmp.eq.s32.totalorder %v1836_v11, 1 }
 0x35f   : > { %v1810_v13 = vadd.f32 %v1807_v31, %v5299_v49 }
 0x360   : > { %v4613_v58 = vpop.eup %4612 }
 0x361   : > { %4620 = vtanh.f32 %v1810_v13  ;;  %v1808_v1 = vmul.f32 %v4613_v58, %v1805_v10 }
 0x362   : > { %4622 = vrcp.f32 %v1788_v30 }
 0x363   : > { %v1811_v20 = vadd.f32 %v1808_v1, %v5297_v43 }
 0x364   : > { %v4615_v63 = vpop.eup %4614 }
 0x365   : > { %4624 = vtanh.f32 %v1811_v20  ;;  %v1809_v8 = vmul.f32 %v4615_v63, %v1806_v53  ;;  %v4617_v26 = vpop.eup %4616  ;;  %v1842_v20 = vpop.permute.xlu0 %1841 }
 0x366   : > { %v4619_v49 = vpop.eup %4618  ;;  %v1816_v55 = vsub.f32 1.0, %v4617_v26  ;;  %v1822_v18 = vmul.f32 %v4617_v26, %v5425_v32  ;;  %vm1845_vm4 = vcmp.eq.s32.totalorder %v1842_v20, 1 }
 0x367   : > { %v1812_v5 = vadd.f32 %v1809_v8, %v5303_v57  ;;  %v1817_v43 = vsub.f32 1.0, %v4619_v49  ;;  %v1823_v31 = vmul.f32 %v4619_v49, %v5435_v48  ;;  %v1839_v57 = vpop.permute.xlu1 %1838 }
 0x368   : > { %vm1844_vm3 = vcmp.eq.s32.totalorder %v1839_v57, 1 }
 0x369   : > { %4626 = vtanh.f32 %v1812_v5 }
 0x36b   : > { %v4621_v59 = vpop.eup %4620 }
 0x36c   : > { %v1819_v61 = vmul.f32 %v4621_v59, %v1816_v55  ;;  %v4623_v19 = vpop.eup %4622 }
 0x36d   : > { %v1818_v10 = vsub.f32 1.0, %v4623_v19  ;;  %v1824_v1 = vmul.f32 %v4623_v19, %v5447_v12 }
 0x36e   : > { %v1825_v3 = vadd.f32 %v1822_v18, %v1819_v61 }
 0x36f   : > { %v4625_v6 = vpop.eup %4624 }
 0x370   : > { %v5494_v38 = vsel %vm1843_vm2, %v1825_v3, %v5425_v32  ;;  %v1820_v34 = vmul.f32 %v4625_v6, %v1817_v43 }
 0x371   : > { %1926 = vmatmul.mubr.f32.vlgmr.msra.gmra.mrb[18].mxu0 %v5494_v38  ;;  %3832 = vmatmul.mubr.f32.vlgmr.msra.gmra.mrb[54].mxu1 %v5494_v38 }
 0x372   : > { %1931 = vmatprep.mubr.f32.mxu0 %v5874_v21  ;;  %3834 = vmatprep.mubr.msk.f32.mxu1 %vm4790_vm10, %v5874_v21  ;;  %v1826_v13 = vadd.f32 %v1823_v31, %v1820_v34 }
 0x373   : > { %v4627_v58 = vpop.eup %4626  ;;  %4247 = vmatpush1.bf16.msra.mxu0 %v4882_v22  ;;  %4278 = vmatpush3.bf16.msra.mxu1 %v5036_v28 }
 0x374   : > { %v5505_v32 = vsel %vm1844_vm3, %v1826_v13, %v5435_v48  ;;  %v1821_v30 = vmul.f32 %v4627_v58, %v1818_v10  ;;  %4249 = vmatprep.subr.bf16.mxu0 %v4889_v25  ;;  %4279 = vmatprep.subr.bf16.mxu1 %v5875_v7 }
 0x375   : > { %1932 = vmatmul.mubr.f32.gmra.mrb[20].mxu0 %v5505_v32  ;;  %3835 = vmatmul.mubr.f32.gmra.mrb[56].mxu1 %v5505_v32 }
 0x376   : > { %1937 = vmatprep.mubr.f32.mxu0 %v5874_v21  ;;  %3837 = vmatprep.mubr.msk.f32.mxu1 %vm4790_vm10, %v5874_v21  ;;  %v1827_v53 = vadd.f32 %v1824_v1, %v1821_v30 }
 0x377   : > { %4251 = vmatpush1.bf16.msra.mxu0 %v4905_v33  ;;  %4281 = vmatpush3.bf16.msra.mxu1 %v5059_v39 }
 0x378   : > { %v5518_v48 = vsel %vm1845_vm4, %v1827_v53, %v5447_v12  ;;  %4253 = vmatprep.subr.bf16.mxu0 %v4911_v35  ;;  %4282 = vmatprep.subr.bf16.mxu1 %v5875_v7 }
 0x379   : > { %1938 = vmatmul.mubr.f32.gmra.mrb[22].mxu0 %v5518_v48  ;;  %3838 = vmatmul.mubr.f32.gmra.mrb[58].mxu1 %v5518_v48 }
 0x37a   : > { %2196 = vmatprep.mubr.f32.mxu0 %v5874_v21  ;;  %3872 = vmatprep.mubr.msk.f32.mxu1 %vm4790_vm10, %v5874_v21 }
 0x37b   : > { %4255 = vmatpush1.bf16.msra.mxu0 %v4929_v44  ;;  %4284 = vmatpush3.bf16.msra.mxu1 %v5078_v47 }
 0x37c   : > { %4257 = vmatprep.subr.bf16.mxu0 %v4935_v46  ;;  %4285 = vmatprep.subr.bf16.mxu1 %v5875_v7 }
 0x37f   : > { %4259 = vmatpush1.bf16.msra.mxu0 %v4951_v52  ;;  %4287 = vmatpush3.bf16.msra.mxu1 %v5095_v56 }
 0x380   : > { %4261 = vmatprep.subr.bf16.mxu0 %v4958_v54  ;;  %4288 = vmatprep.subr.bf16.mxu1 %v5875_v7 }
 0x383   : > { %4263 = vmatpush1.bf16.msra.mxu0 %v4974_v60  ;;  %4290 = vmatpush3.bf16.msra.mxu1 %v5110_v4 }
 0x384   : > { %4265 = vmatprep.subr.bf16.mxu0 %v4986_v62  ;;  %4291 = vmatprep.subr.bf16.mxu1 %v5875_v7 }
 0x387   : > { %4267 = vmatpush1.bf16.msra.mxu0 %v5007_v9  ;;  %4293 = vmatpush3.bf16.msra.mxu1 %v5125_v17 }
 0x388   : > { %4269 = vmatprep.subr.bf16.mxu0 %v5018_v14  ;;  %4294 = vmatprep.subr.bf16.mxu1 %v5875_v7 }
 0x38b   : > { %4271 = vmatpush1.bf16.msra.mxu0 %v5041_v29  ;;  %4296 = vmatpush3.bf16.msra.mxu1 %v5140_v27 }
 0x38c   : > { %4273 = vmatprep.subr.bf16.mxu0 %v5045_v36  ;;  %4297 = vmatprep.subr.bf16.mxu1 %v5875_v7 }
 0x38f   : > { %4275 = vmatpush1.bf16.msra.mxu0 %v5061_v40  ;;  %4299 = vmatpush3.bf16.msra.mxu1 %v5156_v41 }
 0x390   : > { %4301 = vmatprep.subr.bf16.mxu0 %v4873_v16  ;;  %4332 = vmatprep.subr.bf16.mxu1 %v5875_v7 }
 0x444   : > { %v1927_v12 = vpop.f32.mrb[18].mxu0  ;;  %v2010_v63 = vpop.f32.mrb[54].mxu1 }
 0x445   : > { %v2030_v8 = vadd.f32 %v1927_v12, %v5333_v50  ;;  %v1929_v26 = vpop.f32.mrb[19].mxu0  ;;  %v3833_v5 = vpop.f32.mrb[55].mxu1 }
 0x446   : > { %v2031_v55 = vadd.f32 %v1929_v26, %v5339_v0 }
 0x447   : > { %v3420_v49 = vmul.f32 -1.442695, %v2030_v8 }
 0x448   : > { %v1933_v59 = vpop.f32.mrb[20].mxu0  ;;  %v2015_v61 = vpop.f32.mrb[56].mxu1  ;;  %v3421_v6 = vmul.f32 -1.442695, %v2031_v55 }
 0x449   : > { %4628 = vpow2.f32 %v3420_v49  ;;  %v2032_v18 = vadd.f32 %v1933_v59, %v5333_v50  ;;  %v1935_v19 = vpop.f32.mrb[21].mxu0  ;;  %v3836_v11 = vpop.f32.mrb[57].mxu1 }
 0x44a   : > { %v2033_v43 = vadd.f32 %v1935_v19, %v5339_v0  ;;  %v2075_v19 = vadd.f32 %v5354_v2, %v2010_v63 }
 0x44b   : > { %v3422_v3 = vmul.f32 -1.442695, %v2032_v18 }
 0x44c   : > { %v1939_v34 = vpop.f32.mrb[22].mxu0  ;;  %v2020_v31 = vpop.f32.mrb[58].mxu1  ;;  %v3423_v58 = vmul.f32 -1.442695, %v2033_v43 }
 0x44d   : > { %4630 = vpow2.f32 %v3422_v3  ;;  %v2034_v57 = vadd.f32 %v1939_v34, %v5333_v50  ;;  %v1941_v13 = vpop.f32.mrb[23].mxu0  ;;  %v3839_v10 = vpop.f32.mrb[59].mxu1 }
 0x44e   : > { %v2035_v1 = vadd.f32 %v1941_v13, %v5339_v0  ;;  %4632 = vpow2.f32 %v3421_v6 }
 0x44f   : > { %v3424_v30 = vmul.f32 -1.442695, %v2034_v57  ;;  %v2076_v57 = vadd.f32 %v5354_v2, %v2015_v61 }
 0x450   : > { %v3425_v53 = vmul.f32 -1.442695, %v2035_v1  ;;  %v2077_v1 = vadd.f32 %v5354_v2, %v2020_v31 }
 0x451   : > { %4634 = vpow2.f32 %v3424_v30 }
 0x452   : > { %4636 = vpow2.f32 %v3423_v58 }
 0x453   : > { %v4629_v20 = vpop.eup %4628 }
 0x454   : > { %v2054_v12 = vadd.f32 1.0, %v4629_v20 }
 0x456   : > { %4638 = vrcp.f32 %v2054_v12 }
 0x457   : > { %v4631_v8 = vpop.eup %4630  ;;  %4640 = vpow2.f32 %v3425_v53 }
 0x458   : > { %v2056_v26 = vadd.f32 1.0, %v4631_v8  ;;  %v4633_v5 = vpop.eup %4632 }
 0x459   : > { %v2055_v18 = vadd.f32 1.0, %v4633_v5 }
 0x45a   : > { %4642 = vrcp.f32 %v2056_v26 }
 0x45b   : > { %v4635_v49 = vpop.eup %4634 }
 0x45c   : > { %v2058_v55 = vadd.f32 1.0, %v4635_v49  ;;  %v4637_v59 = vpop.eup %4636 }
 0x45d   : > { %v2057_v3 = vadd.f32 1.0, %v4637_v59 }
 0x45e   : > { %4644 = vrcp.f32 %v2058_v55  ;;  %v2107_v55 = vpop.permute.xlu1 %2106 }
 0x45f   : > { %4646 = vrcp.f32 %v2055_v18  ;;  %vm2114_vm5 = vcmp.eq.s32.totalorder %v2107_v55, 1 }
 0x460   : > { %v4639_v11 = vpop.eup %4638  ;;  %4648 = vrcp.f32 %v2057_v3 }
 0x461   : > { %v4641_v43 = vpop.eup %4640  ;;  %v2078_v6 = vmul.f32 %v4639_v11, %v2075_v19 }
 0x462   : > { %v2059_v10 = vadd.f32 1.0, %v4641_v43 }
 0x463   : > { %v2081_v34 = vadd.f32 %v2078_v6, %v5301_v51 }
 0x464   : > { %v4643_v13 = vpop.eup %4642 }
 0x465   : > { %4650 = vtanh.f32 %v2081_v34  ;;  %v2079_v58 = vmul.f32 %v4643_v13, %v2076_v57  ;;  %v2113_v57 = vpop.permute.xlu1 %2112 }
 0x466   : > { %4652 = vrcp.f32 %v2059_v10  ;;  %vm2116_vm7 = vcmp.eq.s32.totalorder %v2113_v57, 1 }
 0x467   : > { %v2082_v30 = vadd.f32 %v2079_v58, %v5307_v45 }
 0x468   : > { %v4645_v20 = vpop.eup %4644 }
 0x469   : > { %4654 = vtanh.f32 %v2082_v30  ;;  %v2080_v63 = vmul.f32 %v4645_v20, %v2077_v1  ;;  %v4647_v53 = vpop.eup %4646 }
 0x46a   : > { %v4649_v51 = vpop.eup %4648  ;;  %v2087_v8 = vsub.f32 1.0, %v4647_v53  ;;  %v2093_v5 = vmul.f32 %v4647_v53, %v5494_v38 }
 0x46b   : > { %v2083_v12 = vadd.f32 %v2080_v63, %v5305_v24  ;;  %v2088_v45 = vsub.f32 1.0, %v4649_v51  ;;  %v2094_v19 = vmul.f32 %v4649_v51, %v5505_v32  ;;  %v2110_v24 = vpop.permute.xlu0 %2109 }
 0x46c   : > { %vm2115_vm6 = vcmp.eq.s32.totalorder %v2110_v24, 1 }
 0x46d   : > { %4656 = vtanh.f32 %v2083_v12 }
 0x46f   : > { %v4651_v61 = vpop.eup %4650 }
 0x470   : > { %v2090_v26 = vmul.f32 %v4651_v61, %v2087_v8  ;;  %v4653_v49 = vpop.eup %4652 }
 0x471   : > { %v2089_v3 = vsub.f32 1.0, %v4653_v49  ;;  %v2095_v34 = vmul.f32 %v4653_v49, %v5518_v48 }
 0x472   : > { %v2096_v59 = vadd.f32 %v2093_v5, %v2090_v26 }
 0x473   : > { %v4655_v18 = vpop.eup %4654 }
 0x474   : > { %v5565_v2 = vsel %vm2114_vm5, %v2096_v59, %v5494_v38  ;;  %v2091_v31 = vmul.f32 %v4655_v18, %v2088_v45 }
 0x475   : > { %2197 = vmatmul.mubr.f32.vlgmr.msra.gmra.mrb[24].mxu0 %v5565_v2  ;;  %3873 = vmatmul.mubr.f32.vlgmr.msra.gmra.mrb[60].mxu1 %v5565_v2 }
 0x476   : > { %2202 = vmatprep.mubr.f32.mxu0 %v5874_v21  ;;  %3875 = vmatprep.mubr.msk.f32.mxu1 %vm4790_vm10, %v5874_v21  ;;  %v2097_v11 = vadd.f32 %v2094_v19, %v2091_v31 }
 0x477   : > { %v4657_v43 = vpop.eup %4656  ;;  %4303 = vmatpush1.bf16.msra.mxu0 %v4882_v22  ;;  %4334 = vmatpush3.bf16.msra.mxu1 %v5036_v28 }
 0x478   : > { %v5576_v38 = vsel %vm2115_vm6, %v2097_v11, %v5505_v32  ;;  %v2092_v6 = vmul.f32 %v4657_v43, %v2089_v3  ;;  %4305 = vmatprep.subr.bf16.mxu0 %v4889_v25  ;;  %4335 = vmatprep.subr.bf16.mxu1 %v5875_v7 }
 0x479   : > { %2203 = vmatmul.mubr.f32.gmra.mrb[26].mxu0 %v5576_v38  ;;  %3876 = vmatmul.mubr.f32.gmra.mrb[62].mxu1 %v5576_v38 }
 0x47a   : > { %2208 = vmatprep.mubr.f32.mxu0 %v5874_v21  ;;  %3878 = vmatprep.mubr.msk.f32.mxu1 %vm4790_vm10, %v5874_v21  ;;  %v2098_v13 = vadd.f32 %v2095_v34, %v2092_v6 }
 0x47b   : > { %4307 = vmatpush1.bf16.msra.mxu0 %v4905_v33  ;;  %4337 = vmatpush3.bf16.msra.mxu1 %v5059_v39 }
 0x47c   : > { %v5589_v32 = vsel %vm2116_vm7, %v2098_v13, %v5518_v48  ;;  %4309 = vmatprep.subr.bf16.mxu0 %v4911_v35  ;;  %4338 = vmatprep.subr.bf16.mxu1 %v5875_v7 }
 0x47d   : > { %2209 = vmatmul.mubr.f32.gmra.mrb[28].mxu0 %v5589_v32  ;;  %3879 = vmatmul.mubr.f32.gmra.mrb[64].mxu1 %v5589_v32 }
 0x47e   : > { %2467 = vmatprep.mubr.f32.mxu0 %v5874_v21  ;;  %3913 = vmatprep.mubr.msk.f32.mxu1 %vm4790_vm10, %v5874_v21 }
 0x47f   : > { %4311 = vmatpush1.bf16.msra.mxu0 %v4929_v44  ;;  %4340 = vmatpush3.bf16.msra.mxu1 %v5078_v47 }
 0x480   : > { %4313 = vmatprep.subr.bf16.mxu0 %v4935_v46  ;;  %4341 = vmatprep.subr.bf16.mxu1 %v5875_v7 }
 0x483   : > { %4315 = vmatpush1.bf16.msra.mxu0 %v4951_v52  ;;  %4343 = vmatpush3.bf16.msra.mxu1 %v5095_v56 }
 0x484   : > { %4317 = vmatprep.subr.bf16.mxu0 %v4958_v54  ;;  %4344 = vmatprep.subr.bf16.mxu1 %v5875_v7 }
 0x487   : > { %4319 = vmatpush1.bf16.msra.mxu0 %v4974_v60  ;;  %4346 = vmatpush3.bf16.msra.mxu1 %v5110_v4 }
 0x488   : > { %4321 = vmatprep.subr.bf16.mxu0 %v4986_v62  ;;  %4347 = vmatprep.subr.bf16.mxu1 %v5875_v7 }
 0x48b   : > { %4323 = vmatpush1.bf16.msra.mxu0 %v5007_v9  ;;  %4349 = vmatpush3.bf16.msra.mxu1 %v5125_v17 }
 0x48c   : > { %4325 = vmatprep.subr.bf16.mxu0 %v5018_v14  ;;  %4350 = vmatprep.subr.bf16.mxu1 %v5875_v7 }
 0x48f   : > { %4327 = vmatpush1.bf16.msra.mxu0 %v5041_v29  ;;  %4352 = vmatpush3.bf16.msra.mxu1 %v5140_v27 }
 0x490   : > { %4329 = vmatprep.subr.bf16.mxu0 %v5045_v36  ;;  %4353 = vmatprep.subr.bf16.mxu1 %v5875_v7 }
 0x493   : > { %4331 = vmatpush1.bf16.msra.mxu0 %v5061_v40  ;;  %4355 = vmatpush3.bf16.msra.mxu1 %v5156_v41 }
 0x494   : > { %4357 = vmatprep.subr.bf16.mxu0 %v4873_v16  ;;  %4388 = vmatprep.subr.bf16.mxu1 %v5875_v7 }
 0x548   : > { %v2198_v48 = vpop.f32.mrb[24].mxu0  ;;  %v2281_v10 = vpop.f32.mrb[60].mxu1 }
 0x549   : > { %v2301_v58 = vadd.f32 %v2198_v48, %v5333_v50  ;;  %v2200_v30 = vpop.f32.mrb[25].mxu0  ;;  %v3874_v1 = vpop.f32.mrb[61].mxu1 }
 0x54a   : > { %v2302_v63 = vadd.f32 %v2200_v30, %v5339_v0 }
 0x54b   : > { %v3426_v20 = vmul.f32 -1.442695, %v2301_v58 }
 0x54c   : > { %v2204_v53 = vpop.f32.mrb[26].mxu0  ;;  %v2286_v12 = vpop.f32.mrb[62].mxu1  ;;  %v3427_v49 = vmul.f32 -1.442695, %v2302_v63 }
 0x54d   : > { %4658 = vpow2.f32 %v3426_v20  ;;  %v2303_v51 = vadd.f32 %v2204_v53, %v5333_v50  ;;  %v2206_v8 = vpop.f32.mrb[27].mxu0  ;;  %v3877_v61 = vpop.f32.mrb[63].mxu1  ;;  %v5629_v20 = vld [vmem:[%s5351_s30] ss:$0 sm:$0xff] }
 0x54e   : > { %v2304_v5 = vadd.f32 %v2206_v8, %v5339_v0  ;;  %v2346_v63 = vadd.f32 %v5629_v20, %v2281_v10 }
 0x54f   : > { %v3428_v26 = vmul.f32 -1.442695, %v2303_v51 }
 0x550   : > { %v2210_v55 = vpop.f32.mrb[28].mxu0  ;;  %v2291_v59 = vpop.f32.mrb[64].mxu1  ;;  %v3429_v19 = vmul.f32 -1.442695, %v2304_v5  ;;  %v2347_v5 = vadd.f32 %v5629_v20, %v2286_v12 }
 0x551   : > { %4660 = vpow2.f32 %v3428_v26  ;;  %v2305_v45 = vadd.f32 %v2210_v55, %v5333_v50  ;;  %v2212_v18 = vpop.f32.mrb[29].mxu0  ;;  %v3880_v31 = vpop.f32.mrb[65].mxu1 }
 0x552   : > { %v2306_v11 = vadd.f32 %v2212_v18, %v5339_v0  ;;  %4662 = vpow2.f32 %v3427_v49  ;;  %v2348_v31 = vadd.f32 %v5629_v20, %v2291_v59 }
 0x553   : > { %v3430_v24 = vmul.f32 -1.442695, %v2305_v45 }
 0x554   : > { %v3431_v43 = vmul.f32 -1.442695, %v2306_v11 }
 0x555   : > { %4664 = vpow2.f32 %v3430_v24 }
 0x556   : > { %4666 = vpow2.f32 %v3429_v19 }
 0x557   : > { %v4659_v3 = vpop.eup %4658 }
 0x558   : > { %v2325_v6 = vadd.f32 1.0, %v4659_v3 }
 0x55a   : > { %4668 = vrcp.f32 %v2325_v6 }
 0x55b   : > { %v4661_v34 = vpop.eup %4660  ;;  %4670 = vpow2.f32 %v3431_v43 }
 0x55c   : > { %v2327_v57 = vadd.f32 1.0, %v4661_v34  ;;  %v4663_v13 = vpop.eup %4662 }
 0x55d   : > { %v2326_v1 = vadd.f32 1.0, %v4663_v13 }
 0x55e   : > { %4672 = vrcp.f32 %v2327_v57  ;;  %v2378_v57 = vpop.permute.xlu0 %2377 }
 0x55f   : > { %v4665_v48 = vpop.eup %4664  ;;  %vm2385_vm8 = vcmp.eq.s32.totalorder %v2378_v57, 1 }
 0x560   : > { %v2329_v58 = vadd.f32 1.0, %v4665_v48  ;;  %v4667_v30 = vpop.eup %4666 }
 0x561   : > { %v2328_v51 = vadd.f32 1.0, %v4667_v30 }
 0x562   : > { %4674 = vrcp.f32 %v2329_v58 }
 0x563   : > { %4676 = vrcp.f32 %v2326_v1 }
 0x564   : > { %v4669_v53 = vpop.eup %4668  ;;  %4678 = vrcp.f32 %v2328_v51 }
 0x565   : > { %v4671_v8 = vpop.eup %4670  ;;  %v2349_v61 = vmul.f32 %v4669_v53, %v2346_v63 }
 0x566   : > { %v2330_v55 = vadd.f32 1.0, %v4671_v8 }
 0x567   : > { %v2352_v26 = vadd.f32 %v2349_v61, %v5311_v23  ;;  %v2384_v61 = vpop.permute.xlu0 %2383 }
 0x568   : > { %v4673_v49 = vpop.eup %4672  ;;  %vm2387_vm11 = vcmp.eq.s32.totalorder %v2384_v61, 1 }
 0x569   : > { %4680 = vtanh.f32 %v2352_v26  ;;  %v2350_v45 = vmul.f32 %v4673_v49, %v2347_v5 }
 0x56a   : > { %4682 = vrcp.f32 %v2330_v55 }
 0x56b   : > { %v2353_v18 = vadd.f32 %v2350_v45, %v5309_v15 }
 0x56c   : > { %v4675_v19 = vpop.eup %4674 }
 0x56d   : > { %4684 = vtanh.f32 %v2353_v18  ;;  %v2351_v10 = vmul.f32 %v4675_v19, %v2348_v31  ;;  %v4677_v24 = vpop.eup %4676 }
 0x56e   : > { %v4679_v23 = vpop.eup %4678  ;;  %v2358_v3 = vsub.f32 1.0, %v4677_v24  ;;  %v2364_v6 = vmul.f32 %v4677_v24, %v5565_v2 }
 0x56f   : > { %v2354_v11 = vadd.f32 %v2351_v10, %v5315_v42  ;;  %v2359_v15 = vsub.f32 1.0, %v4679_v23  ;;  %v2365_v30 = vmul.f32 %v4679_v23, %v5576_v38  ;;  %v2381_v42 = vpop.permute.xlu1 %2380 }
 0x570   : > { %vm2386_vm9 = vcmp.eq.s32.totalorder %v2381_v42, 1 }
 0x571   : > { %4686 = vtanh.f32 %v2354_v11 }
 0x573   : > { %v4681_v12 = vpop.eup %4680 }
 0x574   : > { %v2361_v43 = vmul.f32 %v4681_v12, %v2358_v3  ;;  %v4683_v34 = vpop.eup %4682 }
 0x575   : > { %v2360_v63 = vsub.f32 1.0, %v4683_v34  ;;  %v2366_v8 = vmul.f32 %v4683_v34, %v5589_v32 }
 0x576   : > { %v2367_v13 = vadd.f32 %v2364_v6, %v2361_v43 }
 0x577   : > { %v4685_v48 = vpop.eup %4684 }
 0x578   : > { %v5639_v59 = vsel %vm2385_vm8, %v2367_v13, %v5565_v2  ;;  %v2362_v58 = vmul.f32 %v4685_v48, %v2359_v15 }
 0x579   : > { %2468 = vmatmul.mubr.f32.vlgmr.msra.gmra.mrb[30].mxu0 %v5639_v59  ;;  %3914 = vmatmul.mubr.f32.vlgmr.msra.gmra.mrb[66].mxu1 %v5639_v59 }
 0x57a   : > { %2473 = vmatprep.mubr.f32.mxu0 %v5874_v21  ;;  %3916 = vmatprep.mubr.msk.f32.mxu1 %vm4790_vm10, %v5874_v21  ;;  %v2368_v1 = vadd.f32 %v2365_v30, %v2362_v58 }
 0x57b   : > { %v4687_v53 = vpop.eup %4686  ;;  %4359 = vmatpush1.bf16.msra.mxu0 %v4882_v22  ;;  %4390 = vmatpush3.bf16.msra.mxu1 %v5036_v28 }
 0x57c   : > { %v5650_v2 = vsel %vm2386_vm9, %v2368_v1, %v5576_v38  ;;  %v2363_v51 = vmul.f32 %v4687_v53, %v2360_v63  ;;  %4361 = vmatprep.subr.bf16.mxu0 %v4889_v25  ;;  %4391 = vmatprep.subr.bf16.mxu1 %v5875_v7 }
 0x57d   : > { %2474 = vmatmul.mubr.f32.gmra.mrb[32].mxu0 %v5650_v2  ;;  %3917 = vmatmul.mubr.f32.gmra.mrb[68].mxu1 %v5650_v2 }
 0x57e   : > { %2479 = vmatprep.mubr.f32.mxu0 %v5874_v21  ;;  %3919 = vmatprep.mubr.msk.f32.mxu1 %vm4790_vm10, %v5874_v21  ;;  %v2369_v26 = vadd.f32 %v2366_v8, %v2363_v51 }
 0x57f   : > { %4363 = vmatpush1.bf16.msra.mxu0 %v4905_v33  ;;  %4393 = vmatpush3.bf16.msra.mxu1 %v5059_v39 }
 0x580   : > { %v5663_v38 = vsel %vm2387_vm11, %v2369_v26, %v5589_v32  ;;  %4365 = vmatprep.subr.bf16.mxu0 %v4911_v35  ;;  %4394 = vmatprep.subr.bf16.mxu1 %v5875_v7 }
 0x581   : > { %2480 = vmatmul.mubr.f32.gmra.mrb[34].mxu0 %v5663_v38  ;;  %3920 = vmatmul.mubr.f32.gmra.mrb[70].mxu1 %v5663_v38 }
 0x582   : > { %2738 = vmatprep.mubr.f32.mxu0 %v5874_v21  ;;  %3954 = vmatprep.mubr.msk.f32.mxu1 %vm4790_vm10, %v5874_v21 }
 0x583   : > { %4367 = vmatpush1.bf16.msra.mxu0 %v4929_v44  ;;  %4396 = vmatpush3.bf16.msra.mxu1 %v5078_v47 }
 0x584   : > { %4369 = vmatprep.subr.bf16.mxu0 %v4935_v46  ;;  %4397 = vmatprep.subr.bf16.mxu1 %v5875_v7 }
 0x587   : > { %4371 = vmatpush1.bf16.msra.mxu0 %v4951_v52  ;;  %4399 = vmatpush3.bf16.msra.mxu1 %v5095_v56 }
 0x588   : > { %4373 = vmatprep.subr.bf16.mxu0 %v4958_v54  ;;  %4400 = vmatprep.subr.bf16.mxu1 %v5875_v7 }
 0x58b   : > { %4375 = vmatpush1.bf16.msra.mxu0 %v4974_v60  ;;  %4402 = vmatpush3.bf16.msra.mxu1 %v5110_v4 }
 0x58c   : > { %4377 = vmatprep.subr.bf16.mxu0 %v4986_v62  ;;  %4403 = vmatprep.subr.bf16.mxu1 %v5875_v7 }
 0x58f   : > { %4379 = vmatpush1.bf16.msra.mxu0 %v5007_v9  ;;  %4405 = vmatpush3.bf16.msra.mxu1 %v5125_v17 }
 0x590   : > { %4381 = vmatprep.subr.bf16.mxu0 %v5018_v14  ;;  %4406 = vmatprep.subr.bf16.mxu1 %v5875_v7 }
 0x593   : > { %4383 = vmatpush1.bf16.msra.mxu0 %v5041_v29  ;;  %4408 = vmatpush3.bf16.msra.mxu1 %v5140_v27 }
 0x594   : > { %4385 = vmatprep.subr.bf16.mxu0 %v5045_v36  ;;  %4409 = vmatprep.subr.bf16.mxu1 %v5875_v7 }
 0x597   : > { %4387 = vmatpush1.bf16.msra.mxu0 %v5061_v40  ;;  %4411 = vmatpush3.bf16.msra.mxu1 %v5156_v41 }
 0x598   : > { %4413 = vmatprep.subr.bf16.mxu0 %v4873_v16  ;;  %4444 = vmatprep.subr.bf16.mxu1 %v5875_v7 }
 0x64c   : > { %v2469_v32 = vpop.f32.mrb[30].mxu0  ;;  %v2552_v5 = vpop.f32.mrb[66].mxu1 }
 0x64d   : > { %v2572_v49 = vadd.f32 %v2469_v32, %v5333_v50  ;;  %v2471_v55 = vpop.f32.mrb[31].mxu0  ;;  %v3915_v45 = vpop.f32.mrb[67].mxu1 }
 0x64e   : > { %v2573_v31 = vadd.f32 %v2471_v55, %v5339_v0 }
 0x64f   : > { %v3432_v18 = vmul.f32 -1.442695, %v2572_v49  ;;  %v2617_v49 = vadd.f32 %v5629_v20, %v2552_v5 }
 0x650   : > { %v2475_v19 = vpop.f32.mrb[32].mxu0  ;;  %v2557_v10 = vpop.f32.mrb[68].mxu1  ;;  %v3433_v12 = vmul.f32 -1.442695, %v2573_v31 }
 0x651   : > { %4688 = vpow2.f32 %v3432_v18  ;;  %v2574_v24 = vadd.f32 %v2475_v19, %v5333_v50  ;;  %v2477_v11 = vpop.f32.mrb[33].mxu0  ;;  %v3918_v23 = vpop.f32.mrb[69].mxu1 }
 0x652   : > { %v2575_v16 = vadd.f32 %v2477_v11, %v5339_v0 }
 0x653   : > { %v3434_v3 = vmul.f32 -1.442695, %v2574_v24  ;;  %v2618_v24 = vadd.f32 %v5629_v20, %v2557_v10 }
 0x654   : > { %v2481_v43 = vpop.f32.mrb[34].mxu0  ;;  %v2562_v6 = vpop.f32.mrb[70].mxu1  ;;  %v3435_v15 = vmul.f32 -1.442695, %v2575_v16  ;;  %v5876_v16 = vld [vmem:[#allocation16_spill] sm:$0xff] }
 0x655   : > { %4690 = vpow2.f32 %v3434_v3  ;;  %v2576_v34 = vadd.f32 %v2481_v43, %v5333_v50  ;;  %v2483_v57 = vpop.f32.mrb[35].mxu0  ;;  %v3921_v13 = vpop.f32.mrb[71].mxu1  ;;  %v2619_v43 = vadd.f32 %v5629_v20, %v2562_v6 }
 0x656   : > { %v2577_v58 = vadd.f32 %v2483_v57, %v5339_v0  ;;  %4692 = vpow2.f32 %v3433_v12  ;;  %v5877_v13 = vld [vmem:[#allocation15_spill] sm:$0xff] }
 0x657   : > { %v3436_v48 = vmul.f32 -1.442695, %v2576_v34 }
 0x658   : > { %v3437_v42 = vmul.f32 -1.442695, %v2577_v58 }
 0x659   : > { %4694 = vpow2.f32 %v3436_v48 }
 0x65a   : > { %4696 = vpow2.f32 %v3435_v15 }
 0x65b   : > { %v4689_v30 = vpop.eup %4688 }
 0x65c   : > { %v2596_v1 = vadd.f32 1.0, %v4689_v30 }
 0x65e   : > { %4698 = vrcp.f32 %v2596_v1  ;;  %v2649_v1 = vpop.permute.xlu1 %2648 }
 0x65f   : > { %v4691_v63 = vpop.eup %4690  ;;  %4700 = vpow2.f32 %v3437_v42  ;;  %vm2656_vm12 = vcmp.eq.s32.totalorder %v2649_v1, 1 }
 0x660   : > { %v2598_v53 = vadd.f32 1.0, %v4691_v63  ;;  %v4693_v51 = vpop.eup %4692 }
 0x661   : > { %v2597_v32 = vadd.f32 1.0, %v4693_v51 }
 0x662   : > { %4702 = vrcp.f32 %v2598_v53 }
 0x663   : > { %v4695_v8 = vpop.eup %4694 }
 0x664   : > { %v2600_v61 = vadd.f32 1.0, %v4695_v8  ;;  %v4697_v26 = vpop.eup %4696 }
 0x665   : > { %v2599_v45 = vadd.f32 1.0, %v4697_v26  ;;  %v2652_v26 = vpop.permute.xlu0 %2651 }
 0x666   : > { %4704 = vrcp.f32 %v2600_v61  ;;  %vm2657_vm13 = vcmp.eq.s32.totalorder %v2652_v26, 1 }
 0x667   : > { %4706 = vrcp.f32 %v2597_v32 }
 0x668   : > { %v4699_v55 = vpop.eup %4698  ;;  %4708 = vrcp.f32 %v2599_v45 }
 0x669   : > { %v4701_v18 = vpop.eup %4700  ;;  %v2620_v31 = vmul.f32 %v4699_v55, %v2617_v49 }
 0x66a   : > { %v2601_v23 = vadd.f32 1.0, %v4701_v18 }
 0x66b   : > { %v2623_v19 = vadd.f32 %v2620_v31, %v5313_v37  ;;  %v2655_v31 = vpop.permute.xlu1 %2654 }
 0x66c   : > { %v4703_v11 = vpop.eup %4702  ;;  %vm2658_vm14 = vcmp.eq.s32.totalorder %v2655_v31, 1 }
 0x66d   : > { %4710 = vtanh.f32 %v2623_v19  ;;  %v2621_v3 = vmul.f32 %v4703_v11, %v2618_v24  ;;  %v5882_v19 = vld [vmem:[#allocation7_spill] sm:$0xff] }
 0x66e   : > { %4712 = vrcp.f32 %v2601_v23 }
 0x66f   : > { %v2624_v12 = vadd.f32 %v2621_v3, %v5876_v16  ;;  %v5883_v16 = vld [vmem:[#allocation8_spill] sm:$0xff] }
 0x670   : > { %v4705_v34 = vpop.eup %4704 }
 0x671   : > { %4714 = vtanh.f32 %v2624_v12  ;;  %v2622_v5 = vmul.f32 %v4705_v34, %v2619_v43  ;;  %v4707_v57 = vpop.eup %4706 }
 0x672   : > { %v4709_v37 = vpop.eup %4708  ;;  %v2629_v48 = vsub.f32 1.0, %v4707_v57  ;;  %v2635_v30 = vmul.f32 %v4707_v57, %v5639_v59 }
 0x673   : > { %v2625_v15 = vadd.f32 %v2622_v5, %v5877_v13  ;;  %v2630_v53 = vsub.f32 1.0, %v4709_v37  ;;  %v2636_v61 = vmul.f32 %v4709_v37, %v5650_v2 }
 0x675   : > { %4716 = vtanh.f32 %v2625_v15 }
 0x677   : > { %v4711_v10 = vpop.eup %4710 }
 0x678   : > { %v2632_v58 = vmul.f32 %v4711_v10, %v2629_v48  ;;  %v4713_v42 = vpop.eup %4712 }
 0x679   : > { %v2631_v49 = vsub.f32 1.0, %v4713_v42  ;;  %v2637_v18 = vmul.f32 %v4713_v42, %v5663_v38 }
 0x67a   : > { %v2638_v63 = vadd.f32 %v2635_v30, %v2632_v58 }
 0x67b   : > { %v4715_v51 = vpop.eup %4714 }
 0x67c   : > { %v5710_v6 = vsel %vm2656_vm12, %v2638_v63, %v5639_v59  ;;  %v2633_v8 = vmul.f32 %v4715_v51, %v2630_v53 }
 0x67d   : > { %2739 = vmatmul.mubr.f32.vlgmr.msra.gmra.mrb[36].mxu0 %v5710_v6  ;;  %3955 = vmatmul.mubr.f32.vlgmr.msra.gmra.mrb[72].mxu1 %v5710_v6 }
 0x67e   : > { %2744 = vmatprep.mubr.f32.mxu0 %v5874_v21  ;;  %3957 = vmatprep.mubr.msk.f32.mxu1 %vm4790_vm10, %v5874_v21  ;;  %v2639_v32 = vadd.f32 %v2636_v61, %v2633_v8 }
 0x67f   : > { %v4717_v55 = vpop.eup %4716  ;;  %4415 = vmatpush1.bf16.msra.mxu0 %v4882_v22  ;;  %4446 = vmatpush3.bf16.msra.mxu1 %v5036_v28 }
 0x680   : > { %v5721_v59 = vsel %vm2657_vm13, %v2639_v32, %v5650_v2  ;;  %v2634_v45 = vmul.f32 %v4717_v55, %v2631_v49  ;;  %4417 = vmatprep.subr.bf16.mxu0 %v4889_v25  ;;  %4447 = vmatprep.subr.bf16.mxu1 %v5875_v7  ;;  %v5884_v32 = vld [vmem:[#allocation18_spill] sm:$0xff] }
 0x681   : > { %2745 = vmatmul.mubr.f32.gmra.mrb[38].mxu0 %v5721_v59  ;;  %3958 = vmatmul.mubr.f32.gmra.mrb[74].mxu1 %v5721_v59 }
 0x682   : > { %2750 = vmatprep.mubr.f32.mxu0 %v5874_v21  ;;  %3960 = vmatprep.mubr.msk.f32.mxu1 %vm4790_vm10, %v5874_v21  ;;  %v2640_v22 = vadd.f32 %v2637_v18, %v2634_v45 }
 0x683   : > { %4419 = vmatpush1.bf16.msra.mxu0 %v4905_v33  ;;  %4449 = vmatpush3.bf16.msra.mxu1 %v5059_v39 }
 0x684   : > { %v5734_v25 = vsel %vm2658_vm14, %v2640_v22, %v5663_v38  ;;  %4421 = vmatprep.subr.bf16.mxu0 %v4911_v35  ;;  %4450 = vmatprep.subr.bf16.mxu1 %v5875_v7  ;;  %v5885_v22 = vld [vmem:[#allocation17_spill] sm:$0xff] }
 0x685   : > { %2751 = vmatmul.mubr.f32.gmra.mrb[40].mxu0 %v5734_v25  ;;  %3961 = vmatmul.mubr.f32.gmra.mrb[76].mxu1 %v5734_v25 }
 0x686   : > { %3009 = vmatprep.mubr.f32.mxu0 %v5874_v21  ;;  %3995 = vmatprep.mubr.msk.f32.mxu1 %vm4790_vm10, %v5874_v21 }
 0x687   : > { %4423 = vmatpush1.bf16.msra.mxu0 %v4929_v44  ;;  %4452 = vmatpush3.bf16.msra.mxu1 %v5078_v47  ;;  %v5878_v44 = vld [vmem:[#allocation3_spill] sm:$0xff] }
 0x688   : > { %4425 = vmatprep.subr.bf16.mxu0 %v4935_v46  ;;  %4453 = vmatprep.subr.bf16.mxu1 %v5875_v7 }
 0x68b   : > { %4427 = vmatpush1.bf16.msra.mxu0 %v4951_v52  ;;  %4455 = vmatpush3.bf16.msra.mxu1 %v5095_v56 }
 0x68c   : > { %4429 = vmatprep.subr.bf16.mxu0 %v4958_v54  ;;  %4456 = vmatprep.subr.bf16.mxu1 %v5875_v7 }
 0x68f   : > { %4431 = vmatpush1.bf16.msra.mxu0 %v4974_v60  ;;  %4458 = vmatpush3.bf16.msra.mxu1 %v5110_v4  ;;  %v5879_v60 = vld [vmem:[#allocation4_spill] sm:$0xff]  ;;  %v5881_v4 = vld [vmem:[#allocation6_spill] sm:$0xff] }
 0x690   : > { %4433 = vmatprep.subr.bf16.mxu0 %v4986_v62  ;;  %4459 = vmatprep.subr.bf16.mxu1 %v5875_v7 }
 0x693   : > { %4435 = vmatpush1.bf16.msra.mxu0 %v5007_v9  ;;  %4461 = vmatpush3.bf16.msra.mxu1 %v5125_v17 }
 0x694   : > { %4437 = vmatprep.subr.bf16.mxu0 %v5018_v14  ;;  %4462 = vmatprep.subr.bf16.mxu1 %v5875_v7 }
 0x697   : > { %4439 = vmatpush1.bf16.msra.mxu0 %v5041_v29  ;;  %4464 = vmatpush3.bf16.msra.mxu1 %v5140_v27 }
 0x698   : > { %4441 = vmatprep.subr.bf16.mxu0 %v5045_v36  ;;  %4465 = vmatprep.subr.bf16.mxu1 %v5875_v7  ;;  %v5880_v36 = vld [vmem:[#allocation5_spill] sm:$0xff] }
 0x69b   : > { %4443 = vmatpush1.bf16.msra.mxu0 %v5061_v40  ;;  %4467 = vmatpush3.bf16.msra.mxu1 %v5156_v41 }
 0x750   : > { %v2740_v33 = vpop.f32.mrb[36].mxu0  ;;  %v2823_v35 = vpop.f32.mrb[72].mxu1 }
 0x751   : > { %v2837_v46 = vadd.f32 %v2740_v33, %v5878_v44  ;;  %v2742_v52 = vpop.f32.mrb[37].mxu0  ;;  %v3956_v54 = vpop.f32.mrb[73].mxu1  ;;  %v2888_v53 = vadd.f32 %v5629_v20, %v2823_v35 }
 0x752   : > { %v2838_v62 = vadd.f32 %v2742_v52, %v5879_v60  ;;  %v5886_v54 = vld [vmem:[#allocation20_spill] sm:$0xff] }
 0x753   : > { %v2843_v9 = vadd.f32 %v2837_v46, %v5333_v50 }
 0x754   : > { %v2746_v14 = vpop.f32.mrb[38].mxu0  ;;  %v2828_v28 = vpop.f32.mrb[74].mxu1  ;;  %v2844_v40 = vadd.f32 %v2838_v62, %v5339_v0 }
 0x755   : > { %v3438_v29 = vmul.f32 -1.442695, %v2843_v9  ;;  %v2839_v39 = vadd.f32 %v2746_v14, %v5880_v36  ;;  %v2748_v47 = vpop.f32.mrb[39].mxu0  ;;  %v3959_v56 = vpop.f32.mrb[75].mxu1  ;;  %v2889_v55 = vadd.f32 %v5629_v20, %v2828_v28 }
 0x756   : > { %v2840_v17 = vadd.f32 %v2748_v47, %v5881_v4  ;;  %v3439_v3 = vmul.f32 -1.442695, %v2844_v40 }
 0x757   : > { %4718 = vpow2.f32 %v3438_v29  ;;  %v2845_v27 = vadd.f32 %v2839_v39, %v5333_v50  ;;  %v2920_v39 = vpop.permute.xlu0 %2919 }
 0x758   : > { %v2752_v41 = vpop.f32.mrb[40].mxu0  ;;  %v2833_v7 = vpop.f32.mrb[76].mxu1  ;;  %v2846_v38 = vadd.f32 %v2840_v17, %v5339_v0  ;;  %vm2927_vm15 = vcmp.eq.s32.totalorder %v2920_v39, 1 }
 0x759   : > { %v3440_v2 = vmul.f32 -1.442695, %v2845_v27  ;;  %v2841_v24 = vadd.f32 %v2752_v41, %v5882_v19  ;;  %v2754_v11 = vpop.f32.mrb[41].mxu0  ;;  %v3962_v23 = vpop.f32.mrb[77].mxu1  ;;  %v2890_v44 = vadd.f32 %v5629_v20, %v2833_v7 }
 0x75a   : > { %v2842_v12 = vadd.f32 %v2754_v11, %v5883_v16  ;;  %v3441_v34 = vmul.f32 -1.442695, %v2846_v38  ;;  %v2923_v41 = vpop.permute.xlu1 %2922 }
 0x75b   : > { %4720 = vpow2.f32 %v3440_v2  ;;  %v2847_v43 = vadd.f32 %v2841_v24, %v5333_v50  ;;  %vm2928_vm1 = vcmp.eq.s32.totalorder %v2923_v41, 1  ;;  %v2926_v11 = vpop.permute.xlu0 %2925 }
 0x75c   : > { %v2848_v57 = vadd.f32 %v2842_v12, %v5339_v0  ;;  %4722 = vpow2.f32 %v3439_v3  ;;  %vm2929_vm2 = vcmp.eq.s32.totalorder %v2926_v11, 1  ;;  %v5887_v12 = vld [vmem:[#allocation9_spill] sm:$0xff] }
 0x75d   : > { %v3442_v5 = vmul.f32 -1.442695, %v2847_v43 }
 0x75e   : > { %v3443_v15 = vmul.f32 -1.442695, %v2848_v57  ;;  %v5888_v57 = vld [vmem:[#allocation10_spill] sm:$0xff] }
 0x75f   : > { %4724 = vpow2.f32 %v3442_v5 }
 0x760   : > { %4726 = vpow2.f32 %v3441_v34 }
 0x761   : > { %v4719_v13 = vpop.eup %4718 }
 0x762   : > { %v2867_v37 = vadd.f32 1.0, %v4719_v13 }
 0x764   : > { %4728 = vrcp.f32 %v2867_v37 }
 0x765   : > { %v4721_v48 = vpop.eup %4720  ;;  %4730 = vpow2.f32 %v3443_v15 }
 0x766   : > { %v2869_v10 = vadd.f32 1.0, %v4721_v48  ;;  %v4723_v58 = vpop.eup %4722 }
 0x767   : > { %v2868_v63 = vadd.f32 1.0, %v4723_v58 }
 0x768   : > { %4732 = vrcp.f32 %v2869_v10  ;;  %v5889_v10 = vld [vmem:[#allocation11_spill] sm:$0xff] }
 0x769   : > { %v4725_v30 = vpop.eup %4724 }
 0x76a   : > { %v2871_v42 = vadd.f32 1.0, %v4725_v30  ;;  %v4727_v1 = vpop.eup %4726 }
 0x76b   : > { %v2870_v8 = vadd.f32 1.0, %v4727_v1  ;;  %v5890_v1 = vld [vmem:[#allocation12_spill] sm:$0xff] }
 0x76c   : > { %4734 = vrcp.f32 %v2871_v42 }
 0x76d   : > { %4736 = vrcp.f32 %v2868_v63 }
 0x76e   : > { %v4729_v51 = vpop.eup %4728  ;;  %4738 = vrcp.f32 %v2870_v8 }
 0x76f   : > { %v4731_v61 = vpop.eup %4730  ;;  %v2891_v26 = vmul.f32 %v4729_v51, %v2888_v53 }
 0x770   : > { %v2872_v18 = vadd.f32 1.0, %v4731_v61 }
 0x771   : > { %v2894_v49 = vadd.f32 %v2891_v26, %v5884_v32  ;;  %v5891_v32 = vld [vmem:[#allocation13_spill] sm:$0xff] }
 0x772   : > { %v4733_v45 = vpop.eup %4732 }
 0x773   : > { %4740 = vtanh.f32 %v2894_v49  ;;  %v2892_v31 = vmul.f32 %v4733_v45, %v2889_v55 }
 0x774   : > { %4742 = vrcp.f32 %v2872_v18 }
 0x775   : > { %v2895_v33 = vadd.f32 %v2892_v31, %v5885_v22  ;;  %v5892_v31 = vld [vmem:[#allocation14_spill] sm:$0xff] }
 0x776   : > { %v4735_v46 = vpop.eup %4734 }
 0x777   : > { %4744 = vtanh.f32 %v2895_v33  ;;  %v2893_v35 = vmul.f32 %v4735_v46, %v2890_v44  ;;  %v4737_v52 = vpop.eup %4736 }
 0x778   : > { %v4739_v62 = vpop.eup %4738  ;;  %v2900_v9 = vsub.f32 1.0, %v4737_v52  ;;  %v2906_v29 = vmul.f32 %v4737_v52, %v5710_v6 }
 0x779   : > { %v2896_v60 = vadd.f32 %v2893_v35, %v5886_v54  ;;  %v2901_v56 = vsub.f32 1.0, %v4739_v62  ;;  %v2907_v27 = vmul.f32 %v4739_v62, %v5721_v59 }
 0x77b   : > { %4746 = vtanh.f32 %v2896_v60 }
 0x77d   : > { %v4741_v14 = vpop.eup %4740 }
 0x77e   : > { %v2903_v28 = vmul.f32 %v4741_v14, %v2900_v9  ;;  %v4743_v36 = vpop.eup %4742 }
 0x77f   : > { %v2902_v2 = vsub.f32 1.0, %v4743_v36  ;;  %v2908_v24 = vmul.f32 %v4743_v36, %v5734_v25 }
 0x780   : > { %v2909_v47 = vadd.f32 %v2906_v29, %v2903_v28 }
 0x781   : > { %v4745_v40 = vpop.eup %4744 }
 0x782   : > { %v5785_v4 = vsel %vm2927_vm15, %v2909_v47, %v5710_v6  ;;  %v2904_v17 = vmul.f32 %v4745_v40, %v2901_v56 }
 0x783   : > { %3010 = vmatmul.mubr.f32.vlgmr.msra.gmra.mrb[42].mxu0 %v5785_v4  ;;  %3996 = vmatmul.mubr.f32.vlgmr.msra.gmra.mrb[78].mxu1 %v5785_v4 }
 0x784   : > { %3015 = vmatprep.mubr.f32.mxu0 %v5874_v21  ;;  %3998 = vmatprep.mubr.msk.f32.mxu1 %vm4790_vm10, %v5874_v21  ;;  %v2910_v7 = vadd.f32 %v2907_v27, %v2904_v17  ;;  %v5893_v17 = vld [vmem:[#allocation19_spill] sm:$0xff] }
 0x785   : > { %v4747_v38 = vpop.eup %4746 }
 0x786   : > { %v5794_v6 = vsel %vm2928_vm1, %v2910_v7, %v5721_v59  ;;  %v2905_v19 = vmul.f32 %v4747_v38, %v2902_v2 }
 0x787   : > { %3016 = vmatmul.mubr.f32.gmra.mrb[44].mxu0 %v5794_v6  ;;  %3999 = vmatmul.mubr.f32.gmra.mrb[80].mxu1 %v5794_v6 }
 0x788   : > { %3021 = vmatprep.mubr.f32.mxu0 %v5874_v21  ;;  %4001 = vmatprep.mubr.msk.f32.mxu1 %vm4790_vm10, %v5874_v21  ;;  %v2911_v23 = vadd.f32 %v2908_v24, %v2905_v19  ;;  %v5894_v19 = vld [vmem:[#allocation22_spill] sm:$0xff] }
 0x78a   : > { %v5803_v3 = vsel %vm2929_vm2, %v2911_v23, %v5734_v25 }
 0x78b   : > { %3022 = vmatmul.mubr.f32.gmra.mrb[46].mxu0 %v5803_v3  ;;  %4002 = vmatmul.mubr.f32.gmra.mrb[82].mxu1 %v5803_v3 }
 0x856   : > { %v3011_v59 = vpop.f32.mrb[42].mxu0  ;;  %v3094_v16 = vpop.f32.mrb[78].mxu1 }
 0x857   : > { %v3108_v43 = vadd.f32 %v3011_v59, %v5887_v12  ;;  %v3013_v34 = vpop.f32.mrb[43].mxu0  ;;  %v3997_v5 = vpop.f32.mrb[79].mxu1  ;;  %v3159_v39 = vadd.f32 %v5629_v20, %v3094_v16  ;;  %v5895_v12 = vld [vmem:[#allocation21_spill] sm:$0xff] }
 0x858   : > { %v3109_v13 = vadd.f32 %v3013_v34, %v5888_v57 }
 0x859   : > { %v3114_v15 = vadd.f32 %v3108_v43, %v5333_v50 }
 0x85a   : > { %v3017_v21 = vpop.f32.mrb[44].mxu0  ;;  %v3099_v37 = vpop.f32.mrb[80].mxu1  ;;  %v3115_v42 = vadd.f32 %v3109_v13, %v5339_v0 }
 0x85b   : > { %v3444_v48 = vmul.f32 -1.442695, %v3114_v15  ;;  %v3110_v25 = vadd.f32 %v3017_v21, %v5889_v10  ;;  %v3019_v58 = vpop.f32.mrb[45].mxu0  ;;  %v4000_v30 = vpop.f32.mrb[81].mxu1  ;;  %v3160_v41 = vadd.f32 %v5629_v20, %v3099_v37 }
 0x85c   : > { %v3111_v63 = vadd.f32 %v3019_v58, %v5890_v1  ;;  %v3445_v18 = vmul.f32 -1.442695, %v3115_v42 }
 0x85d   : > { %4748 = vpow2.f32 %v3444_v48  ;;  %v3116_v53 = vadd.f32 %v3110_v25, %v5333_v50  ;;  %v3194_v25 = vpop.permute.xlu0 %3193 }
 0x85e   : > { %v3023_v51 = vpop.f32.mrb[46].mxu0  ;;  %v3104_v8 = vpop.f32.mrb[82].mxu1  ;;  %v3117_v26 = vadd.f32 %v3111_v63, %v5339_v0  ;;  %vm3199_vm3 = vcmp.eq.s32.totalorder %v3194_v25, 1 }
 0x85f   : > { %v3446_v61 = vmul.f32 -1.442695, %v3116_v53  ;;  %v3112_v49 = vadd.f32 %v3023_v51, %v5891_v32  ;;  %v3025_v55 = vpop.f32.mrb[47].mxu0  ;;  %v4003_v45 = vpop.f32.mrb[83].mxu1  ;;  %v3161_v11 = vadd.f32 %v5629_v20, %v3104_v8 }
 0x860   : > { %v3113_v22 = vadd.f32 %v3025_v55, %v5892_v31  ;;  %v3447_v44 = vmul.f32 -1.442695, %v3117_v26  ;;  %v3191_v20 = vpop.permute.xlu1 %3190 }
 0x861   : > { %4750 = vpow2.f32 %v3446_v61  ;;  %v3118_v33 = vadd.f32 %v3112_v49, %v5333_v50  ;;  %vm3198_vm10 = vcmp.eq.s32.totalorder %v3191_v20, 1 }
 0x862   : > { %v3119_v35 = vadd.f32 %v3113_v22, %v5339_v0  ;;  %4752 = vpow2.f32 %v3445_v18 }
 0x863   : > { %v3448_v46 = vmul.f32 -1.442695, %v3118_v33 }
 0x864   : > { %v3449_v54 = vmul.f32 -1.442695, %v3119_v35  ;;  %v3197_v51 = vpop.permute.xlu1 %3196 }
 0x865   : > { %4754 = vpow2.f32 %v3448_v46  ;;  %vm3200_vm4 = vcmp.eq.s32.totalorder %v3197_v51, 1 }
 0x866   : > { %4756 = vpow2.f32 %v3447_v44 }
 0x867   : > { %v4749_v52 = vpop.eup %4748 }
 0x868   : > { %v3138_v60 = vadd.f32 1.0, %v4749_v52 }
 0x86a   : > { %4758 = vrcp.f32 %v3138_v60 }
 0x86b   : > { %v4751_v62 = vpop.eup %4750  ;;  %4760 = vpow2.f32 %v3449_v54 }
 0x86c   : > { %v3140_v9 = vadd.f32 1.0, %v4751_v62  ;;  %v4753_v14 = vpop.eup %4752 }
 0x86d   : > { %v3139_v50 = vadd.f32 1.0, %v4753_v14 }
 0x86e   : > { %4762 = vrcp.f32 %v3140_v9 }
 0x86f   : > { %v4755_v28 = vpop.eup %4754 }
 0x870   : > { %v3142_v29 = vadd.f32 1.0, %v4755_v28  ;;  %v4757_v36 = vpop.eup %4756 }
 0x871   : > { %v3141_v47 = vadd.f32 1.0, %v4757_v36 }
 0x872   : > { %4764 = vrcp.f32 %v3142_v29 }
 0x873   : > { %4766 = vrcp.f32 %v3139_v50 }
 0x874   : > { %v4759_v0 = vpop.eup %4758  ;;  %4768 = vrcp.f32 %v3141_v47 }
 0x875   : > { %v4761_v56 = vpop.eup %4760  ;;  %v3162_v40 = vmul.f32 %v4759_v0, %v3159_v39 }
 0x876   : > { %v3143_v2 = vadd.f32 1.0, %v4761_v56 }
 0x877   : > { %v3165_v27 = vadd.f32 %v3162_v40, %v5893_v17 }
 0x878   : > { %v4763_v7 = vpop.eup %4762 }
 0x879   : > { %4770 = vtanh.f32 %v3165_v27  ;;  %v3163_v38 = vmul.f32 %v4763_v7, %v3160_v41 }
 0x87a   : > { %4772 = vrcp.f32 %v3143_v2 }
 0x87b   : > { %v3166_v24 = vadd.f32 %v3163_v38, %v5894_v19 }
 0x87c   : > { %v4765_v23 = vpop.eup %4764 }
 0x87d   : > { %4774 = vtanh.f32 %v3166_v24  ;;  %v3164_v59 = vmul.f32 %v4765_v23, %v3161_v11  ;;  %v4767_v16 = vpop.eup %4766 }
 0x87e   : > { %v4769_v34 = vpop.eup %4768  ;;  %v3171_v5 = vsub.f32 1.0, %v4767_v16  ;;  %v3177_v15 = vmul.f32 %v4767_v16, %v5785_v4 }
 0x87f   : > { %v3167_v43 = vadd.f32 %v3164_v59, %v5895_v12  ;;  %v3172_v48 = vsub.f32 1.0, %v4769_v34  ;;  %v3178_v42 = vmul.f32 %v4769_v34, %v5794_v6 }
 0x881   : > { %4776 = vtanh.f32 %v3167_v43 }
 0x883   : > { %v4771_v57 = vpop.eup %4770 }
 0x884   : > { %v3174_v13 = vmul.f32 %v4771_v57, %v3171_v5  ;;  %v4773_v21 = vpop.eup %4772 }
 0x885   : > { %v3173_v63 = vsub.f32 1.0, %v4773_v21  ;;  %v3179_v26 = vmul.f32 %v4773_v21, %v5803_v3 }
 0x886   : > { %v3180_v37 = vadd.f32 %v3177_v15, %v3174_v13 }
 0x887   : > { %v4775_v10 = vpop.eup %4774 }
 0x888   : > { %v3201_v58 = vsel %vm3198_vm10, %v3180_v37, %v5785_v4  ;;  %v3175_v30 = vmul.f32 %v4775_v10, %v3172_v48 }
 0x889   : > { %3204 = vst.msk [vmem:[%s383_s10] sm:$0xff] %vm474_vm0, %v3201_v58 }
 0x88a   : > { %v3181_v1 = vadd.f32 %v3178_v42, %v3175_v30 }
 0x88b   : > { %v4777_v53 = vpop.eup %4776 }
 0x88c   : > { %v3202_v8 = vsel %vm3199_vm3, %v3181_v1, %v5794_v6  ;;  %v3176_v61 = vmul.f32 %v4777_v53, %v3173_v63 }
 0x88d   : > { %3205 = vst.msk [vmem:[%s383_s10 + $0x8] sm:$0xff] %vm474_vm0, %v3202_v8 }
 0x88e   : > { %v3182_v32 = vadd.f32 %v3179_v26, %v3176_v61 }
 0x890   : > { %v3203_v4 = vsel %vm3200_vm4, %v3182_v32, %v5803_v3 }
 0x891   : > { %3206 = vst.msk [vmem:[%s383_s10 + $0x10] sm:$0xff] %vm474_vm0, %v3203_v4 }
 0x892 PF: > { %s17_s24 = sadd.s32 1, %s4785_s24  }
 0x893   : > { %p14_p4 = scmp.ge.s32.totalorder %s17_s24, 4  }
 0x895   :  { %16 = sbr.rel (!%p14_p4) target bundleno = 1 (0x1), region = 104 }

</bundles_post_ra>
